<compile_context>
chip_gen: v7x
topology: tpu7x:2x2x1
jax: 0.10.0
libtpu: 0.0.40
codegen_flags: <defaults>
</compile_context>

<pallas_src>
import functools

import jax
import jax.numpy as jnp
from jax.experimental import pallas as pl
from jax.experimental.pallas import tpu as pltpu


_IN_FEATURES = 28 * 28        # 784
_IN_PADDED = 896              # 7 * 128, lane-aligned K for the first matmul


def _round_up(v, m):
    return ((v + m - 1) // m) * m


def _leaky_relu(h):
    return jnp.where(h > 0, h, 0.2 * h)


def _stable_sigmoid(x):
    z = jnp.exp(-jnp.abs(x))
    return jnp.where(x >= 0, 1.0 / (1.0 + z), z / (1.0 + z))


# ----------------------------------------------------------------------------
# Pallas kernel: fused 4-layer MLP
# ----------------------------------------------------------------------------
def _discriminator_kernel(
    x_ref,            # (TB, 896)    bf16
    w1_ref, b1_ref,   # (896, 1024)  bf16, (1, 1024) f32
    w2_ref, b2_ref,   # (1024, 512)  bf16, (1, 512)  f32
    w3_ref, b3_ref,   # (512, 256)   bf16, (1, 256)  f32
    w4_ref, b4_ref,   # (1, 256)     f32,  (1, 1)    f32
    o_ref,            # (TB, 1)      f32
):
    # Layer 1: bf16 MXU matmul, f32 accumulate; bias + LeakyReLU in f32.
    h = jnp.dot(x_ref[...], w1_ref[...], preferred_element_type=jnp.float32)
    h = _leaky_relu(h + b1_ref[...])

    # Layer 2
    h = jnp.dot(h.astype(jnp.bfloat16), w2_ref[...],
                preferred_element_type=jnp.float32)
    h = _leaky_relu(h + b2_ref[...])

    # Layer 3
    h = jnp.dot(h.astype(jnp.bfloat16), w3_ref[...],
                preferred_element_type=jnp.float32)
    h = _leaky_relu(h + b3_ref[...])

    # Layer 4 (N=1): VPU multiply + lane reduction instead of an MXU matmul.
    logits = jnp.sum(h * w4_ref[...], axis=-1, keepdims=True) + b4_ref[...]

    o_ref[...] = _stable_sigmoid(logits)


# ----------------------------------------------------------------------------
# Wrapper
# ----------------------------------------------------------------------------
@functools.partial(jax.jit, static_argnames=("batch_tile",))
def discriminator_forward(x, params, batch_tile=256):
    """x: any shape reshaping to (-1, 784) (NCHW MNIST), like x.view(-1, 784)."""
    x = x.astype(jnp.float32).reshape(-1, _IN_FEATURES)
    b = x.shape[0]

    # Balanced tile selection: big tiles for large batches, minimal padding
    # for small / awkward ones.  Tile stays a multiple of 8 (sublane).
    num_tiles = max(1, pl.cdiv(b, batch_tile))
    tile = _round_up(pl.cdiv(b, num_tiles), 8)
    tile = max(8, tile)
    b_pad = num_tiles * tile

    # Pad batch to a tile multiple and features 784 -> 896 (dense K passes).
    x = jnp.pad(x, ((0, b_pad - b), (0, _IN_PADDED - _IN_FEATURES)))
    x = x.astype(jnp.bfloat16)

    (w1, b1), (w2, b2), (w3, b3), (w4, b4) = params
    w1 = jnp.pad(w1, ((0, _IN_PADDED - _IN_FEATURES), (0, 0))).astype(jnp.bfloat16)
    w2 = w2.astype(jnp.bfloat16)
    w3 = w3.astype(jnp.bfloat16)
    w4 = w4.reshape(1, 256).astype(jnp.float32)   # row vector for VPU reduction
    b1 = b1.reshape(1, 1024).astype(jnp.float32)
    b2 = b2.reshape(1, 512).astype(jnp.float32)
    b3 = b3.reshape(1, 256).astype(jnp.float32)
    b4 = b4.reshape(1, 1).astype(jnp.float32)

    grid = (num_tiles,)

    def whole(a):
        # Full-array block, same block every grid step (weights stay resident).
        return pl.BlockSpec(a.shape, lambda i: (0, 0))

    out = pl.pallas_call(
        _discriminator_kernel,
        out_shape=jax.ShapeDtypeStruct((b_pad, 1), jnp.float32),
        grid_spec=pltpu.PrefetchScalarGridSpec(
            num_scalar_prefetch=0,
            grid=grid,
            in_specs=[
                pl.BlockSpec((tile, _IN_PADDED), lambda i: (i, 0)),  # x tile
                whole(w1), whole(b1),
                whole(w2), whole(b2),
                whole(w3), whole(b3),
                whole(w4), whole(b4),
            ],
            out_specs=pl.BlockSpec((tile, 1), lambda i: (i, 0)),
        ),
        compiler_params=pltpu.CompilerParams(
            dimension_semantics=("parallel",),
            vmem_limit_bytes=32 << 20,
        ),
    )(x, w1, b1, w2, b2, w3, b3, w4, b4)

    return out[:b]


# ----------------------------------------------------------------------------
# Deterministic parameter init (mimics nn.Linear default U(-1/sqrt(fan_in), ..))
# Weights stored (in_features, out_features) so the kernel computes x @ W + b.
# ----------------------------------------------------------------------------
def init_params(key):
    dims = [(_IN_FEATURES, 1024), (1024, 512), (512, 256), (256, 1)]
    params = []
    for (fan_in, fan_out) in dims:
        key, kw, kb = jax.random.split(key, 3)
        bound = 1.0 / (fan_in ** 0.5)
        w = jax.random.uniform(kw, (fan_in, fan_out), jnp.float32, -bound, bound)
        bias = jax.random.uniform(kb, (1, fan_out), jnp.float32, -bound, bound)
        params.append((w, bias))
    return params


# ----------------------------------------------------------------------------
# References
# ----------------------------------------------------------------------------
def reference_forward_matched(x, params):
    """Pure-JAX reference with the same bf16/f32 mixed-precision recipe."""
    h = x.astype(jnp.float32).reshape(-1, _IN_FEATURES)
    (w1, b1), (w2, b2), (w3, b3), (w4, b4) = params
    h = _leaky_relu(jnp.dot(h.astype(jnp.bfloat16), w1.astype(jnp.bfloat16),
                            preferred_element_type=jnp.float32) + b1)
    h = _leaky_relu(jnp.dot(h.astype(jnp.bfloat16), w2.astype(jnp.bfloat16),
                            preferred_element_type=jnp.float32) + b2)
    h = _leaky_relu(jnp.dot(h.astype(jnp.bfloat16), w3.astype(jnp.bfloat16),
                            preferred_element_type=jnp.float32) + b3)
    logits = jnp.sum(h * w4.reshape(1, 256), axis=-1, keepdims=True) + b4.reshape(1, 1)
    return _stable_sigmoid(logits)


def reference_forward_f32(x, params):
    """Full-precision reference matching the original PyTorch module."""
    h = x.astype(jnp.float32).reshape(-1, _IN_FEATURES)
    (w1, b1), (w2, b2), (w3, b3), (w4, b4) = params
    h = jax.nn.leaky_relu(h @ w1 + b1, 0.2)
    h = jax.nn.leaky_relu(h @ w2 + b2, 0.2)
    h = jax.nn.leaky_relu(h @ w3 + b3, 0.2)
    return jax.nn.sigmoid(h @ w4 + b4)


if __name__ == "__main__":
    key = jax.random.PRNGKey(0)
    k_param, k_x1, k_x2 = jax.random.split(key, 3)

    params = init_params(k_param)

    # Tiny MNIST-shaped batch (NCHW, like the PyTorch module) — clamped-tile path.
    x_small = jax.random.normal(k_x1, (2, 1, 28, 28), jnp.float32)
    out_small = jax.block_until_ready(discriminator_forward(x_small, params))
    assert out_small.shape == (2, 1), out_small.shape
    ref_m = reference_forward_matched(x_small, params)
    ref_f = reference_forward_f32(x_small, params)
    assert jnp.allclose(out_small, ref_m, atol=1e-4, rtol=1e-4), (out_small, ref_m)
    assert jnp.allclose(out_small, ref_f, atol=5e-2), (out_small, ref_f)

    # Larger batch exercising the balanced-tile + batch-padding path (2 x 152 rows).
    x_big = jax.random.normal(k_x2, (300, 1, 28, 28), jnp.float32)
    out_big = jax.block_until_ready(discriminator_forward(x_big, params))
    assert out_big.shape == (300, 1), out_big.shape
    ref_m2 = reference_forward_matched(x_big, params)
    assert jnp.allclose(out_big, ref_m2, atol=1e-4, rtol=1e-4)

    print("KERNEL_OK")
</pallas_src>

<mosaic_0001>
module attributes {stable_mosaic.version = 11 : i64} {
  func.func @_discriminator_kernel(%arg0: i32, %arg1: memref<8x896xbf16, #tpu.memory_space<vmem>>, %arg2: memref<896x1024xbf16, #tpu.memory_space<vmem>>, %arg3: memref<1x1024xf32, #tpu.memory_space<vmem>>, %arg4: memref<1024x512xbf16, #tpu.memory_space<vmem>>, %arg5: memref<1x512xf32, #tpu.memory_space<vmem>>, %arg6: memref<512x256xbf16, #tpu.memory_space<vmem>>, %arg7: memref<1x256xf32, #tpu.memory_space<vmem>>, %arg8: memref<1x256xf32, #tpu.memory_space<vmem>>, %arg9: memref<1x1xf32, #tpu.memory_space<vmem>>, %arg10: memref<8x1xf32, #tpu.memory_space<vmem>>) attributes {dimension_semantics = [#tpu.dimension_semantics<parallel>], iteration_bounds = array<i64: 1>, scalar_prefetch = 0 : i64, scratch_operands = 0 : i64, tpu.core_type = #tpu.core_type<tc>, window_params = [{transform_indices = @transform_0, window_bounds = array<i64: 8, 896>}, {pipeline_mode = #tpu.pipeline_mode<synchronous>, transform_indices = @transform_1, window_bounds = array<i64: 896, 1024>}, {pipeline_mode = #tpu.pipeline_mode<synchronous>, transform_indices = @transform_2, window_bounds = array<i64: 1, 1024>}, {pipeline_mode = #tpu.pipeline_mode<synchronous>, transform_indices = @transform_3, window_bounds = array<i64: 1024, 512>}, {pipeline_mode = #tpu.pipeline_mode<synchronous>, transform_indices = @transform_4, window_bounds = array<i64: 1, 512>}, {pipeline_mode = #tpu.pipeline_mode<synchronous>, transform_indices = @transform_5, window_bounds = array<i64: 512, 256>}, {pipeline_mode = #tpu.pipeline_mode<synchronous>, transform_indices = @transform_6, window_bounds = array<i64: 1, 256>}, {pipeline_mode = #tpu.pipeline_mode<synchronous>, transform_indices = @transform_7, window_bounds = array<i64: 1, 256>}, {pipeline_mode = #tpu.pipeline_mode<synchronous>, transform_indices = @transform_8, window_bounds = array<i64: 1, 1>}, {transform_indices = @transform_9, window_bounds = array<i64: 8, 1>}]} {
    %c0 = arith.constant 0 : index
    %c0_0 = arith.constant 0 : index
    %0 = vector.load %arg1[%c0, %c0_0] : memref<8x896xbf16, #tpu.memory_space<vmem>>, vector<8x896xbf16>
    %c0_1 = arith.constant 0 : index
    %c0_2 = arith.constant 0 : index
    %1 = vector.load %arg2[%c0_1, %c0_2] : memref<896x1024xbf16, #tpu.memory_space<vmem>>, vector<896x1024xbf16>
    %cst = arith.constant dense<0.000000e+00> : vector<8x1024xf32>
    %2 = tpu.matmul %0, %1, %cst {dimension_numbers = #tpu.dot_dimension_numbers<[1], [0], [0], [1], [0, 0, 1, 1], [], []>} : vector<8x896xbf16>, vector<896x1024xbf16>, vector<8x1024xf32> -> vector<8x1024xf32>
    %c0_3 = arith.constant 0 : index
    %c0_4 = arith.constant 0 : index
    %3 = vector.load %arg3[%c0_3, %c0_4] : memref<1x1024xf32, #tpu.memory_space<vmem>>, vector<1x1024xf32>
    %4 = vector.broadcast %3 : vector<1x1024xf32> to vector<8x1024xf32>
    %5 = arith.addf %2, %4 : vector<8x1024xf32>
    %cst_5 = arith.constant 0.000000e+00 : f32
    %6 = vector.broadcast %cst_5 : f32 to vector<8x1024xf32>
    %7 = arith.cmpf ogt, %5, %6 : vector<8x1024xf32>
    %cst_6 = arith.constant 2.000000e-01 : f32
    %8 = vector.broadcast %cst_6 : f32 to vector<8x1024xf32>
    %9 = arith.mulf %8, %5 : vector<8x1024xf32>
    %10 = arith.select %7, %5, %9 : vector<8x1024xi1>, vector<8x1024xf32>
    %11 = arith.truncf %10 : vector<8x1024xf32> to vector<8x1024xbf16>
    %c0_7 = arith.constant 0 : index
    %c0_8 = arith.constant 0 : index
    %12 = vector.load %arg4[%c0_7, %c0_8] : memref<1024x512xbf16, #tpu.memory_space<vmem>>, vector<1024x512xbf16>
    %cst_9 = arith.constant dense<0.000000e+00> : vector<8x512xf32>
    %13 = tpu.matmul %11, %12, %cst_9 {dimension_numbers = #tpu.dot_dimension_numbers<[1], [0], [0], [1], [0, 0, 1, 1], [], []>} : vector<8x1024xbf16>, vector<1024x512xbf16>, vector<8x512xf32> -> vector<8x512xf32>
    %c0_10 = arith.constant 0 : index
    %c0_11 = arith.constant 0 : index
    %14 = vector.load %arg5[%c0_10, %c0_11] : memref<1x512xf32, #tpu.memory_space<vmem>>, vector<1x512xf32>
    %15 = vector.broadcast %14 : vector<1x512xf32> to vector<8x512xf32>
    %16 = arith.addf %13, %15 : vector<8x512xf32>
    %cst_12 = arith.constant 0.000000e+00 : f32
    %17 = vector.broadcast %cst_12 : f32 to vector<8x512xf32>
    %18 = arith.cmpf ogt, %16, %17 : vector<8x512xf32>
    %cst_13 = arith.constant 2.000000e-01 : f32
    %19 = vector.broadcast %cst_13 : f32 to vector<8x512xf32>
    %20 = arith.mulf %19, %16 : vector<8x512xf32>
    %21 = arith.select %18, %16, %20 : vector<8x512xi1>, vector<8x512xf32>
    %22 = arith.truncf %21 : vector<8x512xf32> to vector<8x512xbf16>
    %c0_14 = arith.constant 0 : index
    %c0_15 = arith.constant 0 : index
    %23 = vector.load %arg6[%c0_14, %c0_15] : memref<512x256xbf16, #tpu.memory_space<vmem>>, vector<512x256xbf16>
    %cst_16 = arith.constant dense<0.000000e+00> : vector<8x256xf32>
    %24 = tpu.matmul %22, %23, %cst_16 {dimension_numbers = #tpu.dot_dimension_numbers<[1], [0], [0], [1], [0, 0, 1, 1], [], []>} : vector<8x512xbf16>, vector<512x256xbf16>, vector<8x256xf32> -> vector<8x256xf32>
    %c0_17 = arith.constant 0 : index
    %c0_18 = arith.constant 0 : index
    %25 = vector.load %arg7[%c0_17, %c0_18] : memref<1x256xf32, #tpu.memory_space<vmem>>, vector<1x256xf32>
    %26 = vector.broadcast %25 : vector<1x256xf32> to vector<8x256xf32>
    %27 = arith.addf %24, %26 : vector<8x256xf32>
    %cst_19 = arith.constant 0.000000e+00 : f32
    %28 = vector.broadcast %cst_19 : f32 to vector<8x256xf32>
    %29 = arith.cmpf ogt, %27, %28 : vector<8x256xf32>
    %cst_20 = arith.constant 2.000000e-01 : f32
    %30 = vector.broadcast %cst_20 : f32 to vector<8x256xf32>
    %31 = arith.mulf %30, %27 : vector<8x256xf32>
    %32 = arith.select %29, %27, %31 : vector<8x256xi1>, vector<8x256xf32>
    %c0_21 = arith.constant 0 : index
    %c0_22 = arith.constant 0 : index
    %33 = vector.load %arg8[%c0_21, %c0_22] : memref<1x256xf32, #tpu.memory_space<vmem>>, vector<1x256xf32>
    %34 = vector.broadcast %33 : vector<1x256xf32> to vector<8x256xf32>
    %35 = arith.mulf %32, %34 : vector<8x256xf32>
    %cst_23 = arith.constant dense<0.000000e+00> : vector<8xf32>
    %36 = vector.multi_reduction <add>, %35, %cst_23 [1] : vector<8x256xf32> to vector<8xf32>
    %37 = vector.shape_cast %36 : vector<8xf32> to vector<8x1xf32>
    %c0_24 = arith.constant 0 : index
    %c0_25 = arith.constant 0 : index
    %38 = vector.load %arg9[%c0_24, %c0_25] : memref<1x1xf32, #tpu.memory_space<vmem>>, vector<1x1xf32>
    %39 = vector.broadcast %38 : vector<1x1xf32> to vector<8x1xf32>
    %40 = arith.addf %37, %39 : vector<8x1xf32>
    %41 = math.absf %40 : vector<8x1xf32>
    %cst_26 = arith.constant 0.000000e+00 : f32
    %42 = vector.broadcast %cst_26 : f32 to vector<8x1xf32>
    %43 = arith.subf %42, %41 : vector<8x1xf32>
    %44 = math.exp %43 : vector<8x1xf32>
    %cst_27 = arith.constant 0.000000e+00 : f32
    %45 = vector.broadcast %cst_27 : f32 to vector<8x1xf32>
    %46 = arith.cmpf oge, %40, %45 : vector<8x1xf32>
    %cst_28 = arith.constant 1.000000e+00 : f32
    %47 = vector.broadcast %cst_28 : f32 to vector<8x1xf32>
    %48 = arith.addf %47, %44 : vector<8x1xf32>
    %cst_29 = arith.constant 1.000000e+00 : f32
    %49 = vector.broadcast %cst_29 : f32 to vector<8x1xf32>
    %50 = arith.divf %49, %48 : vector<8x1xf32>
    %cst_30 = arith.constant 1.000000e+00 : f32
    %51 = vector.broadcast %cst_30 : f32 to vector<8x1xf32>
    %52 = arith.addf %51, %44 : vector<8x1xf32>
    %53 = arith.divf %44, %52 : vector<8x1xf32>
    %54 = arith.select %46, %50, %53 : vector<8x1xi1>, vector<8x1xf32>
    %c0_31 = arith.constant 0 : index
    %c0_32 = arith.constant 0 : index
    %55 = vector.load %arg10[%c0_31, %c0_32] : memref<8x1xf32, #tpu.memory_space<vmem>>, vector<8x1xf32>
    tpu.vector_store %arg10[%c0_31, %c0_32], %54 {strides = array<i32>} : memref<8x1xf32, #tpu.memory_space<vmem>>, vector<8x1xf32>,
    return
  }
  func.func @transform_0(%arg0: i32) -> (i32, i32) {
    %c0_i32 = arith.constant 0 : i32
    %c0_i32_0 = arith.constant 0 : i32
    return %arg0, %c0_i32 : i32, i32
  }
  func.func @transform_1(%arg0: i32) -> (i32, i32) {
    %c0_i32 = arith.constant 0 : i32
    %c0_i32_0 = arith.constant 0 : i32
    %c0_i32_1 = arith.constant 0 : i32
    return %c0_i32, %c0_i32_0 : i32, i32
  }
  func.func @transform_2(%arg0: i32) -> (i32, i32) {
    %c0_i32 = arith.constant 0 : i32
    %c0_i32_0 = arith.constant 0 : i32
    %c0_i32_1 = arith.constant 0 : i32
    return %c0_i32, %c0_i32_0 : i32, i32
  }
  func.func @transform_3(%arg0: i32) -> (i32, i32) {
    %c0_i32 = arith.constant 0 : i32
    %c0_i32_0 = arith.constant 0 : i32
    %c0_i32_1 = arith.constant 0 : i32
    return %c0_i32, %c0_i32_0 : i32, i32
  }
  func.func @transform_4(%arg0: i32) -> (i32, i32) {
    %c0_i32 = arith.constant 0 : i32
    %c0_i32_0 = arith.constant 0 : i32
    %c0_i32_1 = arith.constant 0 : i32
    return %c0_i32, %c0_i32_0 : i32, i32
  }
  func.func @transform_5(%arg0: i32) -> (i32, i32) {
    %c0_i32 = arith.constant 0 : i32
    %c0_i32_0 = arith.constant 0 : i32
    %c0_i32_1 = arith.constant 0 : i32
    return %c0_i32, %c0_i32_0 : i32, i32
  }
  func.func @transform_6(%arg0: i32) -> (i32, i32) {
    %c0_i32 = arith.constant 0 : i32
    %c0_i32_0 = arith.constant 0 : i32
    %c0_i32_1 = arith.constant 0 : i32
    return %c0_i32, %c0_i32_0 : i32, i32
  }
  func.func @transform_7(%arg0: i32) -> (i32, i32) {
    %c0_i32 = arith.constant 0 : i32
    %c0_i32_0 = arith.constant 0 : i32
    %c0_i32_1 = arith.constant 0 : i32
    return %c0_i32, %c0_i32_0 : i32, i32
  }
  func.func @transform_8(%arg0: i32) -> (i32, i32) {
    %c0_i32 = arith.constant 0 : i32
    %c0_i32_0 = arith.constant 0 : i32
    %c0_i32_1 = arith.constant 0 : i32
    return %c0_i32, %c0_i32_0 : i32, i32
  }
  func.func @transform_9(%arg0: i32) -> (i32, i32) {
    %c0_i32 = arith.constant 0 : i32
    %c0_i32_0 = arith.constant 0 : i32
    return %arg0, %c0_i32 : i32, i32
  }
}

</mosaic_0001>

<bundles_post_ra>
// kernel: discriminator_forward.1
= control target key start
LH: loop header
LB: loop body
LE: loop exit
PB: predicated region body
PF: predicated region fallthrough
CT: control target
= control target key end

     0   :  { %vm5903_vm14 = vcmask 7168   ;;  %s9811_s1 = inlined_call_operand.vmem [shape: bf16[896,1024], index: 1, kind: input, shape index: {}]   ;;  %s9812_s0 = inlined_call_operand.vmem [shape: bf16[8,896], index: 0, kind: input, shape index: {}]   ;;  %s9813_s3 = inlined_call_operand.vmem [shape: bf16[1024,512], index: 3, kind: input, shape index: {}]   ;;  %s9814_s2 = inlined_call_operand.vmem [shape: f32[1,1024], index: 2, kind: input, shape index: {}]   ;;  %s9815_s5 = inlined_call_operand.vmem [shape: bf16[512,256], index: 5, kind: input, shape index: {}]   ;;  %s9816_s4 = inlined_call_operand.vmem [shape: f32[1,512], index: 4, kind: input, shape index: {}]   ;;  %s9817_s8 = inlined_call_operand.<no memory space> [shape: f32[1,1], index: 8, kind: input, shape index: {}]   ;;  %s9818_s6 = inlined_call_operand.vmem [shape: f32[1,256], index: 6, kind: input, shape index: {}]   ;;  %s9819_s7 = inlined_call_operand.vmem [shape: f32[1,256], index: 7, kind: input, shape index: {}]   ;;  %s9820_s9 = inlined_call_operand.vmem [shape: f32[8,1], index: 9, kind: output, shape index: {}]  }
   0x1   :  { %v39_v0 = vld [vmem:[%s9811_s1] sm:$0xff]  ;;  %v7410_v54 = vld [vmem:[%s9812_s0 + $0x8] sm:$0xff] }
   0x2   :  { %v43_v1 = vld [vmem:[%s9811_s1 + $0x20] sm:$0xff]  ;;  %v7430_v61 = vcombine.high %v7410_v54, %v7410_v54 }
   0x3   :  { %v167_v2 = vld [vmem:[%s9811_s1 + $0x400] sm:$0xff]  ;;  %v5917_v3 = vcombine.high %v39_v0, %v43_v1  ;;  %v5916_v5 = vcombine.low %v39_v0, %v43_v1 }
   0x4   :  { %v171_v4 = vld [vmem:[%s9811_s1 + $0x420] sm:$0xff]  ;;  %2867 = vmatprep.mubr.bf16.mxu0 %v7430_v61 }
   0x5   :  { %v47_v6 = vld [vmem:[%s9811_s1 + $0x40] sm:$0xff]  ;;  %v6045_v8 = vcombine.high %v167_v2, %v171_v4  ;;  %v6044_v9 = vcombine.low %v167_v2, %v171_v4  ;;  %2794 = vmatprep.subr.bf16.mxu1 %v5917_v3 }
   0x6   :  { %v51_v7 = vld [vmem:[%s9811_s1 + $0x60] sm:$0xff]  ;;  %2795 = vmatpush1.bf16.msra.mxu1 %v5916_v5 }
   0x7   :  { %v5925_v10 = vcombine.high %v47_v6, %v51_v7  ;;  %v175_v11 = vld [vmem:[%s9811_s1 + $0x440] sm:$0xff]  ;;  %2835 = vmatprep.subr.bf16.mxu0 %v6045_v8  ;;  %v5924_v18 = vcombine.low %v47_v6, %v51_v7 }
   0x8   :  { %v179_v12 = vld [vmem:[%s9811_s1 + $0x460] sm:$0xff]  ;;  %2836 = vmatpush1.bf16.msra.mxu0 %v6044_v9 }
   0x9   :  { %v55_v13 = vld [vmem:[%s9811_s1 + $0x80] sm:$0xff]  ;;  %v6053_v14 = vcombine.high %v175_v11, %v179_v12  ;;  %2796 = vmatprep.subr.bf16.mxu1 %v5925_v10  ;;  %v6052_v19 = vcombine.low %v175_v11, %v179_v12 }
   0xa   :  { %v59_v15 = vld [vmem:[%s9811_s1 + $0xa0] sm:$0xff]  ;;  %2797 = vmatpush1.bf16.msra.mxu1 %v5924_v18 }
   0xb   :  { %v183_v16 = vld [vmem:[%s9811_s1 + $0x480] sm:$0xff]  ;;  %v5933_v20 = vcombine.high %v55_v13, %v59_v15  ;;  %2837 = vmatprep.subr.bf16.mxu0 %v6053_v14  ;;  %v5932_v26 = vcombine.low %v55_v13, %v59_v15 }
   0xc   :  { %v187_v17 = vld [vmem:[%s9811_s1 + $0x4a0] sm:$0xff]  ;;  %2838 = vmatpush1.bf16.msra.mxu0 %v6052_v19 }
   0xd   :  { %v6061_v21 = vcombine.high %v183_v16, %v187_v17  ;;  %v63_v22 = vld [vmem:[%s9811_s1 + $0xc0] sm:$0xff]  ;;  %2798 = vmatprep.subr.bf16.mxu1 %v5933_v20  ;;  %v6060_v27 = vcombine.low %v183_v16, %v187_v17 }
   0xe   :  { %v67_v23 = vld [vmem:[%s9811_s1 + $0xe0] sm:$0xff]  ;;  %2799 = vmatpush1.bf16.msra.mxu1 %v5932_v26 }
   0xf   :  { %v191_v24 = vld [vmem:[%s9811_s1 + $0x4c0] sm:$0xff]  ;;  %v5941_v28 = vcombine.high %v63_v22, %v67_v23  ;;  %2839 = vmatprep.subr.bf16.mxu0 %v6061_v21  ;;  %v5940_v34 = vcombine.low %v63_v22, %v67_v23 }
  0x10   :  { %v195_v25 = vld [vmem:[%s9811_s1 + $0x4e0] sm:$0xff]  ;;  %2840 = vmatpush1.bf16.msra.mxu0 %v6060_v27 }
  0x11   :  { %v6069_v29 = vcombine.high %v191_v24, %v195_v25  ;;  %v71_v30 = vld [vmem:[%s9811_s1 + $0x100] sm:$0xff]  ;;  %2800 = vmatprep.subr.bf16.mxu1 %v5941_v28  ;;  %v6068_v35 = vcombine.low %v191_v24, %v195_v25 }
  0x12   :  { %v75_v31 = vld [vmem:[%s9811_s1 + $0x120] sm:$0xff]  ;;  %2801 = vmatpush1.bf16.msra.mxu1 %v5940_v34 }
  0x13   :  { %v199_v32 = vld [vmem:[%s9811_s1 + $0x500] sm:$0xff]  ;;  %v5949_v36 = vcombine.high %v71_v30, %v75_v31  ;;  %2841 = vmatprep.subr.bf16.mxu0 %v6069_v29  ;;  %v5948_v42 = vcombine.low %v71_v30, %v75_v31 }
  0x14   :  { %v203_v33 = vld [vmem:[%s9811_s1 + $0x520] sm:$0xff]  ;;  %2842 = vmatpush1.bf16.msra.mxu0 %v6068_v35 }
  0x15   :  { %v6077_v37 = vcombine.high %v199_v32, %v203_v33  ;;  %v79_v38 = vld [vmem:[%s9811_s1 + $0x140] sm:$0xff]  ;;  %2802 = vmatprep.subr.bf16.mxu1 %v5949_v36  ;;  %v6076_v43 = vcombine.low %v199_v32, %v203_v33 }
  0x16   :  { %v83_v39 = vld [vmem:[%s9811_s1 + $0x160] sm:$0xff]  ;;  %2803 = vmatpush1.bf16.msra.mxu1 %v5948_v42 }
  0x17   :  { %v207_v40 = vld [vmem:[%s9811_s1 + $0x540] sm:$0xff]  ;;  %v5957_v44 = vcombine.high %v79_v38, %v83_v39  ;;  %2843 = vmatprep.subr.bf16.mxu0 %v6077_v37  ;;  %v5956_v50 = vcombine.low %v79_v38, %v83_v39 }
  0x18   :  { %v211_v41 = vld [vmem:[%s9811_s1 + $0x560] sm:$0xff]  ;;  %2844 = vmatpush1.bf16.msra.mxu0 %v6076_v43 }
  0x19   :  { %v6085_v45 = vcombine.high %v207_v40, %v211_v41  ;;  %v87_v46 = vld [vmem:[%s9811_s1 + $0x180] sm:$0xff]  ;;  %2804 = vmatprep.subr.bf16.mxu1 %v5957_v44  ;;  %v6084_v51 = vcombine.low %v207_v40, %v211_v41 }
  0x1a   :  { %v91_v47 = vld [vmem:[%s9811_s1 + $0x1a0] sm:$0xff]  ;;  %2805 = vmatpush1.bf16.msra.mxu1 %v5956_v50 }
  0x1b   :  { %v215_v48 = vld [vmem:[%s9811_s1 + $0x580] sm:$0xff]  ;;  %v5965_v52 = vcombine.high %v87_v46, %v91_v47  ;;  %2845 = vmatprep.subr.bf16.mxu0 %v6085_v45  ;;  %v5964_v62 = vcombine.low %v87_v46, %v91_v47 }
  0x1c   :  { %v219_v49 = vld [vmem:[%s9811_s1 + $0x5a0] sm:$0xff]  ;;  %2846 = vmatpush1.bf16.msra.mxu0 %v6084_v51 }
  0x1d   :  { %v7405_v53 = vld [vmem:[%s9812_s0] sm:$0xff]  ;;  %v6093_v55 = vcombine.high %v215_v48, %v219_v49  ;;  %2806 = vmatprep.subr.bf16.mxu1 %v5965_v52  ;;  %v6092_v63 = vcombine.low %v215_v48, %v219_v49 }
  0x1e   :  { %v95_v56 = vld [vmem:[%s9811_s1 + $0x1c0] sm:$0xff]  ;;  %v7420_v58 = vcombine.high %v7405_v53, %v7405_v53  ;;  %2807 = vmatpush1.bf16.msra.mxu1 %v5964_v62 }
  0x1f   :  { %v99_v57 = vld [vmem:[%s9811_s1 + $0x1e0] sm:$0xff]  ;;  %2847 = vmatprep.subr.bf16.mxu0 %v6093_v55 }
  0x20   :  { %v223_v59 = vld [vmem:[%s9811_s1 + $0x5c0] sm:$0xff]  ;;  %2826 = vmatprep.mubr.bf16.mxu1 %v7420_v58  ;;  %v5973_v0 = vcombine.high %v95_v56, %v99_v57  ;;  %v5972_v6 = vcombine.low %v95_v56, %v99_v57  ;;  %2848 = vmatpush1.bf16.msra.mxu0 %v6092_v63 }
  0x21   :  { %v227_v60 = vld [vmem:[%s9811_s1 + $0x5e0] sm:$0xff] }
  0x22   :  { %v6101_v1 = vcombine.high %v223_v59, %v227_v60  ;;  %v103_v2 = vld [vmem:[%s9811_s1 + $0x200] sm:$0xff]  ;;  %2808 = vmatprep.subr.bf16.mxu1 %v5973_v0  ;;  %v6100_v7 = vcombine.low %v223_v59, %v227_v60 }
  0x23   :  { %v107_v3 = vld [vmem:[%s9811_s1 + $0x220] sm:$0xff]  ;;  %2809 = vmatpush1.bf16.msra.mxu1 %v5972_v6  ;;  %v40_v6 = vld [vmem:[%s9811_s1 + $0x8] sm:$0xff] }
  0x24   :  { %v231_v4 = vld [vmem:[%s9811_s1 + $0x600] sm:$0xff]  ;;  %v5981_v8 = vcombine.high %v103_v2, %v107_v3  ;;  %2849 = vmatprep.subr.bf16.mxu0 %v6101_v1  ;;  %v5980_v14 = vcombine.low %v103_v2, %v107_v3 }
  0x25   :  { %v235_v5 = vld [vmem:[%s9811_s1 + $0x620] sm:$0xff]  ;;  %2850 = vmatpush1.bf16.msra.mxu0 %v6100_v7  ;;  %v44_v7 = vld [vmem:[%s9811_s1 + $0x28] sm:$0xff] }
  0x26   :  { %v6109_v9 = vcombine.high %v231_v4, %v235_v5  ;;  %v111_v10 = vld [vmem:[%s9811_s1 + $0x240] sm:$0xff]  ;;  %2810 = vmatprep.subr.bf16.mxu1 %v5981_v8  ;;  %v6108_v15 = vcombine.low %v231_v4, %v235_v5 }
  0x27   :  { %v115_v11 = vld [vmem:[%s9811_s1 + $0x260] sm:$0xff]  ;;  %2811 = vmatpush1.bf16.msra.mxu1 %v5980_v14  ;;  %v48_v14 = vld [vmem:[%s9811_s1 + $0x48] sm:$0xff] }
  0x28   :  { %v239_v12 = vld [vmem:[%s9811_s1 + $0x640] sm:$0xff]  ;;  %v5989_v16 = vcombine.high %v111_v10, %v115_v11  ;;  %2851 = vmatprep.subr.bf16.mxu0 %v6109_v9  ;;  %v5988_v22 = vcombine.low %v111_v10, %v115_v11 }
  0x29   :  { %v243_v13 = vld [vmem:[%s9811_s1 + $0x660] sm:$0xff]  ;;  %2852 = vmatpush1.bf16.msra.mxu0 %v6108_v15  ;;  %v52_v15 = vld [vmem:[%s9811_s1 + $0x68] sm:$0xff] }
  0x2a   :  { %v6117_v17 = vcombine.high %v239_v12, %v243_v13  ;;  %v119_v18 = vld [vmem:[%s9811_s1 + $0x280] sm:$0xff]  ;;  %2812 = vmatprep.subr.bf16.mxu1 %v5989_v16  ;;  %v6116_v23 = vcombine.low %v239_v12, %v243_v13  ;;  %v5919_v12 = vcombine.high %v40_v6, %v44_v7  ;;  %v7550_v16 = vcombine.low %v7405_v53, %v7405_v53 }
  0x2b   :  { %v123_v19 = vld [vmem:[%s9811_s1 + $0x2a0] sm:$0xff]  ;;  %2813 = vmatpush1.bf16.msra.mxu1 %v5988_v22  ;;  %v5927_v22 = vcombine.high %v48_v14, %v52_v15 }
  0x2c   :  { %v247_v20 = vld [vmem:[%s9811_s1 + $0x680] sm:$0xff]  ;;  %v5997_v24 = vcombine.high %v119_v18, %v123_v19  ;;  %2853 = vmatprep.subr.bf16.mxu0 %v6117_v17  ;;  %v5996_v30 = vcombine.low %v119_v18, %v123_v19  ;;  %v7561_v19 = vld [vmem:[%s9812_s0 + $0x10] sm:$0xff] }
  0x2d   :  { %v251_v21 = vld [vmem:[%s9811_s1 + $0x6a0] sm:$0xff]  ;;  %2854 = vmatpush1.bf16.msra.mxu0 %v6116_v23 }
  0x2e   :  { %v6125_v25 = vcombine.high %v247_v20, %v251_v21  ;;  %v127_v26 = vld [vmem:[%s9811_s1 + $0x2c0] sm:$0xff]  ;;  %2814 = vmatprep.subr.bf16.mxu1 %v5997_v24  ;;  %v6124_v31 = vcombine.low %v247_v20, %v251_v21  ;;  %v5918_v20 = vcombine.low %v40_v6, %v44_v7  ;;  %v7565_v21 = vcombine.low %v7410_v54, %v7410_v54  ;;  %v56_v24 = vld [vmem:[%s9811_s1 + $0x88] sm:$0xff] }
  0x2f   :  { %v131_v27 = vld [vmem:[%s9811_s1 + $0x2e0] sm:$0xff]  ;;  %2815 = vmatpush1.bf16.msra.mxu1 %v5996_v30 }
  0x30   :  { %v255_v28 = vld [vmem:[%s9811_s1 + $0x6c0] sm:$0xff]  ;;  %v6005_v32 = vcombine.high %v127_v26, %v131_v27  ;;  %2855 = vmatprep.subr.bf16.mxu0 %v6125_v25  ;;  %v6004_v38 = vcombine.low %v127_v26, %v131_v27  ;;  %v60_v25 = vld [vmem:[%s9811_s1 + $0xa8] sm:$0xff]  ;;  %v7575_v26 = vcombine.high %v7561_v19, %v7561_v19 }
  0x31   :  { %v259_v29 = vld [vmem:[%s9811_s1 + $0x6e0] sm:$0xff]  ;;  %2856 = vmatpush1.bf16.msra.mxu0 %v6124_v31  ;;  %v5935_v30 = vcombine.high %v56_v24, %v60_v25 }
  0x32   :  { %v6133_v33 = vcombine.high %v255_v28, %v259_v29  ;;  %v135_v34 = vld [vmem:[%s9811_s1 + $0x300] sm:$0xff]  ;;  %2816 = vmatprep.subr.bf16.mxu1 %v6005_v32  ;;  %v6132_v39 = vcombine.low %v255_v28, %v259_v29  ;;  %v5926_v28 = vcombine.low %v48_v14, %v52_v15  ;;  %v64_v32 = vld [vmem:[%s9811_s1 + $0xc8] sm:$0xff] }
  0x33   :  { %v139_v35 = vld [vmem:[%s9811_s1 + $0x320] sm:$0xff]  ;;  %2817 = vmatpush1.bf16.msra.mxu1 %v6004_v38 }
  0x34   :  { %v263_v36 = vld [vmem:[%s9811_s1 + $0x700] sm:$0xff]  ;;  %v6013_v40 = vcombine.high %v135_v34, %v139_v35  ;;  %2857 = vmatprep.subr.bf16.mxu0 %v6133_v33  ;;  %v6012_v46 = vcombine.low %v135_v34, %v139_v35  ;;  %v68_v33 = vld [vmem:[%s9811_s1 + $0xe8] sm:$0xff] }
  0x35   :  { %v267_v37 = vld [vmem:[%s9811_s1 + $0x720] sm:$0xff]  ;;  %2858 = vmatpush1.bf16.msra.mxu0 %v6132_v39  ;;  %v5943_v38 = vcombine.high %v64_v32, %v68_v33 }
  0x36   :  { %v6141_v41 = vcombine.high %v263_v36, %v267_v37  ;;  %v143_v42 = vld [vmem:[%s9811_s1 + $0x340] sm:$0xff]  ;;  %2818 = vmatprep.subr.bf16.mxu1 %v6013_v40  ;;  %v6140_v47 = vcombine.low %v263_v36, %v267_v37  ;;  %v5934_v36 = vcombine.low %v56_v24, %v60_v25  ;;  %v72_v40 = vld [vmem:[%s9811_s1 + $0x108] sm:$0xff] }
  0x37   :  { %v147_v43 = vld [vmem:[%s9811_s1 + $0x360] sm:$0xff]  ;;  %2819 = vmatpush1.bf16.msra.mxu1 %v6012_v46 }
  0x38   :  { %v271_v44 = vld [vmem:[%s9811_s1 + $0x740] sm:$0xff]  ;;  %v6021_v48 = vcombine.high %v143_v42, %v147_v43  ;;  %2859 = vmatprep.subr.bf16.mxu0 %v6141_v41  ;;  %v6020_v56 = vcombine.low %v143_v42, %v147_v43  ;;  %v76_v41 = vld [vmem:[%s9811_s1 + $0x128] sm:$0xff] }
  0x39   :  { %v275_v45 = vld [vmem:[%s9811_s1 + $0x760] sm:$0xff]  ;;  %2860 = vmatpush1.bf16.msra.mxu0 %v6140_v47  ;;  %v5951_v46 = vcombine.high %v72_v40, %v76_v41 }
  0x3a   :  { %v6149_v49 = vcombine.high %v271_v44, %v275_v45  ;;  %v151_v50 = vld [vmem:[%s9811_s1 + $0x380] sm:$0xff]  ;;  %2820 = vmatprep.subr.bf16.mxu1 %v6021_v48  ;;  %v6148_v57 = vcombine.low %v271_v44, %v275_v45  ;;  %v5942_v44 = vcombine.low %v64_v32, %v68_v33  ;;  %v80_v48 = vld [vmem:[%s9811_s1 + $0x148] sm:$0xff] }
  0x3b   :  { %v155_v51 = vld [vmem:[%s9811_s1 + $0x3a0] sm:$0xff]  ;;  %2821 = vmatpush1.bf16.msra.mxu1 %v6020_v56 }
  0x3c   :  { %v279_v52 = vld [vmem:[%s9811_s1 + $0x780] sm:$0xff]  ;;  %v6029_v59 = vcombine.high %v151_v50, %v155_v51  ;;  %2861 = vmatprep.subr.bf16.mxu0 %v6149_v49  ;;  %v6028_v2 = vcombine.low %v151_v50, %v155_v51  ;;  %v84_v49 = vld [vmem:[%s9811_s1 + $0x168] sm:$0xff] }
  0x3d   :  { %v283_v55 = vld [vmem:[%s9811_s1 + $0x7a0] sm:$0xff]  ;;  %2862 = vmatpush1.bf16.msra.mxu0 %v6148_v57  ;;  %v5959_v56 = vcombine.high %v80_v48, %v84_v49 }
  0x3e   :  { %v6157_v60 = vcombine.high %v279_v52, %v283_v55  ;;  %v159_v62 = vld [vmem:[%s9811_s1 + $0x3c0] sm:$0xff]  ;;  %2822 = vmatprep.subr.bf16.mxu1 %v6029_v59  ;;  %v6156_v3 = vcombine.low %v279_v52, %v283_v55  ;;  %v5950_v52 = vcombine.low %v72_v40, %v76_v41  ;;  %v88_v59 = vld [vmem:[%s9811_s1 + $0x188] sm:$0xff] }
  0x3f   :  { %v163_v63 = vld [vmem:[%s9811_s1 + $0x3e0] sm:$0xff]  ;;  %2823 = vmatpush1.bf16.msra.mxu1 %v6028_v2 }
  0x40   :  { %v287_v0 = vld [vmem:[%s9811_s1 + $0x7c0] sm:$0xff]  ;;  %v6037_v4 = vcombine.high %v159_v62, %v163_v63  ;;  %2863 = vmatprep.subr.bf16.mxu0 %v6157_v60  ;;  %v6036_v10 = vcombine.low %v159_v62, %v163_v63  ;;  %v92_v60 = vld [vmem:[%s9811_s1 + $0x1a8] sm:$0xff] }
  0x41   :  { %v291_v1 = vld [vmem:[%s9811_s1 + $0x7e0] sm:$0xff]  ;;  %2864 = vmatpush1.bf16.msra.mxu0 %v6156_v3  ;;  %v5967_v2 = vcombine.high %v88_v59, %v92_v60 }
  0x42   :  { %v6165_v5 = vcombine.high %v287_v0, %v291_v1  ;;  %v295_v8 = vld [vmem:[%s9811_s1 + $0x800] sm:$0xff]  ;;  %2824 = vmatprep.subr.bf16.mxu1 %v6037_v4  ;;  %v6164_v11 = vcombine.low %v287_v0, %v291_v1  ;;  %v5958_v0 = vcombine.low %v80_v48, %v84_v49  ;;  %v96_v4 = vld [vmem:[%s9811_s1 + $0x1c8] sm:$0xff] }
  0x43   :  { %v299_v9 = vld [vmem:[%s9811_s1 + $0x820] sm:$0xff]  ;;  %2825 = vmatpush1.bf16.msra.mxu1 %v6036_v10 }
  0x44   :  { %2865 = vmatprep.subr.bf16.mxu0 %v6165_v5  ;;  %v6173_v13 = vcombine.high %v295_v8, %v299_v9  ;;  %v303_v17 = vld [vmem:[%s9811_s1 + $0x840] sm:$0xff]  ;;  %v6172_v53 = vcombine.low %v295_v8, %v299_v9  ;;  %2958 = vmatprep.subr.bf16.mxu1 %v5919_v12  ;;  %v100_v5 = vld [vmem:[%s9811_s1 + $0x1e8] sm:$0xff]  ;;  %v5966_v8 = vcombine.low %v88_v59, %v92_v60 }
  0x45   :  { %v307_v18 = vld [vmem:[%s9811_s1 + $0x860] sm:$0xff]  ;;  %2866 = vmatpush1.bf16.msra.mxu0 %v6164_v11  ;;  %v5975_v10 = vcombine.high %v96_v4, %v100_v5  ;;  %v104_v12 = vld [vmem:[%s9811_s1 + $0x208] sm:$0xff] }
  0x46   :  { %2876 = vmatprep.subr.bf16.mxu0 %v6173_v13  ;;  %v6181_v23 = vcombine.high %v303_v17, %v307_v18  ;;  %2827 = vmatmul.mubr.bf16.vlgmr.msra.gmra.mrb[0].mxu1 %v7550_v16  ;;  %v311_v54 = vld [vmem:[%s9811_s1 + $0x880] sm:$0xff]  ;;  %v6180_v29 = vcombine.low %v303_v17, %v307_v18  ;;  %v108_v13 = vld [vmem:[%s9811_s1 + $0x228] sm:$0xff]  ;;  %v5974_v17 = vcombine.low %v96_v4, %v100_v5 }
  0x47   :  { %v315_v27 = vld [vmem:[%s9811_s1 + $0x8a0] sm:$0xff]  ;;  %2959 = vmatpush1.bf16.msra.mxu1 %v5918_v20  ;;  %2990 = vmatprep.mubr.bf16.mxu1 %v7420_v58  ;;  %v5983_v20 = vcombine.high %v104_v12, %v108_v13 }
  0x48   :  { %2868 = vmatmul.mubr.bf16.vlgmr.msra.gmra.mrb[0].mxu0 %v7565_v21  ;;  %2960 = vmatprep.subr.bf16.mxu1 %v5927_v22  ;;  %v6189_v31 = vcombine.high %v311_v54, %v315_v27  ;;  %v319_v34 = vld [vmem:[%s9811_s1 + $0x8c0] sm:$0xff]  ;;  %v6188_v37 = vcombine.low %v311_v54, %v315_v27  ;;  %v112_v22 = vld [vmem:[%s9811_s1 + $0x248] sm:$0xff]  ;;  %v5982_v54 = vcombine.low %v104_v12, %v108_v13 }
  0x49   :  { %2877 = vmatpush1.bf16.msra.mxu0 %v6172_v53  ;;  %2908 = vmatprep.mubr.bf16.mxu0 %v7575_v26  ;;  %v323_v35 = vld [vmem:[%s9811_s1 + $0x8e0] sm:$0xff] }
  0x4a   :  { %2878 = vmatprep.subr.bf16.mxu0 %v6181_v23  ;;  %v6197_v39 = vcombine.high %v319_v34, %v323_v35  ;;  %v327_v42 = vld [vmem:[%s9811_s1 + $0x900] sm:$0xff]  ;;  %v6196_v45 = vcombine.low %v319_v34, %v323_v35  ;;  %v116_v23 = vld [vmem:[%s9811_s1 + $0x268] sm:$0xff] }
  0x4b   :  { %2961 = vmatpush1.bf16.msra.mxu1 %v5926_v28  ;;  %v331_v43 = vld [vmem:[%s9811_s1 + $0x920] sm:$0xff]  ;;  %v5991_v28 = vcombine.high %v112_v22, %v116_v23  ;;  %v5990_v34 = vcombine.low %v112_v22, %v116_v23 }
  0x4c   :  { %2962 = vmatprep.subr.bf16.mxu1 %v5935_v30  ;;  %v6205_v47 = vcombine.high %v327_v42, %v331_v43  ;;  %v335_v50 = vld [vmem:[%s9811_s1 + $0x940] sm:$0xff]  ;;  %v6204_v55 = vcombine.low %v327_v42, %v331_v43  ;;  %v120_v30 = vld [vmem:[%s9811_s1 + $0x288] sm:$0xff] }
  0x4d   :  { %2879 = vmatpush1.bf16.msra.mxu0 %v6180_v29  ;;  %v339_v51 = vld [vmem:[%s9811_s1 + $0x960] sm:$0xff] }
  0x4e   :  { %2880 = vmatprep.subr.bf16.mxu0 %v6189_v31  ;;  %v6213_v57 = vcombine.high %v335_v50, %v339_v51  ;;  %v343_v62 = vld [vmem:[%s9811_s1 + $0x980] sm:$0xff]  ;;  %v6212_v1 = vcombine.low %v335_v50, %v339_v51  ;;  %v124_v31 = vld [vmem:[%s9811_s1 + $0x2a8] sm:$0xff] }
  0x4f   :  { %2963 = vmatpush1.bf16.msra.mxu1 %v5934_v36  ;;  %v347_v63 = vld [vmem:[%s9811_s1 + $0x9a0] sm:$0xff]  ;;  %v5999_v36 = vcombine.high %v120_v30, %v124_v31  ;;  %v5998_v42 = vcombine.low %v120_v30, %v124_v31 }
  0x50   :  { %2964 = vmatprep.subr.bf16.mxu1 %v5943_v38  ;;  %v6221_v3 = vcombine.high %v343_v62, %v347_v63  ;;  %v351_v6 = vld [vmem:[%s9811_s1 + $0x9c0] sm:$0xff]  ;;  %v6220_v9 = vcombine.low %v343_v62, %v347_v63  ;;  %v128_v38 = vld [vmem:[%s9811_s1 + $0x2c8] sm:$0xff] }
  0x51   :  { %2881 = vmatpush1.bf16.msra.mxu0 %v6188_v37  ;;  %v355_v7 = vld [vmem:[%s9811_s1 + $0x9e0] sm:$0xff] }
  0x52   :  { %2882 = vmatprep.subr.bf16.mxu0 %v6197_v39  ;;  %v6229_v11 = vcombine.high %v351_v6, %v355_v7  ;;  %v359_v14 = vld [vmem:[%s9811_s1 + $0xa00] sm:$0xff]  ;;  %v6228_v18 = vcombine.low %v351_v6, %v355_v7  ;;  %v132_v39 = vld [vmem:[%s9811_s1 + $0x2e8] sm:$0xff] }
  0x53   :  { %2965 = vmatpush1.bf16.msra.mxu1 %v5942_v44  ;;  %v363_v15 = vld [vmem:[%s9811_s1 + $0xa20] sm:$0xff]  ;;  %v6007_v44 = vcombine.high %v128_v38, %v132_v39  ;;  %v6006_v50 = vcombine.low %v128_v38, %v132_v39  ;;  %v188_v38 = vld [vmem:[%s9811_s1 + $0x4a8] sm:$0xff] }
  0x54   :  { %2966 = vmatprep.subr.bf16.mxu1 %v5951_v46  ;;  %v6237_v53 = vcombine.high %v359_v14, %v363_v15  ;;  %v367_v24 = vld [vmem:[%s9811_s1 + $0xa40] sm:$0xff]  ;;  %v6236_v27 = vcombine.low %v359_v14, %v363_v15  ;;  %v136_v46 = vld [vmem:[%s9811_s1 + $0x308] sm:$0xff] }
  0x55   :  { %2883 = vmatpush1.bf16.msra.mxu0 %v6196_v45  ;;  %v371_v25 = vld [vmem:[%s9811_s1 + $0xa60] sm:$0xff] }
  0x56   :  { %2884 = vmatprep.subr.bf16.mxu0 %v6205_v47  ;;  %v6245_v29 = vcombine.high %v367_v24, %v371_v25  ;;  %v375_v32 = vld [vmem:[%s9811_s1 + $0xa80] sm:$0xff]  ;;  %v6244_v35 = vcombine.low %v367_v24, %v371_v25  ;;  %v140_v47 = vld [vmem:[%s9811_s1 + $0x328] sm:$0xff] }
  0x57   :  { %2967 = vmatpush1.bf16.msra.mxu1 %v5950_v52  ;;  %v379_v33 = vld [vmem:[%s9811_s1 + $0xaa0] sm:$0xff]  ;;  %v6015_v52 = vcombine.high %v136_v46, %v140_v47  ;;  %v6014_v62 = vcombine.low %v136_v46, %v140_v47  ;;  %v7267_v46 = vmov 0  }
  0x58   :  { %2968 = vmatprep.subr.bf16.mxu1 %v5959_v56  ;;  %v6253_v37 = vcombine.high %v375_v32, %v379_v33  ;;  %v383_v40 = vld [vmem:[%s9811_s1 + $0xac0] sm:$0xff]  ;;  %v6252_v43 = vcombine.low %v375_v32, %v379_v33  ;;  %v144_v56 = vld [vmem:[%s9811_s1 + $0x348] sm:$0xff]  ;;  %v7769_v33 = vcombine.low %v7561_v19, %v7561_v19 }
  0x59   :  { %2885 = vmatpush1.bf16.msra.mxu0 %v6204_v55  ;;  %v387_v41 = vld [vmem:[%s9811_s1 + $0xae0] sm:$0xff] }
  0x5a   :  { %2886 = vmatprep.subr.bf16.mxu0 %v6213_v57  ;;  %v6261_v45 = vcombine.high %v383_v40, %v387_v41  ;;  %v391_v48 = vld [vmem:[%s9811_s1 + $0xb00] sm:$0xff]  ;;  %v6260_v51 = vcombine.low %v383_v40, %v387_v41  ;;  %v148_v57 = vld [vmem:[%s9811_s1 + $0x368] sm:$0xff] }
  0x5b   :  { %2969 = vmatpush1.bf16.msra.mxu1 %v5958_v0  ;;  %v395_v49 = vld [vmem:[%s9811_s1 + $0xb20] sm:$0xff]  ;;  %v6023_v0 = vcombine.high %v144_v56, %v148_v57  ;;  %v6022_v6 = vcombine.low %v144_v56, %v148_v57  ;;  %v204_v56 = vld [vmem:[%s9811_s1 + $0x528] sm:$0xff] }
  0x5c   :  { %2970 = vmatprep.subr.bf16.mxu1 %v5967_v2  ;;  %v6269_v55 = vcombine.high %v391_v48, %v395_v49  ;;  %v399_v59 = vld [vmem:[%s9811_s1 + $0xb40] sm:$0xff]  ;;  %v6268_v63 = vcombine.low %v391_v48, %v395_v49  ;;  %v152_v2 = vld [vmem:[%s9811_s1 + $0x388] sm:$0xff] }
  0x5d   :  { %2887 = vmatpush1.bf16.msra.mxu0 %v6212_v1  ;;  %v403_v60 = vld [vmem:[%s9811_s1 + $0xb60] sm:$0xff] }
  0x5e   :  { %2888 = vmatprep.subr.bf16.mxu0 %v6221_v3  ;;  %v6277_v1 = vcombine.high %v399_v59, %v403_v60  ;;  %v156_v3 = vld [vmem:[%s9811_s1 + $0x3a8] sm:$0xff]  ;;  %v407_v4 = vld [vmem:[%s9811_s1 + $0xb80] sm:$0xff]  ;;  %v6276_v7 = vcombine.low %v399_v59, %v403_v60 }
  0x5f   :  { %2971 = vmatpush1.bf16.msra.mxu1 %v5966_v8  ;;  %v411_v5 = vld [vmem:[%s9811_s1 + $0xba0] sm:$0xff]  ;;  %v6031_v8 = vcombine.high %v152_v2, %v156_v3  ;;  %v6030_v14 = vcombine.low %v152_v2, %v156_v3  ;;  %v212_v2 = vld [vmem:[%s9811_s1 + $0x568] sm:$0xff] }
  0x60   :  { %2972 = vmatprep.subr.bf16.mxu1 %v5975_v10  ;;  %v160_v10 = vld [vmem:[%s9811_s1 + $0x3c8] sm:$0xff]  ;;  %v415_v12 = vld [vmem:[%s9811_s1 + $0xbc0] sm:$0xff]  ;;  %v6284_v15 = vcombine.low %v407_v4, %v411_v5 }
  0x61   :  { %2889 = vmatpush1.bf16.msra.mxu0 %v6220_v9  ;;  %v6285_v9 = vcombine.high %v407_v4, %v411_v5  ;;  %v419_v13 = vld [vmem:[%s9811_s1 + $0xbe0] sm:$0xff] }
  0x62   :  { %2890 = vmatprep.subr.bf16.mxu0 %v6229_v11  ;;  %v164_v11 = vld [vmem:[%s9811_s1 + $0x3e8] sm:$0xff]  ;;  %v423_v22 = vld [vmem:[%s9811_s1 + $0xc00] sm:$0xff]  ;;  %v6292_v25 = vcombine.low %v415_v12, %v419_v13 }
  0x63   :  { %2973 = vmatpush1.bf16.msra.mxu1 %v5974_v17  ;;  %v6039_v17 = vcombine.high %v160_v10, %v164_v11  ;;  %v427_v23 = vld [vmem:[%s9811_s1 + $0xc20] sm:$0xff]  ;;  %v6038_v24 = vcombine.low %v160_v10, %v164_v11  ;;  %v220_v10 = vld [vmem:[%s9811_s1 + $0x5a8] sm:$0xff] }
  0x64   :  { %2974 = vmatprep.subr.bf16.mxu1 %v5983_v20  ;;  %v168_v20 = vld [vmem:[%s9811_s1 + $0x408] sm:$0xff]  ;;  %v431_v30 = vld [vmem:[%s9811_s1 + $0xc40] sm:$0xff] }
  0x65   :  { %2891 = vmatpush1.bf16.msra.mxu0 %v6228_v18  ;;  %v6293_v18 = vcombine.high %v415_v12, %v419_v13  ;;  %v435_v31 = vld [vmem:[%s9811_s1 + $0xc60] sm:$0xff] }
  0x66   :  { %2892 = vmatprep.subr.bf16.mxu0 %v6237_v53  ;;  %v172_v53 = vld [vmem:[%s9811_s1 + $0x428] sm:$0xff]  ;;  %v439_v19 = vld [vmem:[%s9811_s1 + $0xc80] sm:$0xff]  ;;  %v6308_v41 = vcombine.low %v431_v30, %v435_v31 }
  0x67   :  { %2975 = vmatpush1.bf16.msra.mxu1 %v5982_v54  ;;  %v6047_v54 = vcombine.high %v168_v20, %v172_v53  ;;  %v6046_v32 = vcombine.low %v168_v20, %v172_v53  ;;  %v443_v39 = vld [vmem:[%s9811_s1 + $0xca0] sm:$0xff]  ;;  %v228_v20 = vld [vmem:[%s9811_s1 + $0x5e8] sm:$0xff] }
  0x68   :  { %2976 = vmatprep.subr.bf16.mxu1 %v5991_v28  ;;  %v176_v28 = vld [vmem:[%s9811_s1 + $0x448] sm:$0xff]  ;;  %v447_v47 = vld [vmem:[%s9811_s1 + $0xcc0] sm:$0xff] }
  0x69   :  { %2893 = vmatpush1.bf16.msra.mxu0 %v6236_v27  ;;  %v6301_v27 = vcombine.high %v423_v22, %v427_v23  ;;  %v451_v48 = vld [vmem:[%s9811_s1 + $0xce0] sm:$0xff] }
  0x6a   :  { %2894 = vmatprep.subr.bf16.mxu0 %v6245_v29  ;;  %v180_v29 = vld [vmem:[%s9811_s1 + $0x468] sm:$0xff]  ;;  %v455_v57 = vld [vmem:[%s9811_s1 + $0xd00] sm:$0xff] }
  0x6b   :  { %2977 = vmatpush1.bf16.msra.mxu1 %v5990_v34  ;;  %v6300_v34 = vcombine.low %v423_v22, %v427_v23  ;;  %v6054_v40 = vcombine.low %v176_v28, %v180_v29  ;;  %v459_v59 = vld [vmem:[%s9811_s1 + $0xd20] sm:$0xff] }
  0x6c   :  { %2978 = vmatprep.subr.bf16.mxu1 %v5999_v36  ;;  %v6309_v36 = vcombine.high %v431_v30, %v435_v31  ;;  %v463_v3 = vld [vmem:[%s9811_s1 + $0xd40] sm:$0xff]  ;;  %v45_v30 = vld [vmem:[%s9811_s1 + $0x30] sm:$0xff] }
  0x6d   :  { %2895 = vmatpush1.bf16.msra.mxu0 %v6244_v35  ;;  %v6055_v35 = vcombine.high %v176_v28, %v180_v29  ;;  %v467_v4 = vld [vmem:[%s9811_s1 + $0xd60] sm:$0xff]  ;;  %v236_v28 = vld [vmem:[%s9811_s1 + $0x628] sm:$0xff]  ;;  %v41_v29 = vld [vmem:[%s9811_s1 + $0x10] sm:$0xff] }
  0x6e   :  { %2896 = vmatprep.subr.bf16.mxu0 %v6253_v37  ;;  %v184_v37 = vld [vmem:[%s9811_s1 + $0x488] sm:$0xff]  ;;  %v471_v11 = vld [vmem:[%s9811_s1 + $0xd80] sm:$0xff] }
  0x6f   :  { %2979 = vmatpush1.bf16.msra.mxu1 %v5998_v42  ;;  %v6063_v42 = vcombine.high %v184_v37, %v188_v38  ;;  %v6062_v49 = vcombine.low %v184_v37, %v188_v38  ;;  %v475_v12 = vld [vmem:[%s9811_s1 + $0xda0] sm:$0xff]  ;;  %v244_v37 = vld [vmem:[%s9811_s1 + $0x668] sm:$0xff]  ;;  %v49_v38 = vld [vmem:[%s9811_s1 + $0x50] sm:$0xff] }
  0x70   :  { %2980 = vmatprep.subr.bf16.mxu1 %v6007_v44  ;;  %v192_v44 = vld [vmem:[%s9811_s1 + $0x4c8] sm:$0xff]  ;;  %v479_v53 = vld [vmem:[%s9811_s1 + $0xdc0] sm:$0xff] }
  0x71   :  { %2897 = vmatpush1.bf16.msra.mxu0 %v6252_v43  ;;  %v6317_v43 = vcombine.high %v439_v19, %v443_v39  ;;  %v483_v22 = vld [vmem:[%s9811_s1 + $0xde0] sm:$0xff] }
  0x72   :  { %2898 = vmatprep.subr.bf16.mxu0 %v6261_v45  ;;  %v196_v45 = vld [vmem:[%s9811_s1 + $0x4e8] sm:$0xff] }
  0x73   :  { %2981 = vmatpush1.bf16.msra.mxu1 %v6006_v50  ;;  %v6316_v50 = vcombine.low %v439_v19, %v443_v39  ;;  %v6070_v60 = vcombine.low %v192_v44, %v196_v45  ;;  %v53_v19 = vld [vmem:[%s9811_s1 + $0x70] sm:$0xff]  ;;  %v7874_v39 = vld [vmem:[%s9812_s0 + $0x18] ss:$0 sps:$4 sm:$0xff]  }
  0x74   :  { %2982 = vmatprep.subr.bf16.mxu1 %v6015_v52  ;;  %v6325_v52 = vcombine.high %v447_v47, %v451_v48 }
  0x75   :  { %2899 = vmatpush1.bf16.msra.mxu0 %v6260_v51  ;;  %v6071_v51 = vcombine.high %v192_v44, %v196_v45  ;;  %v248_v44 = vld [vmem:[%s9811_s1 + $0x688] sm:$0xff] }
  0x76   :  { %2900 = vmatprep.subr.bf16.mxu0 %v6269_v55  ;;  %v200_v55 = vld [vmem:[%s9811_s1 + $0x508] sm:$0xff] }
  0x77   :  { %2983 = vmatpush1.bf16.msra.mxu1 %v6014_v62  ;;  %v6324_v62 = vcombine.low %v447_v47, %v451_v48  ;;  %v6078_v5 = vcombine.low %v200_v55, %v204_v56  ;;  %v252_v45 = vld [vmem:[%s9811_s1 + $0x6a8] sm:$0xff]  ;;  %v57_v47 = vld [vmem:[%s9811_s1 + $0x90] sm:$0xff] }
  0x78   :  { %2984 = vmatprep.subr.bf16.mxu1 %v6023_v0  ;;  %v6333_v0 = vcombine.high %v455_v57, %v459_v59  ;;  %v61_v48 = vld [vmem:[%s9811_s1 + $0xb0] sm:$0xff] }
  0x79   :  { %2901 = vmatpush1.bf16.msra.mxu0 %v6268_v63  ;;  %v6079_v63 = vcombine.high %v200_v55, %v204_v56  ;;  %v256_v55 = vld [vmem:[%s9811_s1 + $0x6c8] sm:$0xff] }
  0x7a   :  { %2902 = vmatprep.subr.bf16.mxu0 %v6277_v1  ;;  %v208_v1 = vld [vmem:[%s9811_s1 + $0x548] sm:$0xff] }
  0x7b   :  { %2985 = vmatpush1.bf16.msra.mxu1 %v6022_v6  ;;  %v6332_v6 = vcombine.low %v455_v57, %v459_v59  ;;  %v6086_v13 = vcombine.low %v208_v1, %v212_v2  ;;  %v260_v56 = vld [vmem:[%s9811_s1 + $0x6e8] sm:$0xff]  ;;  %v65_v57 = vld [vmem:[%s9811_s1 + $0xd0] sm:$0xff] }
  0x7c   :  { %2986 = vmatprep.subr.bf16.mxu1 %v6031_v8  ;;  %v6341_v8 = vcombine.high %v463_v3, %v467_v4  ;;  %v69_v59 = vld [vmem:[%s9811_s1 + $0xf0] sm:$0xff] }
  0x7d   :  { %2903 = vmatpush1.bf16.msra.mxu0 %v6276_v7  ;;  %v6087_v7 = vcombine.high %v208_v1, %v212_v2  ;;  %v264_v1 = vld [vmem:[%s9811_s1 + $0x708] sm:$0xff] }
  0x7e   :  { %2904 = vmatprep.subr.bf16.mxu0 %v6285_v9  ;;  %v216_v9 = vld [vmem:[%s9811_s1 + $0x588] sm:$0xff] }
  0x7f   :  { %2987 = vmatpush1.bf16.msra.mxu1 %v6030_v14  ;;  %v6340_v14 = vcombine.low %v463_v3, %v467_v4  ;;  %v6094_v23 = vcombine.low %v216_v9, %v220_v10  ;;  %v268_v2 = vld [vmem:[%s9811_s1 + $0x728] sm:$0xff]  ;;  %v73_v3 = vld [vmem:[%s9811_s1 + $0x110] sm:$0xff] }
  0x80   :  { %2988 = vmatprep.subr.bf16.mxu1 %v6039_v17  ;;  %v6349_v17 = vcombine.high %v471_v11, %v475_v12  ;;  %v77_v4 = vld [vmem:[%s9811_s1 + $0x130] sm:$0xff] }
  0x81   :  { %2905 = vmatpush1.bf16.msra.mxu0 %v6284_v15  ;;  %v6095_v15 = vcombine.high %v216_v9, %v220_v10  ;;  %v272_v9 = vld [vmem:[%s9811_s1 + $0x748] sm:$0xff] }
  0x82   :  { %2906 = vmatprep.subr.bf16.mxu0 %v6293_v18  ;;  %v224_v18 = vld [vmem:[%s9811_s1 + $0x5c8] sm:$0xff] }
  0x83   :  { %2989 = vmatpush1.bf16.msra.mxu1 %v6038_v24  ;;  %v6348_v24 = vcombine.low %v471_v11, %v475_v12  ;;  %v6102_v31 = vcombine.low %v224_v18, %v228_v20  ;;  %v276_v10 = vld [vmem:[%s9811_s1 + $0x768] sm:$0xff]  ;;  %v81_v11 = vld [vmem:[%s9811_s1 + $0x150] sm:$0xff] }
  0x84   :  { %2999 = vmatprep.subr.bf16.mxu1 %v6047_v54  ;;  %v6357_v54 = vcombine.high %v479_v53, %v483_v22  ;;  %v85_v12 = vld [vmem:[%s9811_s1 + $0x170] sm:$0xff] }
  0x85   :  { %2907 = vmatpush1.bf16.msra.mxu0 %v6292_v25  ;;  %v6103_v25 = vcombine.high %v224_v18, %v228_v20  ;;  %v280_v18 = vld [vmem:[%s9811_s1 + $0x788] sm:$0xff] }
  0x86   :  { %2917 = vmatprep.subr.bf16.mxu0 %v6301_v27  ;;  %2991 = vmatmul.mubr.bf16.vlgmr.msra.gmra.mrb[4].mxu1 %v7550_v16  ;;  %v232_v27 = vld [vmem:[%s9811_s1 + $0x608] sm:$0xff] }
  0x87   :  { %3000 = vmatpush1.bf16.msra.mxu1 %v6046_v32  ;;  %3031 = vmatprep.mubr.bf16.mxu1 %v7430_v61  ;;  %v6356_v32 = vcombine.low %v479_v53, %v483_v22  ;;  %v284_v20 = vld [vmem:[%s9811_s1 + $0x7a8] sm:$0xff]  ;;  %v89_v53 = vld [vmem:[%s9811_s1 + $0x190] sm:$0xff] }
  0x88   :  { %2909 = vmatmul.mubr.bf16.vlgmr.msra.gmra.mrb[0].mxu0 %v7769_v33  ;;  %3001 = vmatprep.subr.bf16.mxu1 %v6055_v35  ;;  %v5921_v35 = vcombine.high %v41_v29, %v45_v30  ;;  %v93_v22 = vld [vmem:[%s9811_s1 + $0x1b0] sm:$0xff] }
  0x89   :  { %2918 = vmatpush1.bf16.msra.mxu0 %v6300_v34  ;;  %2949 = vmatprep.mubr.bf16.mxu0 %v7267_v46  ;;  %v6111_v34 = vcombine.high %v232_v27, %v236_v28 }
  0x8a   :  { %2919 = vmatprep.subr.bf16.mxu0 %v6309_v36  ;;  %v240_v36 = vld [vmem:[%s9811_s1 + $0x648] sm:$0xff] }
  0x8b   :  { %3002 = vmatpush1.bf16.msra.mxu1 %v6054_v40  ;;  %v6110_v40 = vcombine.low %v232_v27, %v236_v28  ;;  %v288_v27 = vld [vmem:[%s9811_s1 + $0x7c8] sm:$0xff] }
  0x8c   :  { %3003 = vmatprep.subr.bf16.mxu1 %v6063_v42  ;;  %v6119_v42 = vcombine.high %v240_v36, %v244_v37  ;;  %v292_v28 = vld [vmem:[%s9811_s1 + $0x7e8] sm:$0xff] }
  0x8d   :  { %2920 = vmatpush1.bf16.msra.mxu0 %v6308_v41  ;;  %v5920_v41 = vcombine.low %v41_v29, %v45_v30  ;;  %v97_v29 = vld [vmem:[%s9811_s1 + $0x1d0] sm:$0xff] }
  0x8e   :  { %2921 = vmatprep.subr.bf16.mxu0 %v6317_v43  ;;  %v5929_v43 = vcombine.high %v49_v38, %v53_v19  ;;  %v101_v30 = vld [vmem:[%s9811_s1 + $0x1f0] sm:$0xff] }
  0x8f   :  { %3004 = vmatpush1.bf16.msra.mxu1 %v6062_v49  ;;  %v6118_v49 = vcombine.low %v240_v36, %v244_v37  ;;  %v296_v36 = vld [vmem:[%s9811_s1 + $0x808] sm:$0xff] }
  0x90   :  { %3005 = vmatprep.subr.bf16.mxu1 %v6071_v51  ;;  %v6127_v51 = vcombine.high %v248_v44, %v252_v45  ;;  %v300_v37 = vld [vmem:[%s9811_s1 + $0x828] sm:$0xff] }
  0x91   :  { %2922 = vmatpush1.bf16.msra.mxu0 %v6316_v50  ;;  %v5928_v50 = vcombine.low %v49_v38, %v53_v19  ;;  %v105_v38 = vld [vmem:[%s9811_s1 + $0x210] sm:$0xff] }
  0x92   :  { %2923 = vmatprep.subr.bf16.mxu0 %v6325_v52  ;;  %v5937_v52 = vcombine.high %v57_v47, %v61_v48  ;;  %v109_v19 = vld [vmem:[%s9811_s1 + $0x230] sm:$0xff] }
  0x93   :  { %3006 = vmatpush1.bf16.msra.mxu1 %v6070_v60  ;;  %v6126_v60 = vcombine.low %v248_v44, %v252_v45  ;;  %v304_v44 = vld [vmem:[%s9811_s1 + $0x848] sm:$0xff] }
  0x94   :  { %3007 = vmatprep.subr.bf16.mxu1 %v6079_v63  ;;  %v6135_v63 = vcombine.high %v256_v55, %v260_v56  ;;  %v308_v45 = vld [vmem:[%s9811_s1 + $0x868] sm:$0xff] }
  0x95   :  { %2924 = vmatpush1.bf16.msra.mxu0 %v6324_v62  ;;  %v5936_v62 = vcombine.low %v57_v47, %v61_v48  ;;  %v113_v47 = vld [vmem:[%s9811_s1 + $0x250] sm:$0xff] }
  0x96   :  { %2925 = vmatprep.subr.bf16.mxu0 %v6333_v0  ;;  %v5945_v0 = vcombine.high %v65_v57, %v69_v59  ;;  %v117_v48 = vld [vmem:[%s9811_s1 + $0x270] sm:$0xff] }
  0x97   :  { %3008 = vmatpush1.bf16.msra.mxu1 %v6078_v5  ;;  %v6134_v5 = vcombine.low %v256_v55, %v260_v56  ;;  %v312_v55 = vld [vmem:[%s9811_s1 + $0x888] sm:$0xff] }
  0x98   :  { %3009 = vmatprep.subr.bf16.mxu1 %v6087_v7  ;;  %v6143_v7 = vcombine.high %v264_v1, %v268_v2  ;;  %v316_v56 = vld [vmem:[%s9811_s1 + $0x8a8] sm:$0xff] }
  0x99   :  { %2926 = vmatpush1.bf16.msra.mxu0 %v6332_v6  ;;  %v5944_v6 = vcombine.low %v65_v57, %v69_v59  ;;  %v121_v57 = vld [vmem:[%s9811_s1 + $0x290] sm:$0xff] }
  0x9a   :  { %2927 = vmatprep.subr.bf16.mxu0 %v6341_v8  ;;  %v5953_v8 = vcombine.high %v73_v3, %v77_v4  ;;  %v125_v59 = vld [vmem:[%s9811_s1 + $0x2b0] sm:$0xff] }
  0x9b   :  { %3010 = vmatpush1.bf16.msra.mxu1 %v6086_v13  ;;  %v6142_v13 = vcombine.low %v264_v1, %v268_v2  ;;  %v320_v1 = vld [vmem:[%s9811_s1 + $0x8c8] sm:$0xff] }
  0x9c   :  { %3011 = vmatprep.subr.bf16.mxu1 %v6095_v15  ;;  %v6151_v15 = vcombine.high %v272_v9, %v276_v10  ;;  %v324_v2 = vld [vmem:[%s9811_s1 + $0x8e8] sm:$0xff] }
  0x9d   :  { %2928 = vmatpush1.bf16.msra.mxu0 %v6340_v14  ;;  %v5952_v14 = vcombine.low %v73_v3, %v77_v4  ;;  %v129_v3 = vld [vmem:[%s9811_s1 + $0x2d0] sm:$0xff] }
  0x9e   :  { %2929 = vmatprep.subr.bf16.mxu0 %v6349_v17  ;;  %v5961_v17 = vcombine.high %v81_v11, %v85_v12  ;;  %v133_v4 = vld [vmem:[%s9811_s1 + $0x2f0] sm:$0xff] }
  0x9f   :  { %3012 = vmatpush1.bf16.msra.mxu1 %v6094_v23  ;;  %v6150_v23 = vcombine.low %v272_v9, %v276_v10  ;;  %v328_v9 = vld [vmem:[%s9811_s1 + $0x908] sm:$0xff] }
  0xa0   :  { %3013 = vmatprep.subr.bf16.mxu1 %v6103_v25  ;;  %v6159_v25 = vcombine.high %v280_v18, %v284_v20  ;;  %v332_v10 = vld [vmem:[%s9811_s1 + $0x928] sm:$0xff] }
  0xa1   :  { %2930 = vmatpush1.bf16.msra.mxu0 %v6348_v24  ;;  %v5960_v24 = vcombine.low %v81_v11, %v85_v12  ;;  %v137_v11 = vld [vmem:[%s9811_s1 + $0x310] sm:$0xff] }
  0xa2   :  { %2931 = vmatprep.subr.bf16.mxu0 %v6357_v54  ;;  %v5969_v54 = vcombine.high %v89_v53, %v93_v22  ;;  %v141_v12 = vld [vmem:[%s9811_s1 + $0x330] sm:$0xff] }
  0xa3   :  { %3014 = vmatpush1.bf16.msra.mxu1 %v6102_v31  ;;  %v6158_v31 = vcombine.low %v280_v18, %v284_v20  ;;  %v336_v18 = vld [vmem:[%s9811_s1 + $0x948] sm:$0xff] }
  0xa4   :  { %3015 = vmatprep.subr.bf16.mxu1 %v6111_v34  ;;  %v6167_v34 = vcombine.high %v288_v27, %v292_v28  ;;  %v340_v20 = vld [vmem:[%s9811_s1 + $0x968] sm:$0xff] }
  0xa5   :  { %2932 = vmatpush1.bf16.msra.mxu0 %v6356_v32  ;;  %v5968_v32 = vcombine.low %v89_v53, %v93_v22  ;;  %v145_v53 = vld [vmem:[%s9811_s1 + $0x350] sm:$0xff] }
  0xa6   :  { %3122 = vmatprep.subr.bf16.mxu0 %v5921_v35  ;;  %v5977_v35 = vcombine.high %v97_v29, %v101_v30  ;;  %v149_v22 = vld [vmem:[%s9811_s1 + $0x370] sm:$0xff] }
  0xa7   :  { %3016 = vmatpush1.bf16.msra.mxu1 %v6110_v40  ;;  %v6166_v40 = vcombine.low %v288_v27, %v292_v28  ;;  %v344_v27 = vld [vmem:[%s9811_s1 + $0x988] sm:$0xff] }
  0xa8   :  { %2950 = vmatmul.mubr.bf16.vlgmr.msra.gmra.mrb[0].mxu0 %v7874_v39  ;;  %3017 = vmatprep.subr.bf16.mxu1 %v6119_v42  ;;  %v6175_v42 = vcombine.high %v296_v36, %v300_v37  ;;  %v348_v28 = vld [vmem:[%s9811_s1 + $0x9a8] sm:$0xff] }
  0xa9   :  { %3123 = vmatpush1.bf16.msra.mxu0 %v5920_v41  ;;  %3154 = vmatprep.mubr.bf16.mxu0 %v7420_v58  ;;  %v5976_v41 = vcombine.low %v97_v29, %v101_v30  ;;  %v153_v29 = vld [vmem:[%s9811_s1 + $0x390] sm:$0xff] }
  0xaa   :  { %3124 = vmatprep.subr.bf16.mxu0 %v5929_v43  ;;  %v5985_v43 = vcombine.high %v105_v38, %v109_v19  ;;  %v157_v30 = vld [vmem:[%s9811_s1 + $0x3b0] sm:$0xff] }
  0xab   :  { %3018 = vmatpush1.bf16.msra.mxu1 %v6118_v49  ;;  %v6174_v49 = vcombine.low %v296_v36, %v300_v37  ;;  %v352_v36 = vld [vmem:[%s9811_s1 + $0x9c8] sm:$0xff] }
  0xac   :  { %3019 = vmatprep.subr.bf16.mxu1 %v6127_v51  ;;  %v6183_v51 = vcombine.high %v304_v44, %v308_v45  ;;  %v356_v37 = vld [vmem:[%s9811_s1 + $0x9e8] sm:$0xff] }
  0xad   :  { %3125 = vmatpush1.bf16.msra.mxu0 %v5928_v50  ;;  %v5984_v50 = vcombine.low %v105_v38, %v109_v19  ;;  %v161_v38 = vld [vmem:[%s9811_s1 + $0x3d0] sm:$0xff] }
  0xae   :  { %3126 = vmatprep.subr.bf16.mxu0 %v5937_v52  ;;  %v5993_v52 = vcombine.high %v113_v47, %v117_v48  ;;  %v165_v19 = vld [vmem:[%s9811_s1 + $0x3f0] sm:$0xff] }
  0xaf   :  { %3020 = vmatpush1.bf16.msra.mxu1 %v6126_v60  ;;  %v6182_v60 = vcombine.low %v304_v44, %v308_v45  ;;  %v360_v44 = vld [vmem:[%s9811_s1 + $0xa08] sm:$0xff] }
  0xb0   :  { %3021 = vmatprep.subr.bf16.mxu1 %v6135_v63  ;;  %v6191_v63 = vcombine.high %v312_v55, %v316_v56  ;;  %v364_v45 = vld [vmem:[%s9811_s1 + $0xa28] sm:$0xff] }
  0xb1   :  { %3127 = vmatpush1.bf16.msra.mxu0 %v5936_v62  ;;  %v5992_v62 = vcombine.low %v113_v47, %v117_v48  ;;  %v169_v47 = vld [vmem:[%s9811_s1 + $0x410] sm:$0xff] }
  0xb2   :  { %3128 = vmatprep.subr.bf16.mxu0 %v5945_v0  ;;  %v6001_v0 = vcombine.high %v121_v57, %v125_v59  ;;  %v173_v48 = vld [vmem:[%s9811_s1 + $0x430] sm:$0xff] }
  0xb3   :  { %3022 = vmatpush1.bf16.msra.mxu1 %v6134_v5  ;;  %v6190_v5 = vcombine.low %v312_v55, %v316_v56  ;;  %v368_v55 = vld [vmem:[%s9811_s1 + $0xa48] sm:$0xff] }
  0xb4   :  { %3023 = vmatprep.subr.bf16.mxu1 %v6143_v7  ;;  %v6199_v7 = vcombine.high %v320_v1, %v324_v2  ;;  %v372_v56 = vld [vmem:[%s9811_s1 + $0xa68] sm:$0xff] }
  0xb5   :  { %3129 = vmatpush1.bf16.msra.mxu0 %v5944_v6  ;;  %v6000_v6 = vcombine.low %v121_v57, %v125_v59  ;;  %v177_v57 = vld [vmem:[%s9811_s1 + $0x450] sm:$0xff] }
  0xb6   :  { %3130 = vmatprep.subr.bf16.mxu0 %v5953_v8  ;;  %v6009_v8 = vcombine.high %v129_v3, %v133_v4  ;;  %v181_v59 = vld [vmem:[%s9811_s1 + $0x470] sm:$0xff] }
  0xb7   :  { %3024 = vmatpush1.bf16.msra.mxu1 %v6142_v13  ;;  %v6198_v13 = vcombine.low %v320_v1, %v324_v2  ;;  %v376_v1 = vld [vmem:[%s9811_s1 + $0xa88] sm:$0xff] }
  0xb8   :  { %3025 = vmatprep.subr.bf16.mxu1 %v6151_v15  ;;  %v6207_v15 = vcombine.high %v328_v9, %v332_v10  ;;  %v380_v2 = vld [vmem:[%s9811_s1 + $0xaa8] sm:$0xff] }
  0xb9   :  { %3131 = vmatpush1.bf16.msra.mxu0 %v5952_v14  ;;  %v6008_v14 = vcombine.low %v129_v3, %v133_v4  ;;  %v185_v3 = vld [vmem:[%s9811_s1 + $0x490] sm:$0xff] }
  0xba   :  { %3132 = vmatprep.subr.bf16.mxu0 %v5961_v17  ;;  %v6017_v17 = vcombine.high %v137_v11, %v141_v12  ;;  %v189_v4 = vld [vmem:[%s9811_s1 + $0x4b0] sm:$0xff] }
  0xbb   :  { %3026 = vmatpush1.bf16.msra.mxu1 %v6150_v23  ;;  %v6206_v23 = vcombine.low %v328_v9, %v332_v10  ;;  %v384_v9 = vld [vmem:[%s9811_s1 + $0xac8] sm:$0xff] }
  0xbc   :  { %3027 = vmatprep.subr.bf16.mxu1 %v6159_v25  ;;  %v6215_v25 = vcombine.high %v336_v18, %v340_v20  ;;  %v388_v10 = vld [vmem:[%s9811_s1 + $0xae8] sm:$0xff] }
  0xbd   :  { %3133 = vmatpush1.bf16.msra.mxu0 %v5960_v24  ;;  %v6016_v24 = vcombine.low %v137_v11, %v141_v12  ;;  %v193_v11 = vld [vmem:[%s9811_s1 + $0x4d0] sm:$0xff] }
  0xbe   :  { %3134 = vmatprep.subr.bf16.mxu0 %v5969_v54  ;;  %v6025_v54 = vcombine.high %v145_v53, %v149_v22  ;;  %v197_v12 = vld [vmem:[%s9811_s1 + $0x4f0] sm:$0xff] }
  0xbf   :  { %3028 = vmatpush1.bf16.msra.mxu1 %v6158_v31  ;;  %v6214_v31 = vcombine.low %v336_v18, %v340_v20  ;;  %v392_v18 = vld [vmem:[%s9811_s1 + $0xb08] sm:$0xff] }
  0xc0   :  { %3029 = vmatprep.subr.bf16.mxu1 %v6167_v34  ;;  %v6223_v34 = vcombine.high %v344_v27, %v348_v28  ;;  %v396_v20 = vld [vmem:[%s9811_s1 + $0xb28] sm:$0xff] }
  0xc1   :  { %3135 = vmatpush1.bf16.msra.mxu0 %v5968_v32  ;;  %v6024_v32 = vcombine.low %v145_v53, %v149_v22  ;;  %v201_v53 = vld [vmem:[%s9811_s1 + $0x510] sm:$0xff] }
  0xc2   :  { %3136 = vmatprep.subr.bf16.mxu0 %v5977_v35  ;;  %v6033_v35 = vcombine.high %v153_v29, %v157_v30  ;;  %v205_v22 = vld [vmem:[%s9811_s1 + $0x530] sm:$0xff] }
  0xc3   :  { %3030 = vmatpush1.bf16.msra.mxu1 %v6166_v40  ;;  %v6222_v40 = vcombine.low %v344_v27, %v348_v28  ;;  %v400_v27 = vld [vmem:[%s9811_s1 + $0xb48] sm:$0xff] }
  0xc4   :  { %3040 = vmatprep.subr.bf16.mxu1 %v6175_v42  ;;  %v6231_v42 = vcombine.high %v352_v36, %v356_v37  ;;  %v404_v28 = vld [vmem:[%s9811_s1 + $0xb68] sm:$0xff] }
  0xc5   :  { %3137 = vmatpush1.bf16.msra.mxu0 %v5976_v41  ;;  %v6032_v41 = vcombine.low %v153_v29, %v157_v30  ;;  %v209_v29 = vld [vmem:[%s9811_s1 + $0x550] sm:$0xff] }
  0xc6   :  { %3138 = vmatprep.subr.bf16.mxu0 %v5985_v43  ;;  %3032 = vmatmul.mubr.bf16.vlgmr.msra.gmra.mrb[4].mxu1 %v7565_v21  ;;  %v6041_v43 = vcombine.high %v161_v38, %v165_v19  ;;  %v213_v30 = vld [vmem:[%s9811_s1 + $0x570] sm:$0xff] }
  0xc7   :  { %3041 = vmatpush1.bf16.msra.mxu1 %v6174_v49  ;;  %3072 = vmatprep.mubr.bf16.mxu1 %v7575_v26  ;;  %v6230_v49 = vcombine.low %v352_v36, %v356_v37  ;;  %v408_v36 = vld [vmem:[%s9811_s1 + $0xb88] sm:$0xff] }
  0xc8   :  { %3042 = vmatprep.subr.bf16.mxu1 %v6183_v51  ;;  %v6239_v51 = vcombine.high %v360_v44, %v364_v45  ;;  %v412_v37 = vld [vmem:[%s9811_s1 + $0xba8] sm:$0xff] }
  0xc9   :  { %3139 = vmatpush1.bf16.msra.mxu0 %v5984_v50  ;;  %v6040_v50 = vcombine.low %v161_v38, %v165_v19  ;;  %v217_v38 = vld [vmem:[%s9811_s1 + $0x590] sm:$0xff] }
  0xca   :  { %3140 = vmatprep.subr.bf16.mxu0 %v5993_v52  ;;  %v6049_v52 = vcombine.high %v169_v47, %v173_v48  ;;  %v221_v19 = vld [vmem:[%s9811_s1 + $0x5b0] sm:$0xff] }
  0xcb   :  { %3043 = vmatpush1.bf16.msra.mxu1 %v6182_v60  ;;  %v6238_v60 = vcombine.low %v360_v44, %v364_v45  ;;  %v416_v44 = vld [vmem:[%s9811_s1 + $0xbc8] sm:$0xff] }
  0xcc   :  { %3044 = vmatprep.subr.bf16.mxu1 %v6191_v63  ;;  %v6247_v63 = vcombine.high %v368_v55, %v372_v56  ;;  %v420_v45 = vld [vmem:[%s9811_s1 + $0xbe8] sm:$0xff] }
  0xcd   :  { %3141 = vmatpush1.bf16.msra.mxu0 %v5992_v62  ;;  %v6048_v62 = vcombine.low %v169_v47, %v173_v48  ;;  %v225_v47 = vld [vmem:[%s9811_s1 + $0x5d0] sm:$0xff] }
  0xce   :  { %3142 = vmatprep.subr.bf16.mxu0 %v6001_v0  ;;  %v6057_v0 = vcombine.high %v177_v57, %v181_v59  ;;  %v229_v48 = vld [vmem:[%s9811_s1 + $0x5f0] sm:$0xff] }
  0xcf   :  { %3045 = vmatpush1.bf16.msra.mxu1 %v6190_v5  ;;  %v6246_v5 = vcombine.low %v368_v55, %v372_v56  ;;  %v424_v55 = vld [vmem:[%s9811_s1 + $0xc08] sm:$0xff] }
  0xd0   :  { %3046 = vmatprep.subr.bf16.mxu1 %v6199_v7  ;;  %v6255_v7 = vcombine.high %v376_v1, %v380_v2  ;;  %v428_v56 = vld [vmem:[%s9811_s1 + $0xc28] sm:$0xff] }
  0xd1   :  { %3143 = vmatpush1.bf16.msra.mxu0 %v6000_v6  ;;  %v6056_v6 = vcombine.low %v177_v57, %v181_v59  ;;  %v233_v57 = vld [vmem:[%s9811_s1 + $0x610] sm:$0xff] }
  0xd2   :  { %3144 = vmatprep.subr.bf16.mxu0 %v6009_v8  ;;  %v6065_v8 = vcombine.high %v185_v3, %v189_v4  ;;  %v237_v59 = vld [vmem:[%s9811_s1 + $0x630] sm:$0xff] }
  0xd3   :  { %3047 = vmatpush1.bf16.msra.mxu1 %v6198_v13  ;;  %v6254_v13 = vcombine.low %v376_v1, %v380_v2  ;;  %v432_v1 = vld [vmem:[%s9811_s1 + $0xc48] sm:$0xff] }
  0xd4   :  { %3048 = vmatprep.subr.bf16.mxu1 %v6207_v15  ;;  %v6263_v15 = vcombine.high %v384_v9, %v388_v10  ;;  %v436_v2 = vld [vmem:[%s9811_s1 + $0xc68] sm:$0xff] }
  0xd5   :  { %3145 = vmatpush1.bf16.msra.mxu0 %v6008_v14  ;;  %v6064_v14 = vcombine.low %v185_v3, %v189_v4  ;;  %v241_v3 = vld [vmem:[%s9811_s1 + $0x650] sm:$0xff] }
  0xd6   :  { %3146 = vmatprep.subr.bf16.mxu0 %v6017_v17  ;;  %v6073_v17 = vcombine.high %v193_v11, %v197_v12  ;;  %v245_v4 = vld [vmem:[%s9811_s1 + $0x670] sm:$0xff] }
  0xd7   :  { %3049 = vmatpush1.bf16.msra.mxu1 %v6206_v23  ;;  %v6262_v23 = vcombine.low %v384_v9, %v388_v10  ;;  %v444_v9 = vld [vmem:[%s9811_s1 + $0xca8] sm:$0xff]  ;;  %v6121_v10 = vcombine.high %v241_v3, %v245_v4 }
  0xd8   :  { %3050 = vmatprep.subr.bf16.mxu1 %v6215_v25  ;;  %v6271_v25 = vcombine.high %v392_v18, %v396_v20 }
  0xd9   :  { %3147 = vmatpush1.bf16.msra.mxu0 %v6016_v24  ;;  %v6072_v24 = vcombine.low %v193_v11, %v197_v12  ;;  %v249_v11 = vld [vmem:[%s9811_s1 + $0x690] sm:$0xff] }
  0xda   :  { %3148 = vmatprep.subr.bf16.mxu0 %v6025_v54  ;;  %v6081_v54 = vcombine.high %v201_v53, %v205_v22  ;;  %v253_v12 = vld [vmem:[%s9811_s1 + $0x6b0] sm:$0xff] }
  0xdb   :  { %3051 = vmatpush1.bf16.msra.mxu1 %v6214_v31  ;;  %v6270_v31 = vcombine.low %v392_v18, %v396_v20  ;;  %v452_v18 = vld [vmem:[%s9811_s1 + $0xce8] sm:$0xff]  ;;  %v6129_v20 = vcombine.high %v249_v11, %v253_v12 }
  0xdc   :  { %3052 = vmatprep.subr.bf16.mxu1 %v6223_v34  ;;  %v6279_v34 = vcombine.high %v400_v27, %v404_v28 }
  0xdd   :  { %3149 = vmatpush1.bf16.msra.mxu0 %v6024_v32  ;;  %v6080_v32 = vcombine.low %v201_v53, %v205_v22  ;;  %v257_v53 = vld [vmem:[%s9811_s1 + $0x6d0] sm:$0xff] }
  0xde   :  { %3150 = vmatprep.subr.bf16.mxu0 %v6033_v35  ;;  %v6089_v35 = vcombine.high %v209_v29, %v213_v30  ;;  %v261_v22 = vld [vmem:[%s9811_s1 + $0x6f0] sm:$0xff] }
  0xdf   :  { %3053 = vmatpush1.bf16.msra.mxu1 %v6222_v40  ;;  %v6278_v40 = vcombine.low %v400_v27, %v404_v28  ;;  %v460_v27 = vld [vmem:[%s9811_s1 + $0xd28] sm:$0xff]  ;;  %v265_v28 = vld [vmem:[%s9811_s1 + $0x710] sm:$0xff] }
  0xe0   :  { %3054 = vmatprep.subr.bf16.mxu1 %v6231_v42  ;;  %v6287_v42 = vcombine.high %v408_v36, %v412_v37 }
  0xe1   :  { %3151 = vmatpush1.bf16.msra.mxu0 %v6032_v41  ;;  %v6088_v41 = vcombine.low %v209_v29, %v213_v30  ;;  %v6137_v29 = vcombine.high %v257_v53, %v261_v22  ;;  %v269_v30 = vld [vmem:[%s9811_s1 + $0x730] sm:$0xff] }
  0xe2   :  { %3152 = vmatprep.subr.bf16.mxu0 %v6041_v43  ;;  %v6097_v43 = vcombine.high %v217_v38, %v221_v19 }
  0xe3   :  { %3055 = vmatpush1.bf16.msra.mxu1 %v6230_v49  ;;  %v6286_v49 = vcombine.low %v408_v36, %v412_v37  ;;  %v468_v36 = vld [vmem:[%s9811_s1 + $0xd68] sm:$0xff]  ;;  %v273_v37 = vld [vmem:[%s9811_s1 + $0x750] sm:$0xff] }
  0xe4   :  { %3056 = vmatprep.subr.bf16.mxu1 %v6239_v51  ;;  %v6295_v51 = vcombine.high %v416_v44, %v420_v45 }
  0xe5   :  { %3153 = vmatpush1.bf16.msra.mxu0 %v6040_v50  ;;  %v6096_v50 = vcombine.low %v217_v38, %v221_v19  ;;  %v6145_v38 = vcombine.high %v265_v28, %v269_v30  ;;  %v277_v19 = vld [vmem:[%s9811_s1 + $0x770] sm:$0xff] }
  0xe6   :  { %3163 = vmatprep.subr.bf16.mxu0 %v6049_v52  ;;  %v6105_v52 = vcombine.high %v225_v47, %v229_v48 }
  0xe7   :  { %3057 = vmatpush1.bf16.msra.mxu1 %v6238_v60  ;;  %v6294_v60 = vcombine.low %v416_v44, %v420_v45  ;;  %v476_v44 = vld [vmem:[%s9811_s1 + $0xda8] sm:$0xff]  ;;  %v281_v45 = vld [vmem:[%s9811_s1 + $0x790] sm:$0xff] }
  0xe8   :  { %3155 = vmatmul.mubr.bf16.vlgmr.msra.gmra.mrb[4].mxu0 %v7550_v16  ;;  %3058 = vmatprep.subr.bf16.mxu1 %v6247_v63  ;;  %v6303_v63 = vcombine.high %v424_v55, %v428_v56 }
  0xe9   :  { %3164 = vmatpush1.bf16.msra.mxu0 %v6048_v62  ;;  %3195 = vmatprep.mubr.bf16.mxu0 %v7430_v61  ;;  %v6104_v62 = vcombine.low %v225_v47, %v229_v48  ;;  %v6153_v47 = vcombine.high %v273_v37, %v277_v19  ;;  %v285_v48 = vld [vmem:[%s9811_s1 + $0x7b0] sm:$0xff] }
  0xea   :  { %3165 = vmatprep.subr.bf16.mxu0 %v6057_v0  ;;  %v6113_v0 = vcombine.high %v233_v57, %v237_v59 }
  0xeb   :  { %3059 = vmatpush1.bf16.msra.mxu1 %v6246_v5  ;;  %v6302_v5 = vcombine.low %v424_v55, %v428_v56  ;;  %v484_v55 = vld [vmem:[%s9811_s1 + $0xde8] sm:$0xff]  ;;  %v289_v56 = vld [vmem:[%s9811_s1 + $0x7d0] sm:$0xff] }
  0xec   :  { %3060 = vmatprep.subr.bf16.mxu1 %v6255_v7  ;;  %v6311_v7 = vcombine.high %v432_v1, %v436_v2 }
  0xed   :  { %3166 = vmatpush1.bf16.msra.mxu0 %v6056_v6  ;;  %v6112_v6 = vcombine.low %v233_v57, %v237_v59  ;;  %v6161_v59 = vcombine.high %v281_v45, %v285_v48 }
  0xee   :  { %3167 = vmatprep.subr.bf16.mxu0 %v6065_v8  ;;  %v440_v8 = vld [vmem:[%s9811_s1 + $0xc88] sm:$0xff] }
  0xef   :  { %3061 = vmatpush1.bf16.msra.mxu1 %v6254_v13  ;;  %v6310_v13 = vcombine.low %v432_v1, %v436_v2  ;;  %v6160_v2 = vcombine.low %v281_v45, %v285_v48  ;;  %v337_v45 = vld [vmem:[%s9811_s1 + $0x950] sm:$0xff]  ;;  %v82_v48 = vld [vmem:[%s9811_s1 + $0x158] sm:$0xff] }
  0xf0   :  { %3062 = vmatprep.subr.bf16.mxu1 %v6263_v15  ;;  %v6319_v15 = vcombine.high %v440_v8, %v444_v9 }
  0xf1   :  { %3168 = vmatpush1.bf16.msra.mxu0 %v6064_v14  ;;  %v6120_v14 = vcombine.low %v241_v3, %v245_v4  ;;  %v297_v4 = vld [vmem:[%s9811_s1 + $0x810] sm:$0xff] }
  0xf2   :  { %3169 = vmatprep.subr.bf16.mxu0 %v6073_v17  ;;  %v448_v17 = vld [vmem:[%s9811_s1 + $0xcc8] sm:$0xff] }
  0xf3   :  { %3063 = vmatpush1.bf16.msra.mxu1 %v6262_v23  ;;  %v6318_v23 = vcombine.low %v440_v8, %v444_v9  ;;  %v46_v8 = vld [vmem:[%s9811_s1 + $0x38] sm:$0xff] }
  0xf4   :  { %3064 = vmatprep.subr.bf16.mxu1 %v6271_v25  ;;  %v6327_v25 = vcombine.high %v448_v17, %v452_v18 }
  0xf5   :  { %3170 = vmatpush1.bf16.msra.mxu0 %v6072_v24  ;;  %v6128_v24 = vcombine.low %v249_v11, %v253_v12  ;;  %v305_v12 = vld [vmem:[%s9811_s1 + $0x850] sm:$0xff] }
  0xf6   :  { %3171 = vmatprep.subr.bf16.mxu0 %v6081_v54  ;;  %v456_v54 = vld [vmem:[%s9811_s1 + $0xd08] sm:$0xff] }
  0xf7   :  { %3065 = vmatpush1.bf16.msra.mxu1 %v6270_v31  ;;  %v6326_v31 = vcombine.low %v448_v17, %v452_v18  ;;  %v54_v17 = vld [vmem:[%s9811_s1 + $0x78] sm:$0xff] }
  0xf8   :  { %3066 = vmatprep.subr.bf16.mxu1 %v6279_v34  ;;  %v6335_v34 = vcombine.high %v456_v54, %v460_v27 }
  0xf9   :  { %3172 = vmatpush1.bf16.msra.mxu0 %v6080_v32  ;;  %v6136_v32 = vcombine.low %v257_v53, %v261_v22  ;;  %v313_v22 = vld [vmem:[%s9811_s1 + $0x890] sm:$0xff] }
  0xfa   :  { %3173 = vmatprep.subr.bf16.mxu0 %v6089_v35  ;;  %v464_v35 = vld [vmem:[%s9811_s1 + $0xd48] sm:$0xff] }
  0xfb   :  { %3067 = vmatpush1.bf16.msra.mxu1 %v6278_v40  ;;  %v6334_v40 = vcombine.low %v456_v54, %v460_v27  ;;  %v62_v54 = vld [vmem:[%s9811_s1 + $0xb8] sm:$0xff] }
  0xfc   :  { %3068 = vmatprep.subr.bf16.mxu1 %v6287_v42  ;;  %v6343_v42 = vcombine.high %v464_v35, %v468_v36 }
  0xfd   :  { %3174 = vmatpush1.bf16.msra.mxu0 %v6088_v41  ;;  %v6144_v41 = vcombine.low %v265_v28, %v269_v30  ;;  %v321_v30 = vld [vmem:[%s9811_s1 + $0x8d0] sm:$0xff] }
  0xfe   :  { %3175 = vmatprep.subr.bf16.mxu0 %v6097_v43  ;;  %v472_v43 = vld [vmem:[%s9811_s1 + $0xd88] sm:$0xff] }
  0xff   :  { %3069 = vmatpush1.bf16.msra.mxu1 %v6286_v49  ;;  %v6342_v49 = vcombine.low %v464_v35, %v468_v36 }
 0x100   :  { %3070 = vmatprep.subr.bf16.mxu1 %v6295_v51  ;;  %v6351_v51 = vcombine.high %v472_v43, %v476_v44 }
 0x101   :  { %3176 = vmatpush1.bf16.msra.mxu0 %v6096_v50  ;;  %v6152_v50 = vcombine.low %v273_v37, %v277_v19  ;;  %v333_v19 = vld [vmem:[%s9811_s1 + $0x930] sm:$0xff] }
 0x102   :  { %3177 = vmatprep.subr.bf16.mxu0 %v6105_v52  ;;  %v480_v52 = vld [vmem:[%s9811_s1 + $0xdc8] sm:$0xff] }
 0x103   :  { %3071 = vmatpush1.bf16.msra.mxu1 %v6294_v60  ;;  %v293_v60 = vld [vmem:[%s9811_s1 + $0x7f0] sm:$0xff]  ;;  %v6359_v3 = vcombine.high %v480_v52, %v484_v55  ;;  %v6358_v9 = vcombine.low %v480_v52, %v484_v55 }
 0x104   :  { %3081 = vmatprep.subr.bf16.mxu1 %v6303_v63 }
 0x105   :  { %3178 = vmatpush1.bf16.msra.mxu0 %v6104_v62 }
 0x106   :  { %3179 = vmatprep.subr.bf16.mxu0 %v6113_v0  ;;  %3073 = vmatmul.mubr.bf16.vlgmr.msra.gmra.mrb[4].mxu1 %v7769_v33  ;;  %v6350_v0 = vcombine.low %v472_v43, %v476_v44 }
 0x107   :  { %3082 = vmatpush1.bf16.msra.mxu1 %v6302_v5  ;;  %3113 = vmatprep.mubr.bf16.mxu1 %v7267_v46  ;;  %v301_v5 = vld [vmem:[%s9811_s1 + $0x830] sm:$0xff] }
 0x108   :  { %3083 = vmatprep.subr.bf16.mxu1 %v6311_v7  ;;  %v6169_v7 = vcombine.high %v289_v56, %v293_v60 }
 0x109   :  { %3180 = vmatpush1.bf16.msra.mxu0 %v6112_v6  ;;  %v42_v6 = vld [vmem:[%s9811_s1 + $0x18] sm:$0xff] }
 0x10a   :  { %3181 = vmatprep.subr.bf16.mxu0 %v6121_v10  ;;  %v6168_v10 = vcombine.low %v289_v56, %v293_v60  ;;  %v5923_v11 = vcombine.high %v42_v6, %v46_v8  ;;  %v5922_v18 = vcombine.low %v42_v6, %v46_v8  ;;  %v345_v56 = vld [vmem:[%s9811_s1 + $0x990] sm:$0xff]  ;;  %v90_v60 = vld [vmem:[%s9811_s1 + $0x198] sm:$0xff] }
 0x10b   :  { %3084 = vmatpush1.bf16.msra.mxu1 %v6310_v13  ;;  %v309_v13 = vld [vmem:[%s9811_s1 + $0x870] sm:$0xff]  ;;  %v98_v6 = vld [vmem:[%s9811_s1 + $0x1d8] sm:$0xff] }
 0x10c   :  { %3085 = vmatprep.subr.bf16.mxu1 %v6319_v15  ;;  %v6177_v15 = vcombine.high %v297_v4, %v301_v5  ;;  %v6184_v28 = vcombine.low %v305_v12, %v309_v13  ;;  %v102_v8 = vld [vmem:[%s9811_s1 + $0x1f8] sm:$0xff] }
 0x10d   :  { %3182 = vmatpush1.bf16.msra.mxu0 %v6120_v14  ;;  %v50_v14 = vld [vmem:[%s9811_s1 + $0x58] sm:$0xff] }
 0x10e   :  { %3183 = vmatprep.subr.bf16.mxu0 %v6129_v20  ;;  %v6176_v20 = vcombine.low %v297_v4, %v301_v5  ;;  %v5931_v53 = vcombine.high %v50_v14, %v54_v17  ;;  %v5930_v27 = vcombine.low %v50_v14, %v54_v17  ;;  %v353_v4 = vld [vmem:[%s9811_s1 + $0x9d0] sm:$0xff]  ;;  %v106_v14 = vld [vmem:[%s9811_s1 + $0x218] sm:$0xff] }
 0x10f   :  { %3086 = vmatpush1.bf16.msra.mxu1 %v6318_v23  ;;  %v317_v23 = vld [vmem:[%s9811_s1 + $0x8b0] sm:$0xff]  ;;  %v110_v17 = vld [vmem:[%s9811_s1 + $0x238] sm:$0xff] }
 0x110   :  { %3087 = vmatprep.subr.bf16.mxu1 %v6327_v25  ;;  %v6185_v25 = vcombine.high %v305_v12, %v309_v13  ;;  %v6192_v36 = vcombine.low %v313_v22, %v317_v23  ;;  %v357_v5 = vld [vmem:[%s9811_s1 + $0x9f0] sm:$0xff] }
 0x111   :  { %3184 = vmatpush1.bf16.msra.mxu0 %v6128_v24  ;;  %v58_v24 = vld [vmem:[%s9811_s1 + $0x98] sm:$0xff]  ;;  %v361_v12 = vld [vmem:[%s9811_s1 + $0xa10] sm:$0xff] }
 0x112   :  { %3185 = vmatprep.subr.bf16.mxu0 %v6137_v29  ;;  %v5939_v29 = vcombine.high %v58_v24, %v62_v54  ;;  %v5938_v35 = vcombine.low %v58_v24, %v62_v54  ;;  %v365_v13 = vld [vmem:[%s9811_s1 + $0xa30] sm:$0xff]  ;;  %v114_v24 = vld [vmem:[%s9811_s1 + $0x258] sm:$0xff] }
 0x113   :  { %3088 = vmatpush1.bf16.msra.mxu1 %v6326_v31  ;;  %v325_v31 = vld [vmem:[%s9811_s1 + $0x8f0] sm:$0xff]  ;;  %v118_v54 = vld [vmem:[%s9811_s1 + $0x278] sm:$0xff] }
 0x114   :  { %3089 = vmatprep.subr.bf16.mxu1 %v6335_v34  ;;  %v70_v34 = vld [vmem:[%s9811_s1 + $0xf8] sm:$0xff]  ;;  %v6200_v43 = vcombine.low %v321_v30, %v325_v31 }
 0x115   :  { %3186 = vmatpush1.bf16.msra.mxu0 %v6136_v32  ;;  %v6193_v32 = vcombine.high %v313_v22, %v317_v23  ;;  %v369_v22 = vld [vmem:[%s9811_s1 + $0xa50] sm:$0xff] }
 0x116   :  { %3187 = vmatprep.subr.bf16.mxu0 %v6145_v38  ;;  %v329_v38 = vld [vmem:[%s9811_s1 + $0x910] sm:$0xff] }
 0x117   :  { %3090 = vmatpush1.bf16.msra.mxu1 %v6334_v40  ;;  %v74_v40 = vld [vmem:[%s9811_s1 + $0x118] sm:$0xff]  ;;  %v6208_v52 = vcombine.low %v329_v38, %v333_v19  ;;  %v373_v23 = vld [vmem:[%s9811_s1 + $0xa70] sm:$0xff] }
 0x118   :  { %3091 = vmatprep.subr.bf16.mxu1 %v6343_v42 }
 0x119   :  { %3188 = vmatpush1.bf16.msra.mxu0 %v6144_v41  ;;  %v8241_v57 = vpop.f32.mrb[0].mxu1  ;;  %v78_v41 = vld [vmem:[%s9811_s1 + $0x138] sm:$0xff] }
 0x11a   :  { %3189 = vmatprep.subr.bf16.mxu0 %v6153_v47  ;;  %v8246_v62 = vpop.f32.mrb[1].mxu1  ;;  %v5955_v44 = vcombine.high %v74_v40, %v78_v41  ;;  %v341_v47 = vld [vmem:[%s9811_s1 + $0x970] sm:$0xff] }
 0x11b   :  { %v2832_v63 = vpop.f32.mrb[2].mxu1  ;;  %3092 = vmatpush1.bf16.msra.mxu1 %v6342_v49  ;;  %v6209_v49 = vcombine.high %v329_v38, %v333_v19  ;;  %v385_v38 = vld [vmem:[%s9811_s1 + $0xad0] sm:$0xff] }
 0x11c   :  { %v2833_v1 = vpop.f32.mrb[3].mxu1  ;;  %3093 = vmatprep.subr.bf16.mxu1 %v6351_v51  ;;  %v5954_v51 = vcombine.low %v74_v40, %v78_v41  ;;  %v6217_v63 = vcombine.high %v337_v45, %v341_v47  ;;  %v389_v19 = vld [vmem:[%s9811_s1 + $0xaf0] sm:$0xff]  ;;  %v130_v40 = vld [vmem:[%s9811_s1 + $0x2d8] sm:$0xff] }
 0x11d   :  { %3190 = vmatpush1.bf16.msra.mxu0 %v6152_v50  ;;  %v86_v50 = vld [vmem:[%s9811_s1 + $0x178] sm:$0xff] }
 0x11e   :  { %3191 = vmatprep.subr.bf16.mxu0 %v6161_v59  ;;  %v5963_v55 = vcombine.high %v82_v48, %v86_v50  ;;  %v349_v59 = vld [vmem:[%s9811_s1 + $0x9b0] sm:$0xff]  ;;  %v5962_v1 = vcombine.low %v82_v48, %v86_v50  ;;  %v134_v41 = vld [vmem:[%s9811_s1 + $0x2f8] sm:$0xff] }
 0x11f   :  { %3094 = vmatpush1.bf16.msra.mxu1 %v6350_v0  ;;  %v94_v0 = vld [vmem:[%s9811_s1 + $0x1b8] sm:$0xff] }
 0x120   :  { %3095 = vmatprep.subr.bf16.mxu1 %v6359_v3  ;;  %v5971_v3 = vcombine.high %v90_v60, %v94_v0  ;;  %v138_v48 = vld [vmem:[%s9811_s1 + $0x318] sm:$0xff] }
 0x121   :  { %3192 = vmatpush1.bf16.msra.mxu0 %v6160_v2  ;;  %v6216_v2 = vcombine.low %v337_v45, %v341_v47  ;;  %v393_v45 = vld [vmem:[%s9811_s1 + $0xb10] sm:$0xff]  ;;  %v142_v50 = vld [vmem:[%s9811_s1 + $0x338] sm:$0xff] }
 0x122   :  { %3193 = vmatprep.subr.bf16.mxu0 %v6169_v7  ;;  %v6225_v7 = vcombine.high %v345_v56, %v349_v59  ;;  %v397_v47 = vld [vmem:[%s9811_s1 + $0xb30] sm:$0xff] }
 0x123   :  { %3096 = vmatpush1.bf16.msra.mxu1 %v6358_v9  ;;  %v5970_v9 = vcombine.low %v90_v60, %v94_v0  ;;  %v146_v60 = vld [vmem:[%s9811_s1 + $0x358] sm:$0xff] }
 0x124   :  { %3286 = vmatprep.subr.bf16.mxu1 %v5923_v11  ;;  %v5979_v11 = vcombine.high %v98_v6, %v102_v8  ;;  %v150_v0 = vld [vmem:[%s9811_s1 + $0x378] sm:$0xff] }
 0x125   :  { %3194 = vmatpush1.bf16.msra.mxu0 %v6168_v10  ;;  %v6224_v10 = vcombine.low %v345_v56, %v349_v59  ;;  %v401_v56 = vld [vmem:[%s9811_s1 + $0xb50] sm:$0xff] }
 0x126   :  { %3204 = vmatprep.subr.bf16.mxu0 %v6177_v15  ;;  %3114 = vmatmul.mubr.bf16.vlgmr.msra.gmra.mrb[4].mxu1 %v7874_v39  ;;  %v66_v39 = vld [vmem:[%s9811_s1 + $0xd8] sm:$0xff]  ;;  %v6233_v15 = vcombine.high %v353_v4, %v357_v5  ;;  %v405_v59 = vld [vmem:[%s9811_s1 + $0xb70] sm:$0xff] }
 0x127   :  { %3287 = vmatpush1.bf16.msra.mxu1 %v5922_v18  ;;  %3318 = vmatprep.mubr.bf16.mxu1 %v7420_v58  ;;  %v5947_v37 = vcombine.high %v66_v39, %v70_v34  ;;  %v6201_v58 = vcombine.high %v321_v30, %v325_v31  ;;  %v5946_v42 = vcombine.low %v66_v39, %v70_v34  ;;  %v377_v30 = vld [vmem:[%s9811_s1 + $0xa90] sm:$0xff]  ;;  %v122_v31 = vld [vmem:[%s9811_s1 + $0x298] sm:$0xff] }
 0x128   :  { %3196 = vmatmul.mubr.bf16.vlgmr.msra.gmra.mrb[4].mxu0 %v7565_v21  ;;  %3288 = vmatprep.subr.bf16.mxu1 %v5931_v53  ;;  %v5978_v18 = vcombine.low %v98_v6, %v102_v8  ;;  %v5987_v53 = vcombine.high %v106_v14, %v110_v17  ;;  %v6249_v39 = vcombine.high %v369_v22, %v373_v23  ;;  %v381_v34 = vld [vmem:[%s9811_s1 + $0xab0] sm:$0xff]  ;;  %v154_v6 = vld [vmem:[%s9811_s1 + $0x398] sm:$0xff] }
 0x129   :  { %3205 = vmatpush1.bf16.msra.mxu0 %v6176_v20  ;;  %3236 = vmatprep.mubr.bf16.mxu0 %v7575_v26  ;;  %v6232_v20 = vcombine.low %v353_v4, %v357_v5  ;;  %v409_v4 = vld [vmem:[%s9811_s1 + $0xb90] sm:$0xff]  ;;  %v158_v8 = vld [vmem:[%s9811_s1 + $0x3b8] sm:$0xff] }
 0x12a   :  { %3206 = vmatprep.subr.bf16.mxu0 %v6185_v25  ;;  %v6241_v25 = vcombine.high %v361_v12, %v365_v13  ;;  %v413_v5 = vld [vmem:[%s9811_s1 + $0xbb0] sm:$0xff] }
 0x12b   :  { %3289 = vmatpush1.bf16.msra.mxu1 %v5930_v27  ;;  %v5986_v27 = vcombine.low %v106_v14, %v110_v17  ;;  %v162_v14 = vld [vmem:[%s9811_s1 + $0x3d8] sm:$0xff] }
 0x12c   :  { %3290 = vmatprep.subr.bf16.mxu1 %v5939_v29  ;;  %v5995_v29 = vcombine.high %v114_v24, %v118_v54  ;;  %v166_v17 = vld [vmem:[%s9811_s1 + $0x3f8] sm:$0xff] }
 0x12d   :  { %3207 = vmatpush1.bf16.msra.mxu0 %v6184_v28  ;;  %v6240_v28 = vcombine.low %v361_v12, %v365_v13  ;;  %v417_v12 = vld [vmem:[%s9811_s1 + $0xbd0] sm:$0xff] }
 0x12e   :  { %3208 = vmatprep.subr.bf16.mxu0 %v6193_v32  ;;  %v126_v32 = vld [vmem:[%s9811_s1 + $0x2b8] sm:$0xff]  ;;  %v421_v13 = vld [vmem:[%s9811_s1 + $0xbf0] sm:$0xff] }
 0x12f   :  { %3291 = vmatpush1.bf16.msra.mxu1 %v5938_v35  ;;  %v5994_v35 = vcombine.low %v114_v24, %v118_v54  ;;  %v170_v24 = vld [vmem:[%s9811_s1 + $0x418] sm:$0xff] }
 0x130   :  { %3292 = vmatprep.subr.bf16.mxu1 %v5947_v37  ;;  %v6003_v37 = vcombine.high %v122_v31, %v126_v32  ;;  %v174_v54 = vld [vmem:[%s9811_s1 + $0x438] sm:$0xff] }
 0x131   :  { %3209 = vmatpush1.bf16.msra.mxu0 %v6192_v36  ;;  %v6248_v36 = vcombine.low %v369_v22, %v373_v23  ;;  %v425_v22 = vld [vmem:[%s9811_s1 + $0xc10] sm:$0xff] }
 0x132   :  { %3210 = vmatprep.subr.bf16.mxu0 %v6201_v58  ;;  %v6257_v58 = vcombine.high %v377_v30, %v381_v34  ;;  %v429_v23 = vld [vmem:[%s9811_s1 + $0xc30] sm:$0xff] }
 0x133   :  { %3293 = vmatpush1.bf16.msra.mxu1 %v5946_v42  ;;  %v6002_v42 = vcombine.low %v122_v31, %v126_v32  ;;  %v437_v31 = vld [vmem:[%s9811_s1 + $0xc70] sm:$0xff]  ;;  %v6305_v32 = vcombine.high %v425_v22, %v429_v23 }
 0x134   :  { %3294 = vmatprep.subr.bf16.mxu1 %v5955_v44  ;;  %v6011_v44 = vcombine.high %v130_v40, %v134_v41 }
 0x135   :  { %3211 = vmatpush1.bf16.msra.mxu0 %v6200_v43  ;;  %v6256_v43 = vcombine.low %v377_v30, %v381_v34  ;;  %v433_v30 = vld [vmem:[%s9811_s1 + $0xc50] sm:$0xff]  ;;  %v182_v34 = vld [vmem:[%s9811_s1 + $0x478] sm:$0xff] }
 0x136   :  { %3212 = vmatprep.subr.bf16.mxu0 %v6209_v49  ;;  %v6265_v49 = vcombine.high %v385_v38, %v389_v19 }
 0x137   :  { %3295 = vmatpush1.bf16.msra.mxu1 %v5954_v51  ;;  %v6010_v51 = vcombine.low %v130_v40, %v134_v41  ;;  %v186_v40 = vld [vmem:[%s9811_s1 + $0x498] sm:$0xff] }
 0x138   :  { %3296 = vmatprep.subr.bf16.mxu1 %v5963_v55  ;;  %v6019_v55 = vcombine.high %v138_v48, %v142_v50  ;;  %v190_v41 = vld [vmem:[%s9811_s1 + $0x4b8] sm:$0xff] }
 0x139   :  { %3213 = vmatpush1.bf16.msra.mxu0 %v6208_v52  ;;  %v6264_v52 = vcombine.low %v385_v38, %v389_v19  ;;  %v441_v38 = vld [vmem:[%s9811_s1 + $0xc90] sm:$0xff] }
 0x13a   :  { %3214 = vmatprep.subr.bf16.mxu0 %v6217_v63  ;;  %v6273_v63 = vcombine.high %v393_v45, %v397_v47  ;;  %v445_v19 = vld [vmem:[%s9811_s1 + $0xcb0] sm:$0xff] }
 0x13b   :  { %3297 = vmatpush1.bf16.msra.mxu1 %v5962_v1  ;;  %v6018_v1 = vcombine.low %v138_v48, %v142_v50  ;;  %v489_v48 = vlaneseq  ;;  %v198_v50 = vld [vmem:[%s9811_s1 + $0x4f8] sm:$0xff] }
 0x13c   :  { %3298 = vmatprep.subr.bf16.mxu1 %v5971_v3  ;;  %v6027_v3 = vcombine.high %v146_v60, %v150_v0 }
 0x13d   :  { %3215 = vmatpush1.bf16.msra.mxu0 %v6216_v2  ;;  %v6272_v2 = vcombine.low %v393_v45, %v397_v47  ;;  %v449_v45 = vld [vmem:[%s9811_s1 + $0xcd0] sm:$0xff] }
 0x13e   :  { %3216 = vmatprep.subr.bf16.mxu0 %v6225_v7  ;;  %v6281_v7 = vcombine.high %v401_v56, %v405_v59  ;;  %v453_v47 = vld [vmem:[%s9811_s1 + $0xcf0] sm:$0xff] }
 0x13f   :  { %3299 = vmatpush1.bf16.msra.mxu1 %v5970_v9  ;;  %v6026_v9 = vcombine.low %v146_v60, %v150_v0  ;;  %v202_v60 = vld [vmem:[%s9811_s1 + $0x518] sm:$0xff] }
 0x140   :  { %3300 = vmatprep.subr.bf16.mxu1 %v5979_v11  ;;  %v6035_v11 = vcombine.high %v154_v6, %v158_v8  ;;  %v206_v0 = vld [vmem:[%s9811_s1 + $0x538] sm:$0xff] }
 0x141   :  { %3217 = vmatpush1.bf16.msra.mxu0 %v6224_v10  ;;  %v6280_v10 = vcombine.low %v401_v56, %v405_v59  ;;  %v457_v56 = vld [vmem:[%s9811_s1 + $0xd10] sm:$0xff] }
 0x142   :  { %3218 = vmatprep.subr.bf16.mxu0 %v6233_v15  ;;  %v6289_v15 = vcombine.high %v409_v4, %v413_v5  ;;  %v461_v59 = vld [vmem:[%s9811_s1 + $0xd30] sm:$0xff] }
 0x143   :  { %3301 = vmatpush1.bf16.msra.mxu1 %v5978_v18  ;;  %v6034_v18 = vcombine.low %v154_v6, %v158_v8  ;;  %v469_v6 = vld [vmem:[%s9811_s1 + $0xd70] sm:$0xff] }
 0x144   :  { %3302 = vmatprep.subr.bf16.mxu1 %v5987_v53  ;;  %v6043_v53 = vcombine.high %v162_v14, %v166_v17 }
 0x145   :  { %3219 = vmatpush1.bf16.msra.mxu0 %v6232_v20  ;;  %v6288_v20 = vcombine.low %v409_v4, %v413_v5  ;;  %v6083_v4 = vcombine.high %v202_v60, %v206_v0  ;;  %v465_v5 = vld [vmem:[%s9811_s1 + $0xd50] sm:$0xff] }
 0x146   :  { %3220 = vmatprep.subr.bf16.mxu0 %v6241_v25  ;;  %v6297_v25 = vcombine.high %v417_v12, %v421_v13 }
 0x147   :  { %3303 = vmatpush1.bf16.msra.mxu1 %v5986_v27  ;;  %v6042_v27 = vcombine.low %v162_v14, %v166_v17  ;;  %v477_v17 = vld [vmem:[%s9811_s1 + $0xdb0] sm:$0xff] }
 0x148   :  { %3304 = vmatprep.subr.bf16.mxu1 %v5995_v29  ;;  %v6051_v29 = vcombine.high %v170_v24, %v174_v54 }
 0x149   :  { %3221 = vmatpush1.bf16.msra.mxu0 %v6240_v28  ;;  %v6296_v28 = vcombine.low %v417_v12, %v421_v13  ;;  %v6082_v12 = vcombine.low %v202_v60, %v206_v0  ;;  %v6336_v13 = vcombine.low %v457_v56, %v461_v59  ;;  %v254_v60 = vld [vmem:[%s9811_s1 + $0x6b8] sm:$0xff] }
 0x14a   :  { %3222 = vmatprep.subr.bf16.mxu0 %v6249_v39  ;;  %v178_v39 = vld [vmem:[%s9811_s1 + $0x458] sm:$0xff] }
 0x14b   :  { %3305 = vmatpush1.bf16.msra.mxu1 %v5994_v35  ;;  %v6050_v35 = vcombine.low %v170_v24, %v174_v54  ;;  %v8597_v0 = vld [vmem:[%s9812_s0 + $0x18] ss:$0 sps:$4 sm:$0xff]  }
 0x14c   :  { %3306 = vmatprep.subr.bf16.mxu1 %v6003_v37  ;;  %v6059_v37 = vcombine.high %v178_v39, %v182_v34 }
 0x14d   :  { %3223 = vmatpush1.bf16.msra.mxu0 %v6248_v36  ;;  %v6304_v36 = vcombine.low %v425_v22, %v429_v23  ;;  %v222_v22 = vld [vmem:[%s9811_s1 + $0x5b8] sm:$0xff] }
 0x14e   :  { %3224 = vmatprep.subr.bf16.mxu0 %v6257_v58  ;;  %v6313_v58 = vcombine.high %v433_v30, %v437_v31 }
 0x14f   :  { %3307 = vmatpush1.bf16.msra.mxu1 %v6002_v42  ;;  %v6058_v42 = vcombine.low %v178_v39, %v182_v34  ;;  %v485_v34 = vld [vmem:[%s9811_s1 + $0xdf0] sm:$0xff] }
 0x150   :  { %3308 = vmatprep.subr.bf16.mxu1 %v6011_v44  ;;  %v6067_v44 = vcombine.high %v186_v40, %v190_v41 }
 0x151   :  { %3225 = vmatpush1.bf16.msra.mxu0 %v6256_v43  ;;  %v6312_v43 = vcombine.low %v433_v30, %v437_v31  ;;  %v230_v31 = vld [vmem:[%s9811_s1 + $0x5f8] sm:$0xff] }
 0x152   :  { %3226 = vmatprep.subr.bf16.mxu0 %v6265_v49  ;;  %v6321_v49 = vcombine.high %v441_v38, %v445_v19 }
 0x153   :  { %3309 = vmatpush1.bf16.msra.mxu1 %v6010_v51  ;;  %v6066_v51 = vcombine.low %v186_v40, %v190_v41 }
 0x154   :  { %3310 = vmatprep.subr.bf16.mxu1 %v6019_v55 }
 0x155   :  { %3227 = vmatpush1.bf16.msra.mxu0 %v6264_v52  ;;  %v6320_v52 = vcombine.low %v441_v38, %v445_v19 }
 0x156   :  { %3228 = vmatprep.subr.bf16.mxu0 %v6273_v63  ;;  %v8505_v63 = vshrl.u32 %v489_v48, 7  ;;  %v242_v48 = vld [vmem:[%s9811_s1 + $0x658] sm:$0xff] }
 0x157   :  { %3311 = vmatpush1.bf16.msra.mxu1 %v6018_v1 }
 0x158   :  { %3312 = vmatprep.subr.bf16.mxu1 %v6027_v3  ;;  %v6328_v3 = vcombine.low %v449_v45, %v453_v47  ;;  %v8525_v8 = vsub.s32 0, %v8505_v63 }
 0x159   :  { %3229 = vmatpush1.bf16.msra.mxu0 %v6272_v2  ;;  %v8513_v2 = vld [vmem:[%s9814_s2] sm:$0xff] }
 0x15a   :  { %3230 = vmatprep.subr.bf16.mxu0 %v6281_v7  ;;  %v210_v7 = vld [vmem:[%s9811_s1 + $0x558] sm:$0xff] }
 0x15b   :  { %3313 = vmatpush1.bf16.msra.mxu1 %v6026_v9  ;;  %v6337_v9 = vcombine.high %v457_v56, %v461_v59  ;;  %v250_v59 = vld [vmem:[%s9811_s1 + $0x698] sm:$0xff] }
 0x15c   :  { %3314 = vmatprep.subr.bf16.mxu1 %v6035_v11  ;;  %v8531_v11 = vsub.s32 1, %v8505_v63 }
 0x15d   :  { %3231 = vmatpush1.bf16.msra.mxu0 %v6280_v10  ;;  %v214_v10 = vld [vmem:[%s9811_s1 + $0x578] sm:$0xff] }
 0x15e   :  { %3232 = vmatprep.subr.bf16.mxu0 %v6289_v15  ;;  %v6091_v14 = vcombine.high %v210_v7, %v214_v10  ;;  %v473_v15 = vld [vmem:[%s9811_s1 + $0xd90] sm:$0xff]  ;;  %v496_v23 = vrot.slane %v8513_v2, %v8531_v11  ;;  %v6090_v24 = vcombine.low %v210_v7, %v214_v10  ;;  %v262_v7 = vld [vmem:[%s9811_s1 + $0x6f8] sm:$0xff] }
 0x15f   :  { %3315 = vmatpush1.bf16.msra.mxu1 %v6034_v18  ;;  %v218_v18 = vld [vmem:[%s9811_s1 + $0x598] sm:$0xff]  ;;  %v6353_v30 = vcombine.high %v473_v15, %v477_v17  ;;  %v6352_v19 = vcombine.low %v473_v15, %v477_v17  ;;  %v6787_v10 = vld [vmem:[%s9813_s3 + $0x40] ss:$16 sps:$4 sm:$0xff]  }
 0x160   :  { %3316 = vmatprep.subr.bf16.mxu1 %v6043_v53  ;;  %v6345_v53 = vcombine.high %v465_v5, %v469_v6  ;;  %v6099_v54 = vcombine.high %v218_v18, %v222_v22  ;;  %v2831_v39 = vadd.f32 %v8246_v62, %v496_v23  ;;  %v234_v62 = vld [vmem:[%s9811_s1 + $0x618] sm:$0xff] }
 0x161   :  { %3233 = vmatpush1.bf16.msra.mxu0 %v6288_v20  ;;  %v492_v20 = vrot.slane %v8513_v2, %v8525_v8  ;;  %v270_v15 = vld [vmem:[%s9811_s1 + $0x738] sm:$0xff] }
 0x162   :  { %3234 = vmatprep.subr.bf16.mxu0 %v6297_v25  ;;  %v6344_v25 = vcombine.low %v465_v5, %v469_v6  ;;  %v6789_v5 = vld [vmem:[%s9813_s3 + $0x44] ss:$16 sps:$4 sm:$0xff]   ;;  %v258_v6 = vld [vmem:[%s9811_s1 + $0x6d8] sm:$0xff] }
 0x163   :  { %3317 = vmatpush1.bf16.msra.mxu1 %v6042_v27  ;;  %v481_v27 = vld [vmem:[%s9811_s1 + $0xdd0] sm:$0xff]  ;;  %v6138_v17 = vcombine.low %v258_v6, %v262_v7  ;;  %v278_v23 = vld [vmem:[%s9811_s1 + $0x778] sm:$0xff] }
 0x164   :  { %3327 = vmatprep.subr.bf16.mxu1 %v6051_v29  ;;  %v2829_v29 = vadd.f32 %v8241_v57, %v492_v20  ;;  %v6361_v41 = vcombine.high %v481_v27, %v485_v34 }
 0x165   :  { %3235 = vmatpush1.bf16.msra.mxu0 %v6296_v28  ;;  %v226_v28 = vld [vmem:[%s9811_s1 + $0x5d8] sm:$0xff] }
 0x166   :  { %3245 = vmatprep.subr.bf16.mxu0 %v6305_v32  ;;  %3319 = vmatmul.mubr.bf16.vlgmr.msra.gmra.mrb[8].mxu1 %v7550_v16  ;;  %v194_v16 = vld [vmem:[%s9811_s1 + $0x4d8] sm:$0xff]  ;;  %v6107_v40 = vcombine.high %v226_v28, %v230_v31 }
 0x167   :  { %3328 = vmatpush1.bf16.msra.mxu1 %v6050_v35  ;;  %3359 = vmatprep.mubr.bf16.mxu1 %v7430_v61  ;;  %v6075_v55 = vcombine.high %v194_v16, %v198_v50  ;;  %v6329_v61 = vcombine.high %v449_v45, %v453_v47  ;;  %v6074_v1 = vcombine.low %v194_v16, %v198_v50  ;;  %v6783_v16 = vld [vmem:[%s9813_s3 + $0x4] ss:$16 sps:$4 sm:$0xff]   ;;  %v6781_v50 = vld [vmem:[%s9813_s3] ss:$16 sps:$4 sm:$0xff]  }
 0x168   :  { %3237 = vmatmul.mubr.bf16.vlgmr.msra.gmra.mrb[4].mxu0 %v7769_v33  ;;  %3329 = vmatprep.subr.bf16.mxu1 %v6059_v37  ;;  %v6098_v37 = vcombine.low %v218_v18, %v222_v22  ;;  %v6360_v45 = vcombine.low %v481_v27, %v485_v34  ;;  %v6790_v18 = vld [vmem:[%s9813_s3 + $0x60] ss:$16 sps:$4 sm:$0xff]   ;;  %v274_v22 = vld [vmem:[%s9811_s1 + $0x758] sm:$0xff]  ;;  %v6798_v27 = vld [vmem:[%s9813_s3 + $0xa4] ss:$16 sps:$4 sm:$0xff]  }
 0x169   :  { %3246 = vmatpush1.bf16.msra.mxu0 %v6304_v36  ;;  %3277 = vmatprep.mubr.bf16.mxu0 %v7267_v46  ;;  %v290_v34 = vld [vmem:[%s9811_s1 + $0x7d8] sm:$0xff] }
 0x16a   :  { %3247 = vmatprep.subr.bf16.mxu0 %v6313_v58 }
 0x16b   :  { %3330 = vmatpush1.bf16.msra.mxu1 %v6058_v42  ;;  %v238_v42 = vld [vmem:[%s9811_s1 + $0x638] sm:$0xff] }
 0x16c   :  { %3331 = vmatprep.subr.bf16.mxu1 %v6067_v44  ;;  %v6106_v44 = vcombine.low %v226_v28, %v230_v31  ;;  %v6115_v47 = vcombine.high %v234_v62, %v238_v42  ;;  %v282_v28 = vld [vmem:[%s9811_s1 + $0x798] sm:$0xff]  ;;  %v6796_v31 = vld [vmem:[%s9813_s3 + $0xa0] ss:$16 sps:$4 sm:$0xff]  }
 0x16d   :  { %3248 = vmatpush1.bf16.msra.mxu0 %v6312_v43 }
 0x16e   :  { %3249 = vmatprep.subr.bf16.mxu0 %v6321_v49  ;;  %v246_v49 = vld [vmem:[%s9811_s1 + $0x678] sm:$0xff] }
 0x16f   :  { %3332 = vmatpush1.bf16.msra.mxu1 %v6066_v51  ;;  %v6114_v51 = vcombine.low %v234_v62, %v238_v42  ;;  %v6123_v56 = vcombine.high %v242_v48, %v246_v49  ;;  %v6802_v62 = vld [vmem:[%s9813_s3 + $0xe0] ss:$16 sps:$4 sm:$0xff]  }
 0x170   :  { %3333 = vmatprep.subr.bf16.mxu1 %v6075_v55  ;;  %v6786_v55 = vld [vmem:[%s9813_s3 + $0x24] ss:$16 sps:$4 sm:$0xff]  }
 0x171   :  { %3250 = vmatpush1.bf16.msra.mxu0 %v6320_v52 }
 0x172   :  { %3251 = vmatprep.subr.bf16.mxu0 %v6329_v61 }
 0x173   :  { %3334 = vmatpush1.bf16.msra.mxu1 %v6074_v1  ;;  %v6122_v1 = vcombine.low %v242_v48, %v246_v49  ;;  %v6810_v49 = vld [vmem:[%s9813_s3 + $0x124] ss:$16 sps:$4 sm:$0xff]  }
 0x174   :  { %3335 = vmatprep.subr.bf16.mxu1 %v6083_v4  ;;  %v6131_v4 = vcombine.high %v250_v59, %v254_v60 }
 0x175   :  { %3252 = vmatpush1.bf16.msra.mxu0 %v6328_v3  ;;  %v6784_v3 = vld [vmem:[%s9813_s3 + $0x20] ss:$16 sps:$4 sm:$0xff]  }
 0x176   :  { %3253 = vmatprep.subr.bf16.mxu0 %v6337_v9  ;;  %v6130_v9 = vcombine.low %v250_v59, %v254_v60  ;;  %v6813_v59 = vld [vmem:[%s9813_s3 + $0x144] ss:$16 sps:$4 sm:$0xff]  }
 0x177   :  { %3336 = vmatpush1.bf16.msra.mxu1 %v6082_v12  ;;  %v6139_v12 = vcombine.high %v258_v6, %v262_v7  ;;  %v334_v6 = vld [vmem:[%s9811_s1 + $0x938] sm:$0xff] }
 0x178   :  { %3337 = vmatprep.subr.bf16.mxu1 %v6091_v14  ;;  %v266_v14 = vld [vmem:[%s9811_s1 + $0x718] sm:$0xff] }
 0x179   :  { %3254 = vmatpush1.bf16.msra.mxu0 %v6336_v13  ;;  %v6792_v13 = vld [vmem:[%s9813_s3 + $0x64] ss:$16 sps:$4 sm:$0xff]   ;;  %v6147_v20 = vcombine.high %v266_v14, %v270_v15 }
 0x17a   :  { %3255 = vmatprep.subr.bf16.mxu0 %v6345_v53  ;;  %v6795_v53 = vld [vmem:[%s9813_s3 + $0x84] ss:$16 sps:$4 sm:$0xff]  }
 0x17b   :  { %v2951_v32 = vpop.f32.mrb[0].mxu0  ;;  %3338 = vmatpush1.bf16.msra.mxu1 %v6090_v24  ;;  %v6146_v24 = vcombine.low %v266_v14, %v270_v15  ;;  %v342_v14 = vld [vmem:[%s9811_s1 + $0x978] sm:$0xff] }
 0x17c   :  { %v8563_v35 = vadd.f32 %v2951_v32, %v2829_v29  ;;  %v2953_v36 = vpop.f32.mrb[1].mxu0  ;;  %3339 = vmatprep.subr.bf16.mxu1 %v6099_v54  ;;  %v6155_v54 = vcombine.high %v274_v22, %v278_v23  ;;  %v286_v29 = vld [vmem:[%s9811_s1 + $0x7b8] sm:$0xff]  ;;  %v6801_v32 = vld [vmem:[%s9813_s3 + $0xc4] ss:$16 sps:$4 sm:$0xff]  }
 0x17d   :  { %v6688_v38 = vadd.f32 %v2953_v36, %v2831_v39  ;;  %v2955_v57 = vpop.f32.mrb[2].mxu0  ;;  %3256 = vmatpush1.bf16.msra.mxu0 %v6344_v25  ;;  %v6793_v25 = vld [vmem:[%s9813_s3 + $0x80] ss:$16 sps:$4 sm:$0xff]   ;;  %v6163_v39 = vcombine.high %v282_v28, %v286_v29  ;;  %v294_v36 = vld [vmem:[%s9811_s1 + $0x7f8] sm:$0xff] }
 0x17e   :  { %v2956_v58 = vpop.f32.mrb[3].mxu0  ;;  %3257 = vmatprep.subr.bf16.mxu0 %v6353_v30  ;;  %v6154_v30 = vcombine.low %v274_v22, %v278_v23  ;;  %v6171_v57 = vcombine.high %v290_v34, %v294_v36  ;;  %v350_v22 = vld [vmem:[%s9811_s1 + $0x9b8] sm:$0xff]  ;;  %vm3450_vm1 = vcmp.gt.f32.partialorder %v8563_v35, 0.0 }
 0x17f   :  { %v3459_v43 = vmul.f32 0.2, %v6688_v38  ;;  %3340 = vmatpush1.bf16.msra.mxu1 %v6098_v37  ;;  %vm3451_vm0 = vcmp.gt.f32.partialorder %v6688_v38, 0.0  ;;  %v6162_v37 = vcombine.low %v282_v28, %v286_v29  ;;  %v302_v58 = vld [vmem:[%s9811_s1 + $0x838] sm:$0xff] }
 0x180   :  { %3341 = vmatprep.subr.bf16.mxu1 %v6107_v40  ;;  %v298_v40 = vld [vmem:[%s9811_s1 + $0x818] sm:$0xff] }
 0x181   :  { %3258 = vmatpush1.bf16.msra.mxu0 %v6352_v19  ;;  %v3467_v52 = vsel %vm3451_vm0, %v6688_v38, %v3459_v43  ;;  %v6799_v38 = vld [vmem:[%s9813_s3 + $0xc0] ss:$16 sps:$4 sm:$0xff]   ;;  %v6804_v19 = vld [vmem:[%s9813_s3 + $0xe4] ss:$16 sps:$4 sm:$0xff]   ;;  %v6179_v42 = vcombine.high %v298_v40, %v302_v58  ;;  %v358_v28 = vld [vmem:[%s9811_s1 + $0x9f8] sm:$0xff] }
 0x182   :  { %3259 = vmatprep.subr.bf16.mxu0 %v6361_v41  ;;  %v8592_v61 = vpack.c.bf16 %v3467_v52, %v3467_v52  ;;  %v6170_v41 = vcombine.low %v290_v34, %v294_v36  ;;  %v6807_v43 = vld [vmem:[%s9813_s3 + $0x104] ss:$16 sps:$4 sm:$0xff]   ;;  %v366_v34 = vld [vmem:[%s9811_s1 + $0xa38] sm:$0xff]  ;;  %v3458_v36 = vmul.f32 0.2, %v8563_v35 }
 0x183   :  { %3342 = vmatpush1.bf16.msra.mxu1 %v6106_v44  ;;  %v306_v44 = vld [vmem:[%s9811_s1 + $0x858] sm:$0xff] }
 0x184   :  { %3343 = vmatprep.subr.bf16.mxu1 %v6115_v47  ;;  %v6178_v47 = vcombine.low %v298_v40, %v302_v58  ;;  %v370_v40 = vld [vmem:[%s9811_s1 + $0xa58] sm:$0xff] }
 0x185   :  { %3260 = vmatpush1.bf16.msra.mxu0 %v6360_v45  ;;  %v310_v45 = vld [vmem:[%s9811_s1 + $0x878] sm:$0xff] }
 0x186   :  { %5040 = vmatprep.subr.bf16.mxu0 %v6783_v16  ;;  %v6805_v16 = vld [vmem:[%s9813_s3 + $0x100] ss:$16 sps:$4 sm:$0xff]   ;;  %v6187_v48 = vcombine.high %v306_v44, %v310_v45  ;;  %v6186_v52 = vcombine.low %v306_v44, %v310_v45  ;;  %v374_v58 = vld [vmem:[%s9811_s1 + $0xa78] sm:$0xff]  ;;  %v6834_v45 = vld [vmem:[%s9813_s3 + $0x224] ss:$16 sps:$4 sm:$0xff]  }
 0x187   :  { %3344 = vmatpush1.bf16.msra.mxu1 %v6114_v51  ;;  %v318_v51 = vld [vmem:[%s9811_s1 + $0x8b8] sm:$0xff] }
 0x188   :  { %3278 = vmatmul.mubr.bf16.vlgmr.msra.gmra.mrb[4].mxu0 %v8597_v0  ;;  %3345 = vmatprep.subr.bf16.mxu1 %v6123_v56 }
 0x189   :  { %5041 = vmatpush1.bf16.msra.mxu0 %v6781_v50  ;;  %5072 = vmatprep.mubr.bf16.mxu0 %v8592_v61  ;;  %v314_v50 = vld [vmem:[%s9811_s1 + $0x898] sm:$0xff] }
 0x18a   :  { %5042 = vmatprep.subr.bf16.mxu0 %v6786_v55  ;;  %v6808_v55 = vld [vmem:[%s9813_s3 + $0x120] ss:$16 sps:$4 sm:$0xff]   ;;  %v6195_v56 = vcombine.high %v314_v50, %v318_v51  ;;  %v6194_v60 = vcombine.low %v314_v50, %v318_v51  ;;  %v6837_v50 = vld [vmem:[%s9813_s3 + $0x244] ss:$16 sps:$4 sm:$0xff]   ;;  %v386_v51 = vld [vmem:[%s9811_s1 + $0xad8] sm:$0xff] }
 0x18b   :  { %3346 = vmatpush1.bf16.msra.mxu1 %v6122_v1  ;;  %v6811_v1 = vld [vmem:[%s9813_s3 + $0x140] ss:$16 sps:$4 sm:$0xff]  }
 0x18c   :  { %3347 = vmatprep.subr.bf16.mxu1 %v6131_v4  ;;  %v6816_v4 = vld [vmem:[%s9813_s3 + $0x164] ss:$16 sps:$4 sm:$0xff]  }
 0x18d   :  { %5043 = vmatpush1.bf16.msra.mxu0 %v6784_v3 }
 0x18e   :  { %5044 = vmatprep.subr.bf16.mxu0 %v6789_v5  ;;  %v330_v5 = vld [vmem:[%s9811_s1 + $0x918] sm:$0xff] }
 0x18f   :  { %3348 = vmatpush1.bf16.msra.mxu1 %v6130_v9  ;;  %v6814_v9 = vld [vmem:[%s9813_s3 + $0x160] ss:$16 sps:$4 sm:$0xff]   ;;  %v6210_v15 = vcombine.low %v330_v5, %v334_v6 }
 0x190   :  { %3349 = vmatprep.subr.bf16.mxu1 %v6139_v12  ;;  %v6819_v12 = vld [vmem:[%s9813_s3 + $0x184] ss:$16 sps:$4 sm:$0xff]  }
 0x191   :  { %5045 = vmatpush1.bf16.msra.mxu0 %v6787_v10  ;;  %v6211_v10 = vcombine.high %v330_v5, %v334_v6  ;;  %v6843_v5 = vld [vmem:[%s9813_s3 + $0x284] ss:$16 sps:$4 sm:$0xff]   ;;  %v402_v6 = vld [vmem:[%s9811_s1 + $0xb58] sm:$0xff] }
 0x192   :  { %5046 = vmatprep.subr.bf16.mxu0 %v6792_v13  ;;  %v338_v13 = vld [vmem:[%s9811_s1 + $0x958] sm:$0xff] }
 0x193   :  { %3350 = vmatpush1.bf16.msra.mxu1 %v6138_v17  ;;  %v6817_v17 = vld [vmem:[%s9813_s3 + $0x180] ss:$16 sps:$4 sm:$0xff]   ;;  %v6218_v23 = vcombine.low %v338_v13, %v342_v14 }
 0x194   :  { %3351 = vmatprep.subr.bf16.mxu1 %v6147_v20  ;;  %v6822_v20 = vld [vmem:[%s9813_s3 + $0x1a4] ss:$16 sps:$4 sm:$0xff]  }
 0x195   :  { %5047 = vmatpush1.bf16.msra.mxu0 %v6790_v18  ;;  %v6219_v18 = vcombine.high %v338_v13, %v342_v14  ;;  %v6846_v13 = vld [vmem:[%s9813_s3 + $0x2a4] ss:$16 sps:$4 sm:$0xff]   ;;  %v410_v14 = vld [vmem:[%s9811_s1 + $0xb98] sm:$0xff] }
 0x196   :  { %5048 = vmatprep.subr.bf16.mxu0 %v6795_v53  ;;  %v346_v53 = vld [vmem:[%s9811_s1 + $0x998] sm:$0xff] }
 0x197   :  { %3352 = vmatpush1.bf16.msra.mxu1 %v6146_v24  ;;  %v6820_v24 = vld [vmem:[%s9813_s3 + $0x1a0] ss:$16 sps:$4 sm:$0xff]   ;;  %v6226_v29 = vcombine.low %v346_v53, %v350_v22 }
 0x198   :  { %3353 = vmatprep.subr.bf16.mxu1 %v6155_v54  ;;  %v6825_v54 = vld [vmem:[%s9813_s3 + $0x1c4] ss:$16 sps:$4 sm:$0xff]  }
 0x199   :  { %5049 = vmatpush1.bf16.msra.mxu0 %v6793_v25  ;;  %v6227_v25 = vcombine.high %v346_v53, %v350_v22  ;;  %v6849_v53 = vld [vmem:[%s9813_s3 + $0x2c4] ss:$16 sps:$4 sm:$0xff]   ;;  %v418_v22 = vld [vmem:[%s9811_s1 + $0xbd8] sm:$0xff] }
 0x19a   :  { %5050 = vmatprep.subr.bf16.mxu0 %v6798_v27  ;;  %v354_v27 = vld [vmem:[%s9811_s1 + $0x9d8] sm:$0xff] }
 0x19b   :  { %3354 = vmatpush1.bf16.msra.mxu1 %v6154_v30  ;;  %v6823_v30 = vld [vmem:[%s9813_s3 + $0x1c0] ss:$16 sps:$4 sm:$0xff]  }
 0x19c   :  { %3355 = vmatprep.subr.bf16.mxu1 %v6163_v39  ;;  %v6828_v39 = vld [vmem:[%s9813_s3 + $0x1e4] ss:$16 sps:$4 sm:$0xff]  }
 0x19d   :  { %5051 = vmatpush1.bf16.msra.mxu0 %v6796_v31  ;;  %v6235_v31 = vcombine.high %v354_v27, %v358_v28 }
 0x19e   :  { %5052 = vmatprep.subr.bf16.mxu0 %v6801_v32  ;;  %v362_v32 = vld [vmem:[%s9811_s1 + $0xa18] sm:$0xff] }
 0x19f   :  { %3356 = vmatpush1.bf16.msra.mxu1 %v6162_v37  ;;  %v6234_v37 = vcombine.low %v354_v27, %v358_v28  ;;  %v6852_v27 = vld [vmem:[%s9813_s3 + $0x2e4] ss:$16 sps:$4 sm:$0xff]   ;;  %v426_v28 = vld [vmem:[%s9811_s1 + $0xc18] sm:$0xff] }
 0x1a0   :  { %3357 = vmatprep.subr.bf16.mxu1 %v6171_v57  ;;  %v6243_v57 = vcombine.high %v362_v32, %v366_v34 }
 0x1a1   :  { %5053 = vmatpush1.bf16.msra.mxu0 %v6799_v38  ;;  %v6826_v38 = vld [vmem:[%s9813_s3 + $0x1e0] ss:$16 sps:$4 sm:$0xff]  }
 0x1a2   :  { %5054 = vmatprep.subr.bf16.mxu0 %v6804_v19  ;;  %v6831_v19 = vld [vmem:[%s9813_s3 + $0x204] ss:$16 sps:$4 sm:$0xff]  }
 0x1a3   :  { %3358 = vmatpush1.bf16.msra.mxu1 %v6170_v41  ;;  %v3466_v41 = vsel %vm3450_vm1, %v8563_v35, %v3458_v36  ;;  %v378_v35 = vld [vmem:[%s9811_s1 + $0xa98] sm:$0xff] }
 0x1a4   :  { %3368 = vmatprep.subr.bf16.mxu1 %v6179_v42  ;;  %v6829_v42 = vld [vmem:[%s9813_s3 + $0x200] ss:$16 sps:$4 sm:$0xff]   ;;  %v8789_v44 = vpack.c.bf16 %v3466_v41, %v3466_v41  ;;  %v438_v36 = vld [vmem:[%s9811_s1 + $0xc78] sm:$0xff] }
 0x1a5   :  { %5055 = vmatpush1.bf16.msra.mxu0 %v6802_v62  ;;  %v6242_v62 = vcombine.low %v362_v32, %v366_v34  ;;  %v6855_v32 = vld [vmem:[%s9813_s3 + $0x304] ss:$16 sps:$4 sm:$0xff]   ;;  %v434_v34 = vld [vmem:[%s9811_s1 + $0xc58] sm:$0xff] }
 0x1a6   :  { %5056 = vmatprep.subr.bf16.mxu0 %v6807_v43  ;;  %3360 = vmatmul.mubr.bf16.vlgmr.msra.gmra.mrb[8].mxu1 %v7565_v21  ;;  %v322_v21 = vld [vmem:[%s9811_s1 + $0x8d8] sm:$0xff]  ;;  %v6251_v43 = vcombine.high %v370_v40, %v374_v58  ;;  %v6314_v41 = vcombine.low %v434_v34, %v438_v36 }
 0x1a7   :  { %3369 = vmatpush1.bf16.msra.mxu1 %v6178_v47  ;;  %3400 = vmatprep.mubr.bf16.mxu1 %v7575_v26  ;;  %v326_v26 = vld [vmem:[%s9811_s1 + $0x8f8] sm:$0xff] }
 0x1a8   :  { %3370 = vmatprep.subr.bf16.mxu1 %v6187_v48  ;;  %v6203_v3 = vcombine.high %v322_v21, %v326_v26  ;;  %v6202_v7 = vcombine.low %v322_v21, %v326_v26  ;;  %v382_v47 = vld [vmem:[%s9811_s1 + $0xab8] sm:$0xff]  ;;  %v6832_v48 = vld [vmem:[%s9813_s3 + $0x220] ss:$16 sps:$4 sm:$0xff]   ;;  %v6840_v21 = vld [vmem:[%s9813_s3 + $0x264] ss:$16 sps:$4 sm:$0xff]  }
 0x1a9   :  { %5057 = vmatpush1.bf16.msra.mxu0 %v6805_v16  ;;  %v6250_v16 = vcombine.low %v370_v40, %v374_v58  ;;  %v394_v26 = vld [vmem:[%s9811_s1 + $0xb18] sm:$0xff] }
 0x1aa   :  { %5058 = vmatprep.subr.bf16.mxu0 %v6810_v49  ;;  %v6259_v49 = vcombine.high %v378_v35, %v382_v47  ;;  %v442_v40 = vld [vmem:[%s9811_s1 + $0xc98] sm:$0xff] }
 0x1ab   :  { %3371 = vmatpush1.bf16.msra.mxu1 %v6186_v52  ;;  %v390_v52 = vld [vmem:[%s9811_s1 + $0xaf8] sm:$0xff] }
 0x1ac   :  { %3372 = vmatprep.subr.bf16.mxu1 %v6195_v56  ;;  %v6835_v56 = vld [vmem:[%s9813_s3 + $0x240] ss:$16 sps:$4 sm:$0xff]   ;;  %v446_v58 = vld [vmem:[%s9811_s1 + $0xcb8] sm:$0xff] }
 0x1ad   :  { %5059 = vmatpush1.bf16.msra.mxu0 %v6808_v55  ;;  %v6258_v55 = vcombine.low %v378_v35, %v382_v47  ;;  %v6859_v35 = vld [vmem:[%s9813_s3 + $0x340] ss:$16 sps:$4 sm:$0xff]  }
 0x1ae   :  { %5060 = vmatprep.subr.bf16.mxu0 %v6813_v59  ;;  %v6267_v59 = vcombine.high %v386_v51, %v390_v52 }
 0x1af   :  { %3373 = vmatpush1.bf16.msra.mxu1 %v6194_v60  ;;  %v398_v60 = vld [vmem:[%s9811_s1 + $0xb38] sm:$0xff] }
 0x1b0   :  { %3374 = vmatprep.subr.bf16.mxu1 %v6203_v3  ;;  %v6838_v3 = vld [vmem:[%s9813_s3 + $0x260] ss:$16 sps:$4 sm:$0xff]  }
 0x1b1   :  { %5061 = vmatpush1.bf16.msra.mxu0 %v6811_v1  ;;  %v6266_v1 = vcombine.low %v386_v51, %v390_v52  ;;  %v6862_v51 = vld [vmem:[%s9813_s3 + $0x360] ss:$16 sps:$4 sm:$0xff]  }
 0x1b2   :  { %5062 = vmatprep.subr.bf16.mxu0 %v6816_v4  ;;  %v6275_v4 = vcombine.high %v394_v26, %v398_v60 }
 0x1b3   :  { %3375 = vmatpush1.bf16.msra.mxu1 %v6202_v7  ;;  %v406_v7 = vld [vmem:[%s9811_s1 + $0xb78] sm:$0xff] }
 0x1b4   :  { %3376 = vmatprep.subr.bf16.mxu1 %v6211_v10  ;;  %v6841_v10 = vld [vmem:[%s9813_s3 + $0x280] ss:$16 sps:$4 sm:$0xff]  }
 0x1b5   :  { %5063 = vmatpush1.bf16.msra.mxu0 %v6814_v9  ;;  %v6274_v9 = vcombine.low %v394_v26, %v398_v60  ;;  %v503_v60 = vsub.s32 3, %v8505_v63 }
 0x1b6   :  { %5064 = vmatprep.subr.bf16.mxu0 %v6819_v12  ;;  %v6283_v12 = vcombine.high %v402_v6, %v406_v7 }
 0x1b7   :  { %3377 = vmatpush1.bf16.msra.mxu1 %v6210_v15  ;;  %v414_v15 = vld [vmem:[%s9811_s1 + $0xbb8] sm:$0xff] }
 0x1b8   :  { %3378 = vmatprep.subr.bf16.mxu1 %v6219_v18  ;;  %v6844_v18 = vld [vmem:[%s9813_s3 + $0x2a0] ss:$16 sps:$4 sm:$0xff]  }
 0x1b9   :  { %5065 = vmatpush1.bf16.msra.mxu0 %v6817_v17  ;;  %v6282_v17 = vcombine.low %v402_v6, %v406_v7  ;;  %v478_v6 = vld [vmem:[%s9811_s1 + $0xdb8] sm:$0xff] }
 0x1ba   :  { %5066 = vmatprep.subr.bf16.mxu0 %v6822_v20  ;;  %v6291_v20 = vcombine.high %v410_v14, %v414_v15 }
 0x1bb   :  { %3379 = vmatpush1.bf16.msra.mxu1 %v6218_v23  ;;  %v422_v23 = vld [vmem:[%s9811_s1 + $0xbf8] sm:$0xff] }
 0x1bc   :  { %3380 = vmatprep.subr.bf16.mxu1 %v6227_v25  ;;  %v6847_v25 = vld [vmem:[%s9813_s3 + $0x2c0] ss:$16 sps:$4 sm:$0xff]  }
 0x1bd   :  { %5067 = vmatpush1.bf16.msra.mxu0 %v6820_v24  ;;  %v6290_v24 = vcombine.low %v410_v14, %v414_v15  ;;  %v6873_v15 = vld [vmem:[%s9813_s3 + $0x3c4] ss:$16 sps:$4 sm:$0xff]  }
 0x1be   :  { %5068 = vmatprep.subr.bf16.mxu0 %v6825_v54  ;;  %v6299_v54 = vcombine.high %v418_v22, %v422_v23 }
 0x1bf   :  { %3381 = vmatpush1.bf16.msra.mxu1 %v6226_v29  ;;  %v430_v29 = vld [vmem:[%s9811_s1 + $0xc38] sm:$0xff] }
 0x1c0   :  { %3382 = vmatprep.subr.bf16.mxu1 %v6235_v31  ;;  %v6850_v31 = vld [vmem:[%s9813_s3 + $0x2e0] ss:$16 sps:$4 sm:$0xff]  }
 0x1c1   :  { %5069 = vmatpush1.bf16.msra.mxu0 %v6823_v30  ;;  %v6298_v30 = vcombine.low %v418_v22, %v422_v23 }
 0x1c2   :  { %5070 = vmatprep.subr.bf16.mxu0 %v6828_v39  ;;  %v6307_v39 = vcombine.high %v426_v28, %v430_v29 }
 0x1c3   :  { %3383 = vmatpush1.bf16.msra.mxu1 %v6234_v37  ;;  %v6306_v37 = vcombine.low %v426_v28, %v430_v29  ;;  %v6876_v28 = vld [vmem:[%s9813_s3 + $0x3e4] ss:$16 sps:$4 sm:$0xff]  }
 0x1c4   :  { %3384 = vmatprep.subr.bf16.mxu1 %v6243_v57  ;;  %v6315_v57 = vcombine.high %v434_v34, %v438_v36  ;;  %v6879_v34 = vld [vmem:[%s9813_s3 + $0xc] ss:$16 sps:$4 sm:$0xff]   ;;  %v6903_v36 = vld [vmem:[%s9813_s3 + $0x404] ss:$16 sps:$4 sm:$0xff]  }
 0x1c5   :  { %5071 = vmatpush1.bf16.msra.mxu0 %v6826_v38  ;;  %v6853_v38 = vld [vmem:[%s9813_s3 + $0x300] ss:$16 sps:$4 sm:$0xff]  }
 0x1c6   :  { %5081 = vmatprep.subr.bf16.mxu0 %v6831_v19  ;;  %v6858_v19 = vld [vmem:[%s9813_s3 + $0x324] ss:$16 sps:$4 sm:$0xff]  }
 0x1c7   :  { %3385 = vmatpush1.bf16.msra.mxu1 %v6242_v62  ;;  %v6856_v62 = vld [vmem:[%s9813_s3 + $0x320] ss:$16 sps:$4 sm:$0xff]  }
 0x1c8   :  { %5073 = vmatmul.mubr.bf16.vlgmr.msra.gmra.mrb[8].mxu0 %v8789_v44  ;;  %3386 = vmatprep.subr.bf16.mxu1 %v6251_v43  ;;  %v6861_v43 = vld [vmem:[%s9813_s3 + $0x344] ss:$16 sps:$4 sm:$0xff]  }
 0x1c9   :  { %5082 = vmatpush1.bf16.msra.mxu0 %v6829_v42  ;;  %v6323_v42 = vcombine.high %v442_v40, %v446_v58 }
 0x1ca   :  { %5083 = vmatprep.subr.bf16.mxu0 %v6834_v45  ;;  %v6322_v45 = vcombine.low %v442_v40, %v446_v58  ;;  %v6901_v40 = vld [vmem:[%s9813_s3 + $0x400] ss:$16 sps:$4 sm:$0xff]   ;;  %v6909_v58 = vld [vmem:[%s9813_s3 + $0x424] ss:$16 sps:$4 sm:$0xff]  }
 0x1cb   :  { %3387 = vmatpush1.bf16.msra.mxu1 %v6250_v16  ;;  %v6864_v16 = vld [vmem:[%s9813_s3 + $0x364] ss:$16 sps:$4 sm:$0xff]  }
 0x1cc   :  { %3388 = vmatprep.subr.bf16.mxu1 %v6259_v49  ;;  %v462_v49 = vld [vmem:[%s9811_s1 + $0xd38] sm:$0xff] }
 0x1cd   :  { %5084 = vmatpush1.bf16.msra.mxu0 %v6832_v48  ;;  %v458_v48 = vld [vmem:[%s9811_s1 + $0xd18] sm:$0xff] }
 0x1ce   :  { %5085 = vmatprep.subr.bf16.mxu0 %v6837_v50  ;;  %v6339_v52 = vcombine.high %v458_v48, %v462_v49  ;;  %v6338_v26 = vcombine.low %v458_v48, %v462_v49  ;;  %v6889_v48 = vld [vmem:[%s9813_s3 + $0x88] ss:$16 sps:$4 sm:$0xff]   ;;  %v6894_v49 = vld [vmem:[%s9813_s3 + $0xac] ss:$16 sps:$4 sm:$0xff]  }
 0x1cf   :  { %3389 = vmatpush1.bf16.msra.mxu1 %v6258_v55  ;;  %v6867_v55 = vld [vmem:[%s9813_s3 + $0x384] ss:$16 sps:$4 sm:$0xff]  }
 0x1d0   :  { %3390 = vmatprep.subr.bf16.mxu1 %v6267_v59  ;;  %v470_v59 = vld [vmem:[%s9811_s1 + $0xd78] sm:$0xff] }
 0x1d1   :  { %5086 = vmatpush1.bf16.msra.mxu0 %v6835_v56  ;;  %v466_v56 = vld [vmem:[%s9811_s1 + $0xd58] sm:$0xff] }
 0x1d2   :  { %5087 = vmatprep.subr.bf16.mxu0 %v6840_v21  ;;  %v499_v21 = vsub.s32 2, %v8505_v63 }
 0x1d3   :  { %3391 = vmatpush1.bf16.msra.mxu1 %v6266_v1  ;;  %v6865_v1 = vld [vmem:[%s9813_s3 + $0x380] ss:$16 sps:$4 sm:$0xff]  }
 0x1d4   :  { %3392 = vmatprep.subr.bf16.mxu1 %v6275_v4  ;;  %v6870_v4 = vld [vmem:[%s9813_s3 + $0x3a4] ss:$16 sps:$4 sm:$0xff]   ;;  %v500_v7 = vrot.slane %v8513_v2, %v499_v21 }
 0x1d5   :  { %5088 = vmatpush1.bf16.msra.mxu0 %v6838_v3  ;;  %v6347_v3 = vcombine.high %v466_v56, %v470_v59 }
 0x1d6   :  { %5089 = vmatprep.subr.bf16.mxu0 %v6843_v5  ;;  %v474_v5 = vld [vmem:[%s9811_s1 + $0xd98] sm:$0xff] }
 0x1d7   :  { %3393 = vmatpush1.bf16.msra.mxu1 %v6274_v9  ;;  %v504_v9 = vrot.slane %v8513_v2, %v503_v60  ;;  %v486_v2 = vld [vmem:[%s9811_s1 + $0xdf8] sm:$0xff]  ;;  %v6354_v23 = vcombine.low %v474_v5, %v478_v6 }
 0x1d8   :  { %3394 = vmatprep.subr.bf16.mxu1 %v6283_v12  ;;  %v6868_v12 = vld [vmem:[%s9813_s3 + $0x3a0] ss:$16 sps:$4 sm:$0xff]  }
 0x1d9   :  { %5090 = vmatpush1.bf16.msra.mxu0 %v6841_v10  ;;  %v6346_v10 = vcombine.low %v466_v56, %v470_v59  ;;  %v6931_v56 = vld [vmem:[%s9813_s3 + $0x4a0] ss:$16 sps:$4 sm:$0xff]   ;;  %v6939_v59 = vld [vmem:[%s9813_s3 + $0x4c4] ss:$16 sps:$4 sm:$0xff]  }
 0x1da   :  { %5091 = vmatprep.subr.bf16.mxu0 %v6846_v13  ;;  %v6355_v13 = vcombine.high %v474_v5, %v478_v6  ;;  %v6898_v5 = vld [vmem:[%s9813_s3 + $0xe8] ss:$16 sps:$4 sm:$0xff]   ;;  %v6906_v6 = vld [vmem:[%s9813_s3 + $0x10c] ss:$16 sps:$4 sm:$0xff]  }
 0x1db   :  { %3395 = vmatpush1.bf16.msra.mxu1 %v6282_v17  ;;  %v482_v17 = vld [vmem:[%s9811_s1 + $0xdd8] sm:$0xff] }
 0x1dc   :  { %3396 = vmatprep.subr.bf16.mxu1 %v6291_v20 }
 0x1dd   :  { %5092 = vmatpush1.bf16.msra.mxu0 %v6844_v18 }
 0x1de   :  { %5093 = vmatprep.subr.bf16.mxu0 %v6849_v53 }
 0x1df   :  { %3397 = vmatpush1.bf16.msra.mxu1 %v6290_v24 }
 0x1e0   :  { %3398 = vmatprep.subr.bf16.mxu1 %v6299_v54  ;;  %v6363_v54 = vcombine.high %v482_v17, %v486_v2 }
 0x1e1   :  { %5094 = vmatpush1.bf16.msra.mxu0 %v6847_v25  ;;  %v6871_v25 = vld [vmem:[%s9813_s3 + $0x3c0] ss:$16 sps:$4 sm:$0xff]  }
 0x1e2   :  { %5095 = vmatprep.subr.bf16.mxu0 %v6852_v27 }
 0x1e3   :  { %3399 = vmatpush1.bf16.msra.mxu1 %v6298_v30  ;;  %v6362_v30 = vcombine.low %v482_v17, %v486_v2  ;;  %v6918_v17 = vld [vmem:[%s9813_s3 + $0x14c] ss:$16 sps:$4 sm:$0xff]   ;;  %v6955_v2 = vld [vmem:[%s9813_s3 + $0x520] ss:$16 sps:$4 sm:$0xff]  }
 0x1e4   :  { %3409 = vmatprep.subr.bf16.mxu1 %v6307_v39  ;;  %v6874_v39 = vld [vmem:[%s9813_s3 + $0x3e0] ss:$16 sps:$4 sm:$0xff]  }
 0x1e5   :  { %5096 = vmatpush1.bf16.msra.mxu0 %v6850_v31 }
 0x1e6   :  { %5097 = vmatprep.subr.bf16.mxu0 %v6855_v32  ;;  %3401 = vmatmul.mubr.bf16.vlgmr.msra.gmra.mrb[8].mxu1 %v7769_v33  ;;  %v450_v33 = vld [vmem:[%s9811_s1 + $0xcd8] sm:$0xff] }
 0x1e7   :  { %3410 = vmatpush1.bf16.msra.mxu1 %v6306_v37  ;;  %3441 = vmatprep.mubr.bf16.mxu1 %v7267_v46  ;;  %v454_v46 = vld [vmem:[%s9811_s1 + $0xcf8] sm:$0xff] }
 0x1e8   :  { %3411 = vmatprep.subr.bf16.mxu1 %v6315_v57  ;;  %v6331_v47 = vcombine.high %v450_v33, %v454_v46  ;;  %v6330_v50 = vcombine.low %v450_v33, %v454_v46  ;;  %v6882_v57 = vld [vmem:[%s9813_s3 + $0x2c] ss:$16 sps:$4 sm:$0xff]   ;;  %v6913_v33 = vld [vmem:[%s9813_s3 + $0x440] ss:$16 sps:$4 sm:$0xff]   ;;  %v6921_v46 = vld [vmem:[%s9813_s3 + $0x464] ss:$16 sps:$4 sm:$0xff]  }
 0x1e9   :  { %5098 = vmatpush1.bf16.msra.mxu0 %v6853_v38  ;;  %v6877_v38 = vld [vmem:[%s9813_s3 + $0x8] ss:$16 sps:$4 sm:$0xff]  }
 0x1ea   :  { %5099 = vmatprep.subr.bf16.mxu0 %v6858_v19 }
 0x1eb   :  { %3412 = vmatpush1.bf16.msra.mxu1 %v6314_v41  ;;  %v6880_v41 = vld [vmem:[%s9813_s3 + $0x28] ss:$16 sps:$4 sm:$0xff]  }
 0x1ec   :  { %3413 = vmatprep.subr.bf16.mxu1 %v6323_v42  ;;  %v6915_v42 = vld [vmem:[%s9813_s3 + $0x444] ss:$16 sps:$4 sm:$0xff]  }
 0x1ed   :  { %5100 = vmatpush1.bf16.msra.mxu0 %v6856_v62  ;;  %v6885_v62 = vld [vmem:[%s9813_s3 + $0x4c] ss:$16 sps:$4 sm:$0xff]  }
 0x1ee   :  { %5101 = vmatprep.subr.bf16.mxu0 %v6861_v43  ;;  %v6888_v43 = vld [vmem:[%s9813_s3 + $0x6c] ss:$16 sps:$4 sm:$0xff]  }
 0x1ef   :  { %3414 = vmatpush1.bf16.msra.mxu1 %v6322_v45  ;;  %v6886_v45 = vld [vmem:[%s9813_s3 + $0x68] ss:$16 sps:$4 sm:$0xff]  }
 0x1f0   :  { %3415 = vmatprep.subr.bf16.mxu1 %v6331_v47  ;;  %v6919_v47 = vld [vmem:[%s9813_s3 + $0x460] ss:$16 sps:$4 sm:$0xff]  }
 0x1f1   :  { %5102 = vmatpush1.bf16.msra.mxu0 %v6859_v35  ;;  %v6891_v35 = vld [vmem:[%s9813_s3 + $0x8c] ss:$16 sps:$4 sm:$0xff]  }
 0x1f2   :  { %5103 = vmatprep.subr.bf16.mxu0 %v6864_v16  ;;  %v6927_v16 = vld [vmem:[%s9813_s3 + $0x484] ss:$16 sps:$4 sm:$0xff]  }
 0x1f3   :  { %3416 = vmatpush1.bf16.msra.mxu1 %v6330_v50  ;;  %v6925_v50 = vld [vmem:[%s9813_s3 + $0x480] ss:$16 sps:$4 sm:$0xff]  }
 0x1f4   :  { %3417 = vmatprep.subr.bf16.mxu1 %v6339_v52  ;;  %v6892_v52 = vld [vmem:[%s9813_s3 + $0xa8] ss:$16 sps:$4 sm:$0xff]  }
 0x1f5   :  { %5104 = vmatpush1.bf16.msra.mxu0 %v6862_v51  ;;  %v6933_v51 = vld [vmem:[%s9813_s3 + $0x4a4] ss:$16 sps:$4 sm:$0xff]  }
 0x1f6   :  { %5105 = vmatprep.subr.bf16.mxu0 %v6867_v55  ;;  %v6897_v55 = vld [vmem:[%s9813_s3 + $0xcc] ss:$16 sps:$4 sm:$0xff]  }
 0x1f7   :  { %3418 = vmatpush1.bf16.msra.mxu1 %v6338_v26  ;;  %v6895_v26 = vld [vmem:[%s9813_s3 + $0xc8] ss:$16 sps:$4 sm:$0xff]  }
 0x1f8   :  { %3419 = vmatprep.subr.bf16.mxu1 %v6347_v3  ;;  %v6937_v3 = vld [vmem:[%s9813_s3 + $0x4c0] ss:$16 sps:$4 sm:$0xff]  }
 0x1f9   :  { %5106 = vmatpush1.bf16.msra.mxu0 %v6865_v1  ;;  %v3115_v14 = vpop.f32.mrb[4].mxu1  ;;  %v6900_v1 = vld [vmem:[%s9813_s3 + $0xec] ss:$16 sps:$4 sm:$0xff]  }
 0x1fa   :  { %5107 = vmatprep.subr.bf16.mxu0 %v6870_v4  ;;  %v6689_v18 = vadd.f32 %v3115_v14, %v500_v7  ;;  %v3117_v20 = vpop.f32.mrb[5].mxu1  ;;  %v6945_v4 = vld [vmem:[%s9813_s3 + $0x4e4] ss:$16 sps:$4 sm:$0xff]   ;;  %v6943_v7 = vld [vmem:[%s9813_s3 + $0x4e0] ss:$16 sps:$4 sm:$0xff]  }
 0x1fb   :  { %v6690_v53 = vadd.f32 %v3117_v20, %v504_v9  ;;  %v3119_v22 = vpop.f32.mrb[6].mxu1  ;;  %3420 = vmatpush1.bf16.msra.mxu1 %v6346_v10  ;;  %v6951_v9 = vld [vmem:[%s9813_s3 + $0x504] ss:$16 sps:$4 sm:$0xff]   ;;  %v6904_v10 = vld [vmem:[%s9813_s3 + $0x108] ss:$16 sps:$4 sm:$0xff]  }
 0x1fc   :  { %v3120_v24 = vpop.f32.mrb[7].mxu1  ;;  %3421 = vmatprep.subr.bf16.mxu1 %v6355_v13  ;;  %v3460_v29 = vmul.f32 0.2, %v6689_v18  ;;  %vm3452_vm3 = vcmp.gt.f32.partialorder %v6689_v18, 0.0  ;;  %v6949_v13 = vld [vmem:[%s9813_s3 + $0x500] ss:$16 sps:$4 sm:$0xff]  }
 0x1fd   :  { %5108 = vmatpush1.bf16.msra.mxu0 %v6868_v12  ;;  %vm3453_vm2 = vcmp.gt.f32.partialorder %v6690_v53, 0.0  ;;  %v3461_v27 = vmul.f32 0.2, %v6690_v53  ;;  %v6912_v12 = vld [vmem:[%s9813_s3 + $0x12c] ss:$16 sps:$4 sm:$0xff]  }
 0x1fe   :  { %5109 = vmatprep.subr.bf16.mxu0 %v6873_v15  ;;  %v3468_v37 = vsel %vm3452_vm3, %v6689_v18, %v3460_v29  ;;  %v6957_v14 = vld [vmem:[%s9813_s3 + $0x524] ss:$16 sps:$4 sm:$0xff]   ;;  %v6910_v15 = vld [vmem:[%s9813_s3 + $0x128] ss:$16 sps:$4 sm:$0xff]   ;;  %v6961_v22 = vld [vmem:[%s9813_s3 + $0x540] ss:$16 sps:$4 sm:$0xff]  }
 0x1ff   :  { %3422 = vmatpush1.bf16.msra.mxu1 %v6354_v23  ;;  %v3469_v31 = vsel %vm3453_vm2, %v6690_v53, %v3461_v27  ;;  %v8991_v19 = vpack.c.bf16 %v3468_v37, %v3468_v37  ;;  %v6963_v18 = vld [vmem:[%s9813_s3 + $0x544] ss:$16 sps:$4 sm:$0xff]   ;;  %v6916_v20 = vld [vmem:[%s9813_s3 + $0x148] ss:$16 sps:$4 sm:$0xff]   ;;  %v6924_v53 = vld [vmem:[%s9813_s3 + $0x16c] ss:$16 sps:$4 sm:$0xff]  }
 0x200   :  { %3423 = vmatprep.subr.bf16.mxu1 %v6363_v54  ;;  %v8976_v32 = vpack.c.bf16 %v3469_v31, %v3469_v31  ;;  %v6969_v23 = vld [vmem:[%s9813_s3 + $0x564] ss:$16 sps:$4 sm:$0xff]   ;;  %v6922_v24 = vld [vmem:[%s9813_s3 + $0x168] ss:$16 sps:$4 sm:$0xff]   ;;  %v6967_v54 = vld [vmem:[%s9813_s3 + $0x560] ss:$16 sps:$4 sm:$0xff]  }
 0x201   :  { %5110 = vmatpush1.bf16.msra.mxu0 %v6871_v25  ;;  %v6930_v25 = vld [vmem:[%s9813_s3 + $0x18c] ss:$16 sps:$4 sm:$0xff]   ;;  %v6975_v27 = vld [vmem:[%s9813_s3 + $0x584] ss:$16 sps:$4 sm:$0xff]  }
 0x202   :  { %5111 = vmatprep.subr.bf16.mxu0 %v6876_v28  ;;  %5113 = vmatprep.mubr.bf16.mxu0 %v8976_v32  ;;  %v6928_v28 = vld [vmem:[%s9813_s3 + $0x188] ss:$16 sps:$4 sm:$0xff]   ;;  %v6936_v29 = vld [vmem:[%s9813_s3 + $0x1ac] ss:$16 sps:$4 sm:$0xff]   ;;  %v6981_v31 = vld [vmem:[%s9813_s3 + $0x5a4] ss:$16 sps:$4 sm:$0xff]  }
 0x203   :  { %3424 = vmatpush1.bf16.msra.mxu1 %v6362_v30  ;;  %v6973_v30 = vld [vmem:[%s9813_s3 + $0x580] ss:$16 sps:$4 sm:$0xff]   ;;  %v6987_v37 = vld [vmem:[%s9813_s3 + $0x5c4] ss:$16 sps:$4 sm:$0xff]  }
 0x204   :  { %5204 = vmatprep.subr.bf16.mxu1 %v6879_v34  ;;  %v6942_v34 = vld [vmem:[%s9813_s3 + $0x1cc] ss:$16 sps:$4 sm:$0xff]  }
 0x205   :  { %5112 = vmatpush1.bf16.msra.mxu0 %v6874_v39  ;;  %v6934_v39 = vld [vmem:[%s9813_s3 + $0x1a8] ss:$16 sps:$4 sm:$0xff]  }
 0x206   :  { %5122 = vmatprep.subr.bf16.mxu0 %v6903_v36  ;;  %3442 = vmatmul.mubr.bf16.vlgmr.msra.gmra.mrb[8].mxu1 %v8597_v0  ;;  %v6907_v0 = vld [vmem:[%s9813_s3 + $0x420] ss:$16 sps:$4 sm:$0xff]  }
 0x207   :  { %5205 = vmatpush1.bf16.msra.mxu1 %v6877_v38  ;;  %5236 = vmatprep.mubr.bf16.mxu1 %v8592_v61  ;;  %v6883_v61 = vld [vmem:[%s9813_s3 + $0x48] ss:$16 sps:$4 sm:$0xff]   ;;  %v6979_v36 = vld [vmem:[%s9813_s3 + $0x5a0] ss:$16 sps:$4 sm:$0xff]  }
 0x208   :  { %5114 = vmatmul.mubr.bf16.vlgmr.msra.gmra.mrb[8].mxu0 %v8991_v19  ;;  %5206 = vmatprep.subr.bf16.mxu1 %v6882_v57  ;;  %v6940_v38 = vld [vmem:[%s9813_s3 + $0x1c8] ss:$16 sps:$4 sm:$0xff]   ;;  %v6948_v57 = vld [vmem:[%s9813_s3 + $0x1ec] ss:$16 sps:$4 sm:$0xff]  }
 0x209   :  { %5123 = vmatpush1.bf16.msra.mxu0 %v6901_v40  ;;  %v6985_v40 = vld [vmem:[%s9813_s3 + $0x5c0] ss:$16 sps:$4 sm:$0xff]  }
 0x20a   :  { %5124 = vmatprep.subr.bf16.mxu0 %v6909_v58  ;;  %v6993_v58 = vld [vmem:[%s9813_s3 + $0x5e4] ss:$16 sps:$4 sm:$0xff]  }
 0x20b   :  { %5207 = vmatpush1.bf16.msra.mxu1 %v6880_v41  ;;  %v6946_v41 = vld [vmem:[%s9813_s3 + $0x1e8] ss:$16 sps:$4 sm:$0xff]  }
 0x20c   :  { %5208 = vmatprep.subr.bf16.mxu1 %v6885_v62  ;;  %v6954_v62 = vld [vmem:[%s9813_s3 + $0x20c] ss:$16 sps:$4 sm:$0xff]  }
 0x20d   :  { %5125 = vmatpush1.bf16.msra.mxu0 %v6907_v0  ;;  %v6991_v0 = vld [vmem:[%s9813_s3 + $0x5e0] ss:$16 sps:$4 sm:$0xff]  }
 0x20e   :  { %5126 = vmatprep.subr.bf16.mxu0 %v6915_v42  ;;  %v7047_v42 = vld [vmem:[%s9813_s3 + $0x604] ss:$16 sps:$4 sm:$0xff]  }
 0x20f   :  { %5209 = vmatpush1.bf16.msra.mxu1 %v6883_v61  ;;  %v6952_v61 = vld [vmem:[%s9813_s3 + $0x208] ss:$16 sps:$4 sm:$0xff]  }
 0x210   :  { %5210 = vmatprep.subr.bf16.mxu1 %v6888_v43  ;;  %v6960_v43 = vld [vmem:[%s9813_s3 + $0x22c] ss:$16 sps:$4 sm:$0xff]  }
 0x211   :  { %5127 = vmatpush1.bf16.msra.mxu0 %v6913_v33  ;;  %v6958_v33 = vld [vmem:[%s9813_s3 + $0x228] ss:$16 sps:$4 sm:$0xff]  }
 0x212   :  { %5128 = vmatprep.subr.bf16.mxu0 %v6921_v46  ;;  %v6966_v46 = vld [vmem:[%s9813_s3 + $0x24c] ss:$16 sps:$4 sm:$0xff]  }
 0x213   :  { %5211 = vmatpush1.bf16.msra.mxu1 %v6886_v45  ;;  %v6964_v45 = vld [vmem:[%s9813_s3 + $0x248] ss:$16 sps:$4 sm:$0xff]  }
 0x214   :  { %5212 = vmatprep.subr.bf16.mxu1 %v6891_v35  ;;  %v6978_v35 = vld [vmem:[%s9813_s3 + $0x28c] ss:$16 sps:$4 sm:$0xff]  }
 0x215   :  { %5129 = vmatpush1.bf16.msra.mxu0 %v6919_v47  ;;  %v6976_v47 = vld [vmem:[%s9813_s3 + $0x288] ss:$16 sps:$4 sm:$0xff]  }
 0x216   :  { %5130 = vmatprep.subr.bf16.mxu0 %v6927_v16  ;;  %v507_v16 = vsub.s32 4, %v8505_v63 }
 0x217   :  { %5213 = vmatpush1.bf16.msra.mxu1 %v6889_v48  ;;  %v511_v48 = vsub.s32 5, %v8505_v63 }
 0x218   :  { %5214 = vmatprep.subr.bf16.mxu1 %v6894_v49  ;;  %v6984_v49 = vld [vmem:[%s9813_s3 + $0x2ac] ss:$16 sps:$4 sm:$0xff]  }
 0x219   :  { %5131 = vmatpush1.bf16.msra.mxu0 %v6925_v50  ;;  %v9219_v50 = vld [vmem:[%s9814_s2] sm:$0xff] }
 0x21a   :  { %5132 = vmatprep.subr.bf16.mxu0 %v6933_v51  ;;  %v508_v51 = vrot.slane %v9219_v50, %v507_v16  ;;  %v7021_v16 = vld [vmem:[%s9813_s3 + $0x408] ss:$16 sps:$4 sm:$0xff]  }
 0x21b   :  { %5215 = vmatpush1.bf16.msra.mxu1 %v6892_v52  ;;  %v6982_v52 = vld [vmem:[%s9813_s3 + $0x2a8] ss:$16 sps:$4 sm:$0xff]  }
 0x21c   :  { %5216 = vmatprep.subr.bf16.mxu1 %v6897_v55  ;;  %v512_v55 = vrot.slane %v9219_v50, %v511_v48  ;;  %v7026_v48 = vld [vmem:[%s9813_s3 + $0x42c] ss:$16 sps:$4 sm:$0xff]  }
 0x21d   :  { %5133 = vmatpush1.bf16.msra.mxu0 %v6931_v56  ;;  %v6990_v56 = vld [vmem:[%s9813_s3 + $0x2cc] ss:$16 sps:$4 sm:$0xff]  }
 0x21e   :  { %5134 = vmatprep.subr.bf16.mxu0 %v6939_v59 }
 0x21f   :  { %5217 = vmatpush1.bf16.msra.mxu1 %v6895_v26 }
 0x220   :  { %5218 = vmatprep.subr.bf16.mxu1 %v6900_v1 }
 0x221   :  { %5135 = vmatpush1.bf16.msra.mxu0 %v6937_v3  ;;  %v6988_v3 = vld [vmem:[%s9813_s3 + $0x2c8] ss:$16 sps:$4 sm:$0xff]  }
 0x222   :  { %5136 = vmatprep.subr.bf16.mxu0 %v6945_v4 }
 0x223   :  { %5219 = vmatpush1.bf16.msra.mxu1 %v6898_v5 }
 0x224   :  { %5220 = vmatprep.subr.bf16.mxu1 %v6906_v6  ;;  %v6996_v6 = vld [vmem:[%s9813_s3 + $0x2ec] ss:$16 sps:$4 sm:$0xff]  }
 0x225   :  { %5137 = vmatpush1.bf16.msra.mxu0 %v6943_v7 }
 0x226   :  { %5138 = vmatprep.subr.bf16.mxu0 %v6951_v9 }
 0x227   :  { %5221 = vmatpush1.bf16.msra.mxu1 %v6904_v10 }
 0x228   :  { %5222 = vmatprep.subr.bf16.mxu1 %v6912_v12 }
 0x229   :  { %5139 = vmatpush1.bf16.msra.mxu0 %v6949_v13  ;;  %v6994_v13 = vld [vmem:[%s9813_s3 + $0x2e8] ss:$16 sps:$4 sm:$0xff]  }
 0x22a   :  { %5140 = vmatprep.subr.bf16.mxu0 %v6957_v14 }
 0x22b   :  { %5223 = vmatpush1.bf16.msra.mxu1 %v6910_v15  ;;  %v6999_v15 = vld [vmem:[%s9813_s3 + $0x30c] ss:$16 sps:$4 sm:$0xff]  }
 0x22c   :  { %5224 = vmatprep.subr.bf16.mxu1 %v6918_v17 }
 0x22d   :  { %5141 = vmatpush1.bf16.msra.mxu0 %v6955_v2  ;;  %v7045_v2 = vld [vmem:[%s9813_s3 + $0x600] ss:$16 sps:$4 sm:$0xff]  }
 0x22e   :  { %5142 = vmatprep.subr.bf16.mxu0 %v6963_v18 }
 0x22f   :  { %5225 = vmatpush1.bf16.msra.mxu1 %v6916_v20  ;;  %v7053_v20 = vld [vmem:[%s9813_s3 + $0x624] ss:$16 sps:$4 sm:$0xff]  }
 0x230   :  { %5226 = vmatprep.subr.bf16.mxu1 %v6924_v53  ;;  %v6997_v53 = vld [vmem:[%s9813_s3 + $0x308] ss:$16 sps:$4 sm:$0xff]  }
 0x231   :  { %5143 = vmatpush1.bf16.msra.mxu0 %v6961_v22  ;;  %v7002_v22 = vld [vmem:[%s9813_s3 + $0x32c] ss:$16 sps:$4 sm:$0xff]  }
 0x232   :  { %5144 = vmatprep.subr.bf16.mxu0 %v6969_v23  ;;  %v7051_v23 = vld [vmem:[%s9813_s3 + $0x620] ss:$16 sps:$4 sm:$0xff]  }
 0x233   :  { %5227 = vmatpush1.bf16.msra.mxu1 %v6922_v24  ;;  %v7059_v24 = vld [vmem:[%s9813_s3 + $0x644] ss:$16 sps:$4 sm:$0xff]  }
 0x234   :  { %5228 = vmatprep.subr.bf16.mxu1 %v6930_v25  ;;  %v7000_v25 = vld [vmem:[%s9813_s3 + $0x328] ss:$16 sps:$4 sm:$0xff]  }
 0x235   :  { %5145 = vmatpush1.bf16.msra.mxu0 %v6967_v54  ;;  %v7005_v54 = vld [vmem:[%s9813_s3 + $0x34c] ss:$16 sps:$4 sm:$0xff]  }
 0x236   :  { %5146 = vmatprep.subr.bf16.mxu0 %v6975_v27  ;;  %v7057_v27 = vld [vmem:[%s9813_s3 + $0x640] ss:$16 sps:$4 sm:$0xff]  }
 0x237   :  { %5229 = vmatpush1.bf16.msra.mxu1 %v6928_v28  ;;  %v7065_v28 = vld [vmem:[%s9813_s3 + $0x664] ss:$16 sps:$4 sm:$0xff]  }
 0x238   :  { %5230 = vmatprep.subr.bf16.mxu1 %v6936_v29  ;;  %v7003_v29 = vld [vmem:[%s9813_s3 + $0x348] ss:$16 sps:$4 sm:$0xff]  }
 0x239   :  { %5147 = vmatpush1.bf16.msra.mxu0 %v6973_v30  ;;  %v7008_v30 = vld [vmem:[%s9813_s3 + $0x36c] ss:$16 sps:$4 sm:$0xff]  }
 0x23a   :  { %5148 = vmatprep.subr.bf16.mxu0 %v6981_v31  ;;  %v7063_v31 = vld [vmem:[%s9813_s3 + $0x660] ss:$16 sps:$4 sm:$0xff]  }
 0x23b   :  { %5231 = vmatpush1.bf16.msra.mxu1 %v6934_v39  ;;  %v7071_v39 = vld [vmem:[%s9813_s3 + $0x684] ss:$16 sps:$4 sm:$0xff]  }
 0x23c   :  { %5232 = vmatprep.subr.bf16.mxu1 %v6942_v34  ;;  %v7006_v34 = vld [vmem:[%s9813_s3 + $0x368] ss:$16 sps:$4 sm:$0xff]  }
 0x23d   :  { %5149 = vmatpush1.bf16.msra.mxu0 %v6979_v36  ;;  %v7011_v36 = vld [vmem:[%s9813_s3 + $0x38c] ss:$16 sps:$4 sm:$0xff]  }
 0x23e   :  { %5150 = vmatprep.subr.bf16.mxu0 %v6987_v37  ;;  %v7069_v37 = vld [vmem:[%s9813_s3 + $0x680] ss:$16 sps:$4 sm:$0xff]  }
 0x23f   :  { %5233 = vmatpush1.bf16.msra.mxu1 %v6940_v38  ;;  %v7077_v38 = vld [vmem:[%s9813_s3 + $0x6a4] ss:$16 sps:$4 sm:$0xff]  }
 0x240   :  { %5234 = vmatprep.subr.bf16.mxu1 %v6948_v57  ;;  %v7009_v57 = vld [vmem:[%s9813_s3 + $0x388] ss:$16 sps:$4 sm:$0xff]  }
 0x241   :  { %5151 = vmatpush1.bf16.msra.mxu0 %v6985_v40  ;;  %v7014_v40 = vld [vmem:[%s9813_s3 + $0x3ac] ss:$16 sps:$4 sm:$0xff]  }
 0x242   :  { %5152 = vmatprep.subr.bf16.mxu0 %v6993_v58  ;;  %v7075_v58 = vld [vmem:[%s9813_s3 + $0x6a0] ss:$16 sps:$4 sm:$0xff]  }
 0x243   :  { %5235 = vmatpush1.bf16.msra.mxu1 %v6946_v41  ;;  %v7083_v41 = vld [vmem:[%s9813_s3 + $0x6c4] ss:$16 sps:$4 sm:$0xff]  }
 0x244   :  { %5245 = vmatprep.subr.bf16.mxu1 %v6954_v62  ;;  %v7012_v62 = vld [vmem:[%s9813_s3 + $0x3a8] ss:$16 sps:$4 sm:$0xff]  }
 0x245   :  { %5153 = vmatpush1.bf16.msra.mxu0 %v6991_v0  ;;  %v7017_v0 = vld [vmem:[%s9813_s3 + $0x3cc] ss:$16 sps:$4 sm:$0xff]  }
 0x246   :  { %5237 = vmatmul.mubr.bf16.vlgmr.msra.gmra.mrb[12].mxu1 %v8789_v44  ;;  %5163 = vmatprep.subr.bf16.mxu0 %v7047_v42  ;;  %v6972_v44 = vld [vmem:[%s9813_s3 + $0x26c] ss:$16 sps:$4 sm:$0xff]   ;;  %v7081_v42 = vld [vmem:[%s9813_s3 + $0x6c0] ss:$16 sps:$4 sm:$0xff]  }
 0x247   :  { %5246 = vmatpush1.bf16.msra.mxu1 %v6952_v61  ;;  %5277 = vmatprep.mubr.bf16.mxu1 %v8976_v32  ;;  %v6970_v32 = vld [vmem:[%s9813_s3 + $0x268] ss:$16 sps:$4 sm:$0xff]   ;;  %v7089_v61 = vld [vmem:[%s9813_s3 + $0x6e4] ss:$16 sps:$4 sm:$0xff]  }
 0x248   :  { %5247 = vmatprep.subr.bf16.mxu1 %v6960_v43  ;;  %v7015_v43 = vld [vmem:[%s9813_s3 + $0x3c8] ss:$16 sps:$4 sm:$0xff]  }
 0x24b   :  { %5248 = vmatpush1.bf16.msra.mxu1 %v6958_v33  ;;  %v7020_v33 = vld [vmem:[%s9813_s3 + $0x3ec] ss:$16 sps:$4 sm:$0xff]  }
 0x24c   :  { %5249 = vmatprep.subr.bf16.mxu1 %v6966_v46  ;;  %v7087_v46 = vld [vmem:[%s9813_s3 + $0x6e0] ss:$16 sps:$4 sm:$0xff]  }
 0x24f   :  { %5250 = vmatpush1.bf16.msra.mxu1 %v6964_v45  ;;  %v7095_v45 = vld [vmem:[%s9813_s3 + $0x704] ss:$16 sps:$4 sm:$0xff]  }
 0x250   :  { %5251 = vmatprep.subr.bf16.mxu1 %v6972_v44  ;;  %v7018_v44 = vld [vmem:[%s9813_s3 + $0x3e8] ss:$16 sps:$4 sm:$0xff]  }
 0x253   :  { %5252 = vmatpush1.bf16.msra.mxu1 %v6970_v32  ;;  %v7023_v32 = vld [vmem:[%s9813_s3 + $0x40c] ss:$16 sps:$4 sm:$0xff]  }
 0x254   :  { %5253 = vmatprep.subr.bf16.mxu1 %v6978_v35  ;;  %v7093_v35 = vld [vmem:[%s9813_s3 + $0x700] ss:$16 sps:$4 sm:$0xff]  }
 0x257   :  { %5254 = vmatpush1.bf16.msra.mxu1 %v6976_v47  ;;  %v7101_v47 = vld [vmem:[%s9813_s3 + $0x724] ss:$16 sps:$4 sm:$0xff]  }
 0x258   :  { %5255 = vmatprep.subr.bf16.mxu1 %v6984_v49  ;;  %v7099_v49 = vld [vmem:[%s9813_s3 + $0x720] ss:$16 sps:$4 sm:$0xff]  }
 0x25b   :  { %v3279_v59 = vpop.f32.mrb[4].mxu0  ;;  %5256 = vmatpush1.bf16.msra.mxu1 %v6982_v52  ;;  %v7024_v52 = vld [vmem:[%s9813_s3 + $0x428] ss:$16 sps:$4 sm:$0xff]  }
 0x25c   :  { %v6691_v26 = vadd.f32 %v3279_v59, %v508_v51  ;;  %v3281_v1 = vpop.f32.mrb[5].mxu0  ;;  %5257 = vmatprep.subr.bf16.mxu1 %v6990_v56  ;;  %v7107_v51 = vld [vmem:[%s9813_s3 + $0x744] ss:$16 sps:$4 sm:$0xff]   ;;  %v7027_v59 = vld [vmem:[%s9813_s3 + $0x448] ss:$16 sps:$4 sm:$0xff]  }
 0x25d   :  { %v6692_v4 = vadd.f32 %v3281_v1, %v512_v55  ;;  %v3283_v5 = vpop.f32.mrb[6].mxu0  ;;  %v7029_v55 = vld [vmem:[%s9813_s3 + $0x44c] ss:$16 sps:$4 sm:$0xff]   ;;  %v7113_v56 = vld [vmem:[%s9813_s3 + $0x764] ss:$16 sps:$4 sm:$0xff]  }
 0x25e   :  { %vm3454_vm4 = vcmp.gt.f32.partialorder %v6691_v26, 0.0  ;;  %v3462_v7 = vmul.f32 0.2, %v6691_v26  ;;  %v3284_v9 = vpop.f32.mrb[7].mxu0  ;;  %v7111_v1 = vld [vmem:[%s9813_s3 + $0x760] ss:$16 sps:$4 sm:$0xff]  }
 0x25f   :  { %vm3455_vm5 = vcmp.gt.f32.partialorder %v6692_v4, 0.0  ;;  %v3463_v10 = vmul.f32 0.2, %v6692_v4  ;;  %5258 = vmatpush1.bf16.msra.mxu1 %v6988_v3  ;;  %v7119_v3 = vld [vmem:[%s9813_s3 + $0x784] ss:$16 sps:$4 sm:$0xff]  }
 0x260   :  { %v3470_v12 = vsel %vm3454_vm4, %v6691_v26, %v3462_v7  ;;  %5259 = vmatprep.subr.bf16.mxu1 %v6996_v6  ;;  %v7032_v26 = vld [vmem:[%s9813_s3 + $0x46c] ss:$16 sps:$4 sm:$0xff]   ;;  %v7117_v6 = vld [vmem:[%s9813_s3 + $0x780] ss:$16 sps:$4 sm:$0xff]   ;;  %v7125_v7 = vld [vmem:[%s9813_s3 + $0x7a4] ss:$16 sps:$4 sm:$0xff]  }
 0x261   :  { %v3471_v14 = vsel %vm3455_vm5, %v6692_v4, %v3463_v10  ;;  %v9246_v18 = vpack.c.bf16 %v3470_v12, %v3470_v12  ;;  %v7030_v4 = vld [vmem:[%s9813_s3 + $0x468] ss:$16 sps:$4 sm:$0xff]   ;;  %v7035_v5 = vld [vmem:[%s9813_s3 + $0x48c] ss:$16 sps:$4 sm:$0xff]   ;;  %v7123_v12 = vld [vmem:[%s9813_s3 + $0x7a0] ss:$16 sps:$4 sm:$0xff]  }
 0x262   :  { %v9241_v17 = vpack.c.bf16 %v3471_v14, %v3471_v14  ;;  %v7033_v9 = vld [vmem:[%s9813_s3 + $0x488] ss:$16 sps:$4 sm:$0xff]   ;;  %v7038_v10 = vld [vmem:[%s9813_s3 + $0x4ac] ss:$16 sps:$4 sm:$0xff]  }
 0x263   :  { %5260 = vmatpush1.bf16.msra.mxu1 %v6994_v13  ;;  %v7131_v13 = vld [vmem:[%s9813_s3 + $0x7c4] ss:$16 sps:$4 sm:$0xff]   ;;  %v7036_v14 = vld [vmem:[%s9813_s3 + $0x4a8] ss:$16 sps:$4 sm:$0xff]  }
 0x264   :  { %5154 = vmatprep.mubr.bf16.mxu0 %v9241_v17  ;;  %5261 = vmatprep.subr.bf16.mxu1 %v6999_v15  ;;  %v7041_v15 = vld [vmem:[%s9813_s3 + $0x4cc] ss:$16 sps:$4 sm:$0xff]  }
 0x265   :  { %5155 = vmatmul.mubr.bf16.vlgmr.msra.gmra.mrb[8].mxu0 %v9246_v18 }
 0x266   :  { %5164 = vmatpush1.bf16.msra.mxu0 %v7045_v2  ;;  %v7129_v2 = vld [vmem:[%s9813_s3 + $0x7c0] ss:$16 sps:$4 sm:$0xff]  }
 0x267   :  { %5165 = vmatprep.subr.bf16.mxu0 %v7053_v20  ;;  %5262 = vmatpush1.bf16.msra.mxu1 %v6997_v53  ;;  %v7137_v20 = vld [vmem:[%s9813_s3 + $0x7e4] ss:$16 sps:$4 sm:$0xff]   ;;  %v7044_v53 = vld [vmem:[%s9813_s3 + $0x4ec] ss:$16 sps:$4 sm:$0xff]  }
 0x268   :  { %5263 = vmatprep.subr.bf16.mxu1 %v7002_v22  ;;  %v7135_v22 = vld [vmem:[%s9813_s3 + $0x7e0] ss:$16 sps:$4 sm:$0xff]  }
 0x26a   :  { %5166 = vmatpush1.bf16.msra.mxu0 %v7051_v23  ;;  %v7167_v23 = vld [vmem:[%s9815_s5 + $0x4] ss:$8 sps:$4 sm:$0xff]  }
 0x26b   :  { %5167 = vmatprep.subr.bf16.mxu0 %v7059_v24  ;;  %5264 = vmatpush1.bf16.msra.mxu1 %v7000_v25  ;;  %v7042_v24 = vld [vmem:[%s9813_s3 + $0x4e8] ss:$16 sps:$4 sm:$0xff]   ;;  %v7050_v25 = vld [vmem:[%s9813_s3 + $0x50c] ss:$16 sps:$4 sm:$0xff]  }
 0x26c   :  { %5265 = vmatprep.subr.bf16.mxu1 %v7005_v54  ;;  %v7048_v54 = vld [vmem:[%s9813_s3 + $0x508] ss:$16 sps:$4 sm:$0xff]  }
 0x26e   :  { %5168 = vmatpush1.bf16.msra.mxu0 %v7057_v27  ;;  %v7056_v27 = vld [vmem:[%s9813_s3 + $0x52c] ss:$16 sps:$4 sm:$0xff]  }
 0x26f   :  { %5169 = vmatprep.subr.bf16.mxu0 %v7065_v28  ;;  %5266 = vmatpush1.bf16.msra.mxu1 %v7003_v29  ;;  %v7054_v28 = vld [vmem:[%s9813_s3 + $0x528] ss:$16 sps:$4 sm:$0xff]   ;;  %v7062_v29 = vld [vmem:[%s9813_s3 + $0x54c] ss:$16 sps:$4 sm:$0xff]  }
 0x270   :  { %5267 = vmatprep.subr.bf16.mxu1 %v7008_v30  ;;  %v7060_v30 = vld [vmem:[%s9813_s3 + $0x548] ss:$16 sps:$4 sm:$0xff]  }
 0x272   :  { %5170 = vmatpush1.bf16.msra.mxu0 %v7063_v31  ;;  %v7068_v31 = vld [vmem:[%s9813_s3 + $0x56c] ss:$16 sps:$4 sm:$0xff]  }
 0x273   :  { %5171 = vmatprep.subr.bf16.mxu0 %v7071_v39  ;;  %5268 = vmatpush1.bf16.msra.mxu1 %v7006_v34  ;;  %v7066_v39 = vld [vmem:[%s9813_s3 + $0x568] ss:$16 sps:$4 sm:$0xff]   ;;  %v7074_v34 = vld [vmem:[%s9813_s3 + $0x58c] ss:$16 sps:$4 sm:$0xff]  }
 0x274   :  { %5269 = vmatprep.subr.bf16.mxu1 %v7011_v36  ;;  %v7072_v36 = vld [vmem:[%s9813_s3 + $0x588] ss:$16 sps:$4 sm:$0xff]  }
 0x276   :  { %5172 = vmatpush1.bf16.msra.mxu0 %v7069_v37  ;;  %v7080_v37 = vld [vmem:[%s9813_s3 + $0x5ac] ss:$16 sps:$4 sm:$0xff]  }
 0x277   :  { %5173 = vmatprep.subr.bf16.mxu0 %v7077_v38  ;;  %5270 = vmatpush1.bf16.msra.mxu1 %v7009_v57  ;;  %v7078_v38 = vld [vmem:[%s9813_s3 + $0x5a8] ss:$16 sps:$4 sm:$0xff]   ;;  %v7086_v57 = vld [vmem:[%s9813_s3 + $0x5cc] ss:$16 sps:$4 sm:$0xff]  }
 0x278   :  { %5271 = vmatprep.subr.bf16.mxu1 %v7014_v40  ;;  %v7084_v40 = vld [vmem:[%s9813_s3 + $0x5c8] ss:$16 sps:$4 sm:$0xff]  }
 0x27a   :  { %5174 = vmatpush1.bf16.msra.mxu0 %v7075_v58  ;;  %v7092_v58 = vld [vmem:[%s9813_s3 + $0x5ec] ss:$16 sps:$4 sm:$0xff]  }
 0x27b   :  { %5175 = vmatprep.subr.bf16.mxu0 %v7083_v41  ;;  %5272 = vmatpush1.bf16.msra.mxu1 %v7012_v62  ;;  %v7090_v41 = vld [vmem:[%s9813_s3 + $0x5e8] ss:$16 sps:$4 sm:$0xff]   ;;  %v7098_v62 = vld [vmem:[%s9813_s3 + $0x60c] ss:$16 sps:$4 sm:$0xff]  }
 0x27c   :  { %5273 = vmatprep.subr.bf16.mxu1 %v7017_v0  ;;  %v7096_v0 = vld [vmem:[%s9813_s3 + $0x608] ss:$16 sps:$4 sm:$0xff]  }
 0x27e   :  { %5176 = vmatpush1.bf16.msra.mxu0 %v7081_v42  ;;  %v7104_v42 = vld [vmem:[%s9813_s3 + $0x62c] ss:$16 sps:$4 sm:$0xff]  }
 0x27f   :  { %5177 = vmatprep.subr.bf16.mxu0 %v7089_v61  ;;  %5274 = vmatpush1.bf16.msra.mxu1 %v7015_v43  ;;  %v7102_v61 = vld [vmem:[%s9813_s3 + $0x628] ss:$16 sps:$4 sm:$0xff]   ;;  %v7110_v43 = vld [vmem:[%s9813_s3 + $0x64c] ss:$16 sps:$4 sm:$0xff]  }
 0x280   :  { %5275 = vmatprep.subr.bf16.mxu1 %v7020_v33  ;;  %v7108_v33 = vld [vmem:[%s9813_s3 + $0x648] ss:$16 sps:$4 sm:$0xff]  }
 0x282   :  { %5178 = vmatpush1.bf16.msra.mxu0 %v7087_v46  ;;  %v7114_v46 = vld [vmem:[%s9813_s3 + $0x668] ss:$16 sps:$4 sm:$0xff]  }
 0x283   :  { %5179 = vmatprep.subr.bf16.mxu0 %v7095_v45  ;;  %5276 = vmatpush1.bf16.msra.mxu1 %v7018_v44  ;;  %v7122_v45 = vld [vmem:[%s9813_s3 + $0x68c] ss:$16 sps:$4 sm:$0xff]   ;;  %v515_v44 = vsub.s32 6, %v8505_v63 }
 0x284   :  { %5286 = vmatprep.subr.bf16.mxu1 %v7023_v32  ;;  %v7120_v32 = vld [vmem:[%s9813_s3 + $0x688] ss:$16 sps:$4 sm:$0xff]  }
 0x286   :  { %5180 = vmatpush1.bf16.msra.mxu0 %v7093_v35  ;;  %5278 = vmatmul.mubr.bf16.vlgmr.msra.gmra.mrb[12].mxu1 %v8991_v19  ;;  %v7105_v19 = vld [vmem:[%s9813_s3 + $0x740] ss:$16 sps:$4 sm:$0xff]   ;;  %v519_v35 = vsub.s32 7, %v8505_v63  ;;  %v7260_v63 = vld [vmem:[%s9815_s5 + $0x1f4] ss:$8 sps:$4 sm:$0xff]  }
 0x287   :  { %5181 = vmatprep.subr.bf16.mxu0 %v7101_v47  ;;  %5287 = vmatpush1.bf16.msra.mxu1 %v7021_v16  ;;  %v7128_v47 = vld [vmem:[%s9813_s3 + $0x6ac] ss:$16 sps:$4 sm:$0xff]   ;;  %v516_v16 = vrot.slane %v9219_v50, %v515_v44  ;;  %v7195_v44 = vld [vmem:[%s9815_s5 + $0xa0] ss:$8 sps:$4 sm:$0xff]  }
 0x288   :  { %5318 = vmatprep.mubr.bf16.mxu1 %v9241_v17  ;;  %5288 = vmatprep.subr.bf16.mxu1 %v7026_v48  ;;  %v7039_v17 = vld [vmem:[%s9813_s3 + $0x4c8] ss:$16 sps:$4 sm:$0xff]   ;;  %v520_v48 = vrot.slane %v9219_v50, %v519_v35 }
 0x289   :  { %v7198_v35 = vld [vmem:[%s9815_s5 + $0xb0] ss:$8 sps:$4 sm:$0xff]  }
 0x28a   :  { %5182 = vmatpush1.bf16.msra.mxu0 %v7099_v49  ;;  %v7126_v49 = vld [vmem:[%s9813_s3 + $0x6a8] ss:$16 sps:$4 sm:$0xff]  }
 0x28b   :  { %5183 = vmatprep.subr.bf16.mxu0 %v7107_v51  ;;  %5289 = vmatpush1.bf16.msra.mxu1 %v7024_v52  ;;  %v7134_v51 = vld [vmem:[%s9813_s3 + $0x6cc] ss:$16 sps:$4 sm:$0xff]  }
 0x28c   :  { %5290 = vmatprep.subr.bf16.mxu1 %v7029_v55 }
 0x28e   :  { %5184 = vmatpush1.bf16.msra.mxu0 %v7105_v19 }
 0x28f   :  { %5185 = vmatprep.subr.bf16.mxu0 %v7113_v56  ;;  %5291 = vmatpush1.bf16.msra.mxu1 %v7027_v59 }
 0x290   :  { %5292 = vmatprep.subr.bf16.mxu1 %v7032_v26  ;;  %v7132_v26 = vld [vmem:[%s9813_s3 + $0x6c8] ss:$16 sps:$4 sm:$0xff]  }
 0x292   :  { %5186 = vmatpush1.bf16.msra.mxu0 %v7111_v1 }
 0x293   :  { %5187 = vmatprep.subr.bf16.mxu0 %v7119_v3  ;;  %5293 = vmatpush1.bf16.msra.mxu1 %v7030_v4  ;;  %v7140_v3 = vld [vmem:[%s9813_s3 + $0x6ec] ss:$16 sps:$4 sm:$0xff]  }
 0x294   :  { %5294 = vmatprep.subr.bf16.mxu1 %v7035_v5 }
 0x296   :  { %5188 = vmatpush1.bf16.msra.mxu0 %v7117_v6 }
 0x297   :  { %5189 = vmatprep.subr.bf16.mxu0 %v7125_v7  ;;  %5295 = vmatpush1.bf16.msra.mxu1 %v7033_v9  ;;  %v7138_v7 = vld [vmem:[%s9813_s3 + $0x6e8] ss:$16 sps:$4 sm:$0xff]  }
 0x298   :  { %5296 = vmatprep.subr.bf16.mxu1 %v7038_v10  ;;  %v7143_v10 = vld [vmem:[%s9813_s3 + $0x70c] ss:$16 sps:$4 sm:$0xff]  }
 0x29a   :  { %5190 = vmatpush1.bf16.msra.mxu0 %v7123_v12  ;;  %v7165_v12 = vld [vmem:[%s9815_s5] ss:$8 sps:$4 sm:$0xff]  }
 0x29b   :  { %5191 = vmatprep.subr.bf16.mxu0 %v7131_v13  ;;  %5297 = vmatpush1.bf16.msra.mxu1 %v7036_v14  ;;  %v7170_v14 = vld [vmem:[%s9815_s5 + $0x14] ss:$8 sps:$4 sm:$0xff]  }
 0x29c   :  { %5298 = vmatprep.subr.bf16.mxu1 %v7041_v15  ;;  %v7141_v15 = vld [vmem:[%s9813_s3 + $0x708] ss:$16 sps:$4 sm:$0xff]  }
 0x29e   :  { %5192 = vmatpush1.bf16.msra.mxu0 %v7129_v2  ;;  %v7168_v2 = vld [vmem:[%s9815_s5 + $0x10] ss:$8 sps:$4 sm:$0xff]  }
 0x29f   :  { %5193 = vmatprep.subr.bf16.mxu0 %v7137_v20  ;;  %5299 = vmatpush1.bf16.msra.mxu1 %v7039_v17  ;;  %v7146_v17 = vld [vmem:[%s9813_s3 + $0x72c] ss:$16 sps:$4 sm:$0xff]  }
 0x2a0   :  { %5300 = vmatprep.subr.bf16.mxu1 %v7044_v53  ;;  %v7173_v20 = vld [vmem:[%s9815_s5 + $0x24] ss:$8 sps:$4 sm:$0xff]   ;;  %v7144_v53 = vld [vmem:[%s9813_s3 + $0x728] ss:$16 sps:$4 sm:$0xff]  }
 0x2a2   :  { %5194 = vmatpush1.bf16.msra.mxu0 %v7135_v22  ;;  %v7149_v22 = vld [vmem:[%s9813_s3 + $0x74c] ss:$16 sps:$4 sm:$0xff]  }
 0x2a3   :  { %5780 = vmatprep.subr.bf16.mxu0 %v7167_v23  ;;  %5301 = vmatpush1.bf16.msra.mxu1 %v7042_v24  ;;  %v7171_v23 = vld [vmem:[%s9815_s5 + $0x20] ss:$8 sps:$4 sm:$0xff]   ;;  %v7176_v24 = vld [vmem:[%s9815_s5 + $0x34] ss:$8 sps:$4 sm:$0xff]  }
 0x2a4   :  { %5302 = vmatprep.subr.bf16.mxu1 %v7050_v25  ;;  %v7147_v25 = vld [vmem:[%s9813_s3 + $0x748] ss:$16 sps:$4 sm:$0xff]  }
 0x2a7   :  { %5303 = vmatpush1.bf16.msra.mxu1 %v7048_v54  ;;  %v7152_v54 = vld [vmem:[%s9813_s3 + $0x76c] ss:$16 sps:$4 sm:$0xff]  }
 0x2a8   :  { %5304 = vmatprep.subr.bf16.mxu1 %v7056_v27  ;;  %v7174_v27 = vld [vmem:[%s9815_s5 + $0x30] ss:$8 sps:$4 sm:$0xff]  }
 0x2ab   :  { %5305 = vmatpush1.bf16.msra.mxu1 %v7054_v28  ;;  %v7179_v28 = vld [vmem:[%s9815_s5 + $0x44] ss:$8 sps:$4 sm:$0xff]  }
 0x2ac   :  { %5306 = vmatprep.subr.bf16.mxu1 %v7062_v29  ;;  %v7150_v29 = vld [vmem:[%s9813_s3 + $0x768] ss:$16 sps:$4 sm:$0xff]  }
 0x2af   :  { %5307 = vmatpush1.bf16.msra.mxu1 %v7060_v30  ;;  %v7155_v30 = vld [vmem:[%s9813_s3 + $0x78c] ss:$16 sps:$4 sm:$0xff]  }
 0x2b0   :  { %5308 = vmatprep.subr.bf16.mxu1 %v7068_v31  ;;  %v7177_v31 = vld [vmem:[%s9815_s5 + $0x40] ss:$8 sps:$4 sm:$0xff]  }
 0x2b3   :  { %5309 = vmatpush1.bf16.msra.mxu1 %v7066_v39  ;;  %v7182_v39 = vld [vmem:[%s9815_s5 + $0x54] ss:$8 sps:$4 sm:$0xff]  }
 0x2b4   :  { %5310 = vmatprep.subr.bf16.mxu1 %v7074_v34  ;;  %v7153_v34 = vld [vmem:[%s9813_s3 + $0x788] ss:$16 sps:$4 sm:$0xff]  }
 0x2b7   :  { %5311 = vmatpush1.bf16.msra.mxu1 %v7072_v36  ;;  %v7158_v36 = vld [vmem:[%s9813_s3 + $0x7ac] ss:$16 sps:$4 sm:$0xff]  }
 0x2b8   :  { %5312 = vmatprep.subr.bf16.mxu1 %v7080_v37  ;;  %v7180_v37 = vld [vmem:[%s9815_s5 + $0x50] ss:$8 sps:$4 sm:$0xff]  }
 0x2bb   :  { %5313 = vmatpush1.bf16.msra.mxu1 %v7078_v38  ;;  %v7185_v38 = vld [vmem:[%s9815_s5 + $0x64] ss:$8 sps:$4 sm:$0xff]  }
 0x2bc   :  { %5314 = vmatprep.subr.bf16.mxu1 %v7086_v57  ;;  %v7156_v57 = vld [vmem:[%s9813_s3 + $0x7a8] ss:$16 sps:$4 sm:$0xff]  }
 0x2bf   :  { %5315 = vmatpush1.bf16.msra.mxu1 %v7084_v40  ;;  %v7161_v40 = vld [vmem:[%s9813_s3 + $0x7cc] ss:$16 sps:$4 sm:$0xff]  }
 0x2c0   :  { %5316 = vmatprep.subr.bf16.mxu1 %v7092_v58  ;;  %v7183_v58 = vld [vmem:[%s9815_s5 + $0x60] ss:$8 sps:$4 sm:$0xff]  }
 0x2c3   :  { %5317 = vmatpush1.bf16.msra.mxu1 %v7090_v41  ;;  %v7188_v41 = vld [vmem:[%s9815_s5 + $0x74] ss:$8 sps:$4 sm:$0xff]  }
 0x2c4   :  { %5327 = vmatprep.subr.bf16.mxu1 %v7098_v62  ;;  %v7159_v62 = vld [vmem:[%s9813_s3 + $0x7c8] ss:$16 sps:$4 sm:$0xff]  }
 0x2c6   :  { %5319 = vmatmul.mubr.bf16.vlgmr.msra.gmra.mrb[12].mxu1 %v9246_v18  ;;  %v7116_v18 = vld [vmem:[%s9813_s3 + $0x66c] ss:$16 sps:$4 sm:$0xff]  }
 0x2c7   :  { %5328 = vmatpush1.bf16.msra.mxu1 %v7096_v0  ;;  %v7164_v0 = vld [vmem:[%s9813_s3 + $0x7ec] ss:$16 sps:$4 sm:$0xff]  }
 0x2c8   :  { %5329 = vmatprep.subr.bf16.mxu1 %v7104_v42  ;;  %v7186_v42 = vld [vmem:[%s9815_s5 + $0x70] ss:$8 sps:$4 sm:$0xff]  }
 0x2cb   :  { %5330 = vmatpush1.bf16.msra.mxu1 %v7102_v61  ;;  %v7191_v61 = vld [vmem:[%s9815_s5 + $0x84] ss:$8 sps:$4 sm:$0xff]  }
 0x2cc   :  { %5331 = vmatprep.subr.bf16.mxu1 %v7110_v43  ;;  %v7162_v43 = vld [vmem:[%s9813_s3 + $0x7e8] ss:$16 sps:$4 sm:$0xff]  }
 0x2cf   :  { %5332 = vmatpush1.bf16.msra.mxu1 %v7108_v33  ;;  %v7189_v33 = vld [vmem:[%s9815_s5 + $0x80] ss:$8 sps:$4 sm:$0xff]  }
 0x2d0   :  { %5333 = vmatprep.subr.bf16.mxu1 %v7116_v18  ;;  %v7194_v18 = vld [vmem:[%s9815_s5 + $0x94] ss:$8 sps:$4 sm:$0xff]  }
 0x2d3   :  { %5334 = vmatpush1.bf16.msra.mxu1 %v7114_v46  ;;  %v7192_v46 = vld [vmem:[%s9815_s5 + $0x90] ss:$8 sps:$4 sm:$0xff]  }
 0x2d4   :  { %5335 = vmatprep.subr.bf16.mxu1 %v7122_v45  ;;  %v7197_v45 = vld [vmem:[%s9815_s5 + $0xa4] ss:$8 sps:$4 sm:$0xff]  }
 0x2d7   :  { %5336 = vmatpush1.bf16.msra.mxu1 %v7120_v32  ;;  %v7200_v32 = vld [vmem:[%s9815_s5 + $0xb4] ss:$8 sps:$4 sm:$0xff]  }
 0x2d8   :  { %5337 = vmatprep.subr.bf16.mxu1 %v7128_v47  ;;  %v7203_v47 = vld [vmem:[%s9815_s5 + $0xc4] ss:$8 sps:$4 sm:$0xff]  }
 0x2d9   :  { %v3443_v52 = vpop.f32.mrb[8].mxu1 }
 0x2da   :  { %v6693_v55 = vadd.f32 %v3443_v52, %v516_v16  ;;  %v3445_v19 = vpop.f32.mrb[9].mxu1  ;;  %v7201_v16 = vld [vmem:[%s9815_s5 + $0xc0] ss:$8 sps:$4 sm:$0xff]  }
 0x2db   :  { %v6694_v56 = vadd.f32 %v3445_v19, %v520_v48  ;;  %v3447_v59 = vpop.f32.mrb[10].mxu1  ;;  %5338 = vmatpush1.bf16.msra.mxu1 %v7126_v49  ;;  %v7206_v48 = vld [vmem:[%s9815_s5 + $0xd4] ss:$8 sps:$4 sm:$0xff]   ;;  %v7204_v49 = vld [vmem:[%s9815_s5 + $0xd0] ss:$8 sps:$4 sm:$0xff]  }
 0x2dc   :  { %vm3456_vm6 = vcmp.gt.f32.partialorder %v6693_v55, 0.0  ;;  %v3464_v50 = vmul.f32 0.2, %v6693_v55  ;;  %v3448_v1 = vpop.f32.mrb[11].mxu1  ;;  %5339 = vmatprep.subr.bf16.mxu1 %v7134_v51  ;;  %v7209_v51 = vld [vmem:[%s9815_s5 + $0xe4] ss:$8 sps:$4 sm:$0xff]  }
 0x2dd   :  { %vm3457_vm7 = vcmp.gt.f32.partialorder %v6694_v56, 0.0  ;;  %v3465_v4 = vmul.f32 0.2, %v6694_v56  ;;  %v7207_v52 = vld [vmem:[%s9815_s5 + $0xe0] ss:$8 sps:$4 sm:$0xff]  }
 0x2de   :  { %v3472_v5 = vsel %vm3456_vm6, %v6693_v55, %v3464_v50  ;;  %v7212_v55 = vld [vmem:[%s9815_s5 + $0xf4] ss:$8 sps:$4 sm:$0xff]   ;;  %v7210_v19 = vld [vmem:[%s9815_s5 + $0xf0] ss:$8 sps:$4 sm:$0xff]   ;;  %v9690_v59 = vld [vmem:[%s9816_s4] sm:$0xf] }
 0x2df   :  { %5340 = vmatpush1.bf16.msra.mxu1 %v7132_v26  ;;  %v3473_v6 = vsel %vm3457_vm7, %v6694_v56, %v3465_v4  ;;  %v9545_v13 = vpack.c.bf16 %v3472_v5, %v3472_v5  ;;  %v7215_v56 = vld [vmem:[%s9815_s5 + $0x104] ss:$8 sps:$4 sm:$0xff]   ;;  %v3743_v26 = vrot.slane %v9690_v59, %v8525_v8  ;;  %v3747_v50 = vrot.slane %v9690_v59, %v8531_v11 }
 0x2e0   :  { %v3481_v9 = vpack.c.bf16 %v3473_v6, %v3473_v6  ;;  %5341 = vmatprep.subr.bf16.mxu1 %v7140_v3 }
 0x2e2   :  { %5195 = vmatprep.mubr.bf16.mxu0 %v3481_v9  ;;  %5359 = vmatprep.mubr.bf16.mxu1 %v3481_v9 }
 0x2e3   :  { %5196 = vmatmul.mubr.bf16.vlgmr.msra.gmra.mrb[8].mxu0 %v9545_v13  ;;  %5342 = vmatpush1.bf16.msra.mxu1 %v7138_v7 }
 0x2e4   :  { %5343 = vmatprep.subr.bf16.mxu1 %v7143_v10  ;;  %5781 = vmatpush1.bf16.msra.mxu0 %v7165_v12 }
 0x2e5   :  { %5782 = vmatprep.subr.bf16.mxu0 %v7170_v14 }
 0x2e7   :  { %5344 = vmatpush1.bf16.msra.mxu1 %v7141_v15  ;;  %v7213_v15 = vld [vmem:[%s9815_s5 + $0x100] ss:$8 sps:$4 sm:$0xff]  }
 0x2e8   :  { %5345 = vmatprep.subr.bf16.mxu1 %v7146_v17  ;;  %5783 = vmatpush1.bf16.msra.mxu0 %v7168_v2  ;;  %v7218_v2 = vld [vmem:[%s9815_s5 + $0x114] ss:$8 sps:$4 sm:$0xff]  }
 0x2e9   :  { %5784 = vmatprep.subr.bf16.mxu0 %v7173_v20  ;;  %v7216_v20 = vld [vmem:[%s9815_s5 + $0x110] ss:$8 sps:$4 sm:$0xff]  }
 0x2eb   :  { %5346 = vmatpush1.bf16.msra.mxu1 %v7144_v53  ;;  %v7221_v53 = vld [vmem:[%s9815_s5 + $0x124] ss:$8 sps:$4 sm:$0xff]  }
 0x2ec   :  { %5347 = vmatprep.subr.bf16.mxu1 %v7149_v22  ;;  %5785 = vmatpush1.bf16.msra.mxu0 %v7171_v23  ;;  %v7219_v22 = vld [vmem:[%s9815_s5 + $0x120] ss:$8 sps:$4 sm:$0xff]   ;;  %v7224_v23 = vld [vmem:[%s9815_s5 + $0x134] ss:$8 sps:$4 sm:$0xff]  }
 0x2ed   :  { %5786 = vmatprep.subr.bf16.mxu0 %v7176_v24  ;;  %v7222_v24 = vld [vmem:[%s9815_s5 + $0x130] ss:$8 sps:$4 sm:$0xff]  }
 0x2ef   :  { %5348 = vmatpush1.bf16.msra.mxu1 %v7147_v25  ;;  %v7227_v25 = vld [vmem:[%s9815_s5 + $0x144] ss:$8 sps:$4 sm:$0xff]  }
 0x2f0   :  { %5349 = vmatprep.subr.bf16.mxu1 %v7152_v54  ;;  %5787 = vmatpush1.bf16.msra.mxu0 %v7174_v27  ;;  %v7225_v54 = vld [vmem:[%s9815_s5 + $0x140] ss:$8 sps:$4 sm:$0xff]   ;;  %v7230_v27 = vld [vmem:[%s9815_s5 + $0x154] ss:$8 sps:$4 sm:$0xff]  }
 0x2f1   :  { %5788 = vmatprep.subr.bf16.mxu0 %v7179_v28  ;;  %v7228_v28 = vld [vmem:[%s9815_s5 + $0x150] ss:$8 sps:$4 sm:$0xff]  }
 0x2f3   :  { %5350 = vmatpush1.bf16.msra.mxu1 %v7150_v29  ;;  %v7233_v29 = vld [vmem:[%s9815_s5 + $0x164] ss:$8 sps:$4 sm:$0xff]  }
 0x2f4   :  { %5351 = vmatprep.subr.bf16.mxu1 %v7155_v30  ;;  %5789 = vmatpush1.bf16.msra.mxu0 %v7177_v31  ;;  %v7231_v30 = vld [vmem:[%s9815_s5 + $0x160] ss:$8 sps:$4 sm:$0xff]   ;;  %v7236_v31 = vld [vmem:[%s9815_s5 + $0x174] ss:$8 sps:$4 sm:$0xff]  }
 0x2f5   :  { %5790 = vmatprep.subr.bf16.mxu0 %v7182_v39  ;;  %v3755_v39 = vrot.slane %v9690_v59, %v503_v60  ;;  %v7237_v60 = vld [vmem:[%s9815_s5 + $0x180] ss:$8 sps:$4 sm:$0xff]  }
 0x2f7   :  { %5352 = vmatpush1.bf16.msra.mxu1 %v7153_v34 }
 0x2f8   :  { %5353 = vmatprep.subr.bf16.mxu1 %v7158_v36  ;;  %5791 = vmatpush1.bf16.msra.mxu0 %v7180_v37  ;;  %v7234_v36 = vld [vmem:[%s9815_s5 + $0x170] ss:$8 sps:$4 sm:$0xff]  }
 0x2f9   :  { %5792 = vmatprep.subr.bf16.mxu0 %v7185_v38  ;;  %v7239_v38 = vld [vmem:[%s9815_s5 + $0x184] ss:$8 sps:$4 sm:$0xff]  }
 0x2fb   :  { %5354 = vmatpush1.bf16.msra.mxu1 %v7156_v57 }
 0x2fc   :  { %5355 = vmatprep.subr.bf16.mxu1 %v7161_v40  ;;  %5793 = vmatpush1.bf16.msra.mxu0 %v7183_v58 }
 0x2fd   :  { %5794 = vmatprep.subr.bf16.mxu0 %v7188_v41 }
 0x2ff   :  { %5356 = vmatpush1.bf16.msra.mxu1 %v7159_v62  ;;  %v7242_v62 = vld [vmem:[%s9815_s5 + $0x194] ss:$8 sps:$4 sm:$0xff]  }
 0x300   :  { %5357 = vmatprep.subr.bf16.mxu1 %v7164_v0  ;;  %5795 = vmatpush1.bf16.msra.mxu0 %v7186_v42 }
 0x301   :  { %5796 = vmatprep.subr.bf16.mxu0 %v7191_v61  ;;  %v7240_v61 = vld [vmem:[%s9815_s5 + $0x190] ss:$8 sps:$4 sm:$0xff]  }
 0x303   :  { %5358 = vmatpush1.bf16.msra.mxu1 %v7162_v43  ;;  %v7245_v43 = vld [vmem:[%s9815_s5 + $0x1a4] ss:$8 sps:$4 sm:$0xff]  }
 0x304   :  { %5797 = vmatpush1.bf16.msra.mxu0 %v7189_v33  ;;  %v7243_v33 = vld [vmem:[%s9815_s5 + $0x1a0] ss:$8 sps:$4 sm:$0xff]  }
 0x305   :  { %5798 = vmatprep.subr.bf16.mxu0 %v7194_v18  ;;  %v7248_v18 = vld [vmem:[%s9815_s5 + $0x1b4] ss:$8 sps:$4 sm:$0xff]  }
 0x306   :  { %5360 = vmatmul.mubr.bf16.vlgmr.msra.gmra.mrb[12].mxu1 %v9545_v13 }
 0x308   :  { %5799 = vmatpush1.bf16.msra.mxu0 %v7192_v46  ;;  %v7246_v46 = vld [vmem:[%s9815_s5 + $0x1b0] ss:$8 sps:$4 sm:$0xff]  }
 0x309   :  { %5800 = vmatprep.subr.bf16.mxu0 %v7197_v45  ;;  %v7251_v45 = vld [vmem:[%s9815_s5 + $0x1c4] ss:$8 sps:$4 sm:$0xff]  }
 0x30c   :  { %5801 = vmatpush1.bf16.msra.mxu0 %v7195_v44  ;;  %v7249_v44 = vld [vmem:[%s9815_s5 + $0x1c0] ss:$8 sps:$4 sm:$0xff]  }
 0x30d   :  { %5802 = vmatprep.subr.bf16.mxu0 %v7200_v32  ;;  %v7254_v32 = vld [vmem:[%s9815_s5 + $0x1d4] ss:$8 sps:$4 sm:$0xff]  }
 0x310   :  { %5803 = vmatpush1.bf16.msra.mxu0 %v7198_v35  ;;  %v3751_v35 = vrot.slane %v9690_v59, %v499_v21 }
 0x311   :  { %5804 = vmatprep.subr.bf16.mxu0 %v7203_v47  ;;  %v7252_v47 = vld [vmem:[%s9815_s5 + $0x1d0] ss:$8 sps:$4 sm:$0xff]  }
 0x314   :  { %5805 = vmatpush1.bf16.msra.mxu0 %v7201_v16  ;;  %v7257_v16 = vld [vmem:[%s9815_s5 + $0x1e4] ss:$8 sps:$4 sm:$0xff]  }
 0x315   :  { %5806 = vmatprep.subr.bf16.mxu0 %v7206_v48 }
 0x318   :  { %5807 = vmatpush1.bf16.msra.mxu0 %v7204_v49  ;;  %v7255_v49 = vld [vmem:[%s9815_s5 + $0x1e0] ss:$8 sps:$4 sm:$0xff]  }
 0x319   :  { %5808 = vmatprep.subr.bf16.mxu0 %v7209_v51  ;;  %v7258_v51 = vld [vmem:[%s9815_s5 + $0x1f0] ss:$8 sps:$4 sm:$0xff]  }
 0x31c   :  { %5809 = vmatpush1.bf16.msra.mxu0 %v7207_v52 }
 0x31d   :  { %5810 = vmatprep.subr.bf16.mxu0 %v7212_v55 }
 0x320   :  { %5811 = vmatpush1.bf16.msra.mxu0 %v7210_v19  ;;  %v14_v19 = vstv %s9817_s8 }
 0x321   :  { %5821 = vmatprep.subr.bf16.mxu0 %v7215_v56  ;;  %15 = vst [vmem:[#allocation2] sm:$0x1] %v14_v19  ;;  %v5448_v56 = vld [vmem:[%s9818_s6] sm:$0x3] }
 0x322   :  { %v5453_v59 = vrot.slane %v5448_v56, %v8525_v8 }
 0x3b6   :  { %v5197_v1 = vpop.f32.mrb[8].mxu0 }
 0x3b7   :  { %v6695_v3 = vadd.f32 %v5197_v1, %v3743_v26  ;;  %v5199_v4 = vpop.f32.mrb[9].mxu0  ;;  %v5457_v26 = vrot.slane %v5448_v56, %v8531_v11 }
 0x3b8   :  { %v6696_v5 = vadd.f32 %v5199_v4, %v3747_v50  ;;  %v5201_v6 = vpop.f32.mrb[10].mxu0  ;;  %v5868_v50 = vld [vmem:[%s9819_s7] sm:$0x3] }
 0x3b9   :  { %vm5368_vm8 = vcmp.gt.f32.partialorder %v6695_v3, 0.0  ;;  %v5372_v7 = vmul.f32 0.2, %v6695_v3  ;;  %v5202_v9 = vpop.f32.mrb[11].mxu0 }
 0x3ba   :  { %vm5369_vm9 = vcmp.gt.f32.partialorder %v6696_v5, 0.0  ;;  %v5373_v10 = vmul.f32 0.2, %v6696_v5 }
 0x3bb   :  { %v5376_v12 = vsel %vm5368_vm8, %v6695_v3, %v5372_v7  ;;  %v5873_v7 = vrot.slane %v5868_v50, %v8525_v8 }
 0x3bc   :  { %v5377_v13 = vsel %vm5369_vm9, %v6696_v5, %v5373_v10  ;;  %v5380_v17 = vpack.c.bf16 %v5376_v12, %v5376_v12  ;;  %v5877_v12 = vrot.slane %v5868_v50, %v8531_v11 }
 0x3bd   :  { %v5381_v14 = vpack.c.bf16 %v5377_v13, %v5377_v13 }
 0x3bf   :  { %5812 = vmatprep.mubr.bf16.mxu0 %v5381_v14 }
 0x3c0   :  { %5813 = vmatmul.mubr.bf16.vlgmr.msra.gmra.mrb[12].mxu0 %v5380_v17 }
 0x3c1   :  { %5822 = vmatpush1.bf16.msra.mxu0 %v7213_v15 }
 0x3c2   :  { %5823 = vmatprep.subr.bf16.mxu0 %v7218_v2 }
 0x3c5   :  { %5824 = vmatpush1.bf16.msra.mxu0 %v7216_v20 }
 0x3c6   :  { %5825 = vmatprep.subr.bf16.mxu0 %v7221_v53  ;;  %v6684_v53 = vld [vmem:[#allocation2] ss:$0 sm:$0xff] }
 0x3c9   :  { %5826 = vmatpush1.bf16.msra.mxu0 %v7219_v22 }
 0x3ca   :  { %5827 = vmatprep.subr.bf16.mxu0 %v7224_v23 }
 0x3cd   :  { %5828 = vmatpush1.bf16.msra.mxu0 %v7222_v24 }
 0x3ce   :  { %5829 = vmatprep.subr.bf16.mxu0 %v7227_v25 }
 0x3d1   :  { %5830 = vmatpush1.bf16.msra.mxu0 %v7225_v54 }
 0x3d2   :  { %5831 = vmatprep.subr.bf16.mxu0 %v7230_v27 }
 0x3d5   :  { %5832 = vmatpush1.bf16.msra.mxu0 %v7228_v28 }
 0x3d6   :  { %5833 = vmatprep.subr.bf16.mxu0 %v7233_v29 }
 0x3d9   :  { %5834 = vmatpush1.bf16.msra.mxu0 %v7231_v30  ;;  %v5361_v34 = vpop.f32.mrb[12].mxu1 }
 0x3da   :  { %v5363_v37 = vpop.f32.mrb[13].mxu1  ;;  %5835 = vmatprep.subr.bf16.mxu0 %v7236_v31  ;;  %v6697_v48 = vadd.f32 %v5361_v34, %v3751_v35 }
 0x3db   :  { %v6698_v57 = vadd.f32 %v5363_v37, %v3755_v39  ;;  %v5365_v40 = vpop.f32.mrb[14].mxu1 }
 0x3dc   :  { %v5366_v58 = vpop.f32.mrb[15].mxu1  ;;  %v5374_v21 = vmul.f32 0.2, %v6697_v48  ;;  %vm5370_vm11 = vcmp.gt.f32.partialorder %v6697_v48, 0.0 }
 0x3dd   :  { %vm5371_vm10 = vcmp.gt.f32.partialorder %v6698_v57, 0.0  ;;  %v5375_v41 = vmul.f32 0.2, %v6698_v57  ;;  %5836 = vmatpush1.bf16.msra.mxu0 %v7234_v36 }
 0x3de   :  { %5837 = vmatprep.subr.bf16.mxu0 %v7239_v38  ;;  %v5378_v52 = vsel %vm5370_vm11, %v6697_v48, %v5374_v21 }
 0x3df   :  { %v5379_v0 = vsel %vm5371_vm10, %v6698_v57, %v5375_v41  ;;  %v5382_v55 = vpack.c.bf16 %v5378_v52, %v5378_v52 }
 0x3e0   :  { %v5383_v42 = vpack.c.bf16 %v5379_v0, %v5379_v0 }
 0x3e1   :  { %5838 = vmatpush1.bf16.msra.mxu0 %v7237_v60 }
 0x3e2   :  { %5853 = vmatprep.mubr.bf16.mxu0 %v5383_v42  ;;  %5839 = vmatprep.subr.bf16.mxu0 %v7242_v62 }
 0x3e5   :  { %5840 = vmatpush1.bf16.msra.mxu0 %v7240_v61 }
 0x3e6   :  { %5841 = vmatprep.subr.bf16.mxu0 %v7245_v43 }
 0x3e9   :  { %5842 = vmatpush1.bf16.msra.mxu0 %v7243_v33 }
 0x3ea   :  { %5843 = vmatprep.subr.bf16.mxu0 %v7248_v18 }
 0x3ed   :  { %5844 = vmatpush1.bf16.msra.mxu0 %v7246_v46 }
 0x3ee   :  { %5845 = vmatprep.subr.bf16.mxu0 %v7251_v45 }
 0x3f1   :  { %5846 = vmatpush1.bf16.msra.mxu0 %v7249_v44 }
 0x3f2   :  { %5847 = vmatprep.subr.bf16.mxu0 %v7254_v32 }
 0x3f5   :  { %5848 = vmatpush1.bf16.msra.mxu0 %v7252_v47 }
 0x3f6   :  { %5849 = vmatprep.subr.bf16.mxu0 %v7257_v16 }
 0x3f9   :  { %5850 = vmatpush1.bf16.msra.mxu0 %v7255_v49 }
 0x3fa   :  { %5851 = vmatprep.subr.bf16.mxu0 %v7260_v63 }
 0x3fd   :  { %5852 = vmatpush1.bf16.msra.mxu0 %v7258_v51 }
 0x400   :  { %5854 = vmatmul.mubr.bf16.vlgmr.msra.gmra.mrb[12].mxu0 %v5382_v55 }
 0x4d3   :  { %v5855_v1 = vpop.f32.mrb[12].mxu0 }
 0x4d4   :  { %v6699_v3 = vadd.f32 %v5855_v1, %v5453_v59  ;;  %v5857_v4 = vpop.f32.mrb[13].mxu0 }
 0x4d5   :  { %v6700_v5 = vadd.f32 %v5857_v4, %v5457_v26  ;;  %v5859_v6 = vpop.f32.mrb[14].mxu0 }
 0x4d6   :  { %vm5862_vm12 = vcmp.gt.f32.partialorder %v6699_v3, 0.0  ;;  %v5864_v9 = vmul.f32 0.2, %v6699_v3  ;;  %v5860_v10 = vpop.f32.mrb[15].mxu0 }
 0x4d7   :  { %vm5863_vm13 = vcmp.gt.f32.partialorder %v6700_v5, 0.0  ;;  %v5865_v13 = vmul.f32 0.2, %v6700_v5 }
 0x4d8   :  { %v5866_v14 = vsel %vm5862_vm12, %v6699_v3, %v5864_v9 }
 0x4d9   :  { %v5867_v15 = vsel %vm5863_vm13, %v6700_v5, %v5865_v13  ;;  %v5880_v17 = vmul.f32 %v5873_v7, %v5866_v14 }
 0x4da   :  { %v5881_v2 = vmul.f32 %v5877_v12, %v5867_v15 }
 0x4dc   :  { %v5882_v20 = vadd.f32 %v5881_v2, %v5880_v17 }
 0x4de   :  { %5883 = vadd.xlane.f32.xlu0 %v5882_v20 }
 0x56b   :  { %v5884_v22 = vpop.xlane.xlu0 %5883 }
 0x56c   :  { %v5892_v23 = vadd.f32 %v6684_v53, %v5884_v22 }
 0x56e   :  { %v5893_v24 = vand.u32 2147483647, %v5892_v23  ;;  %vm5897_vm15 = vcmp.ge.f32.partialorder %v5892_v23, 0.0 }
 0x570   :  { %v5894_v25 = vsub.f32 0.0, %v5893_v24 }
 0x572   :  { %v5895_v54 = vmul.f32 1.442695, %v5894_v25 }
 0x574   :  { %7261 = vpow2.f32 %v5895_v54 }
 0x57e   :  { %v7262_v8 = vpop.eup %7261 }
 0x57f   :  { %v5898_v27 = vadd.f32 1.0, %v7262_v8 }
 0x581   :  { %7263 = vrcp.f32 %v5898_v27 }
 0x58b   :  { %v7264_v28 = vpop.eup %7263 }
 0x58c   :  { %v5901_v11 = vmul.f32 %v7264_v28, %v7262_v8 }
 0x58e   :  { %v5902_v29 = vsel %vm5897_vm15, %v7264_v28, %v5901_v11 }
 0x58f   :  { %5904 = vst.msk [vmem:[%s9820_s9] sm:$0xff] %vm5903_vm14, %v5902_v29 }

</bundles_post_ra>
